<compile_context>
chip_gen: v7x
topology: tpu7x:2x2x1
jax: 0.10.0
libtpu: 0.0.40
codegen_flags: <defaults>
</compile_context>

<pallas_src>
import functools

import jax
import jax.numpy as jnp
from jax import lax
from jax.experimental import pallas as pl
from jax.experimental.pallas import tpu as pltpu


# ----------------------------------------------------------------------------
# Per-generation compiler params / tiling helpers
# ----------------------------------------------------------------------------
def _vmem_limit_bytes():
    cap = 64 * 1024 * 1024
    try:
        info = pltpu.get_tpu_info()
        cap = int(getattr(info, "vmem_capacity_bytes", cap) or cap)
    except Exception:  # pragma: no cover - conservative fallback
        pass
    # ~75% of physical VMEM, capped: 96 MiB on 128-MiB parts (v5e/v6e),
    # 48 MiB on the 64-MiB v7x.
    return max(32 * 1024 * 1024, min(int(cap * 3 // 4), 96 * 1024 * 1024))


_CPARAMS = pltpu.CompilerParams(
    dimension_semantics=("parallel",),
    vmem_limit_bytes=_vmem_limit_bytes(),
)

_ROW_TILE = 512  # rows per grid step for row-tiled kernels (multiple of 8)


def _row_tile(m):
    return m if m <= _ROW_TILE else _ROW_TILE


def _batch_spec(shape):
    """Array [B, ...] -> per-grid-step block (1, ...)."""
    block = (1,) + tuple(shape[1:])
    rank = len(shape)
    return pl.BlockSpec(block, lambda b, _r=rank: (b,) + (0,) * (_r - 1))


def _inv_spec(shape):
    """Grid-invariant operand (weights/bias/LN): block == full array."""
    rank = len(shape)
    return pl.BlockSpec(tuple(shape), lambda i, _r=rank: (0,) * _r)


def _largest_divisor(n, cap):
    for d in range(min(n, cap), 0, -1):
        if n % d == 0:
            return d
    return 1


# ----------------------------------------------------------------------------
# Kernel 1: dense multi-head GATConv, fused bias + (ReLU) + residual + LN
# ----------------------------------------------------------------------------
def _gat_kernel(*refs, heads, dh, concat, relu, mask_mode, window):
    if mask_mode == "dense":
        (x_ref, m_ref, w_ref, asrc_ref, adst_ref, b_ref,
         lng_ref, lnb_ref, o_ref) = refs
    else:
        (x_ref, w_ref, asrc_ref, adst_ref, b_ref,
         lng_ref, lnb_ref, o_ref) = refs
        m_ref = None

    x = x_ref[0]                                            # [N, H] f32
    N = x.shape[0]
    # x' = x @ W  — bf16 operands, f32 accumulation (MXU)
    xp = jnp.dot(x.astype(jnp.bfloat16), w_ref[...],
                 preferred_element_type=jnp.float32)        # [N, heads*dh]
    xp_bf = xp.astype(jnp.bfloat16)                         # cast ONCE

    # Attention scores for ALL heads via two small bf16 MXU pushes
    # (block-diagonal a_src / a_dst); no per-head XLU reduces.
    es_all = lax.dot_general(asrc_ref[...], xp_bf, (((1,), (1,)), ((), ())),
                             preferred_element_type=jnp.float32)   # [heads, N]
    ed_all = jnp.dot(xp_bf, adst_ref[...],
                     preferred_element_type=jnp.float32)           # [N, heads]

    # Mask bias hoisted out of the head loop; band / full masks are generated
    # in-kernel (no [B,N,N] DMA for them).
    if mask_mode == "band":
        r = lax.broadcasted_iota(jnp.int32, (N, N), 0)
        c = lax.broadcasted_iota(jnp.int32, (N, N), 1)
        mask_bias = jnp.where(jnp.abs(r - c) <= window, 0.0, -1e30)
    elif mask_mode == "dense":
        m32 = m_ref[0].astype(jnp.int32)                    # int8 mask, 4x less DMA
        mask_bias = jnp.where(m32 > 0, 0.0, -1e30)
    else:                                                   # "full": all edges
        mask_bias = None

    head_outs = []
    g_sum = None
    for h in range(heads):
        # logits[target i, source j] = a_dst.x'_i + a_src.x'_j
        logits = ed_all[:, h:h + 1] + es_all[h:h + 1, :]    # [N, N]
        logits = jnp.where(logits > 0, logits, 0.2 * logits)          # LeakyReLU
        if mask_bias is not None:
            logits = logits + mask_bias
        logits = logits - jnp.max(logits, axis=-1, keepdims=True)
        p = jnp.exp(logits)
        p = p * pl.reciprocal(jnp.sum(p, axis=-1, keepdims=True), approx=True)
        ho = jnp.dot(p.astype(jnp.bfloat16), xp_bf[:, h * dh:(h + 1) * dh],
                     preferred_element_type=jnp.float32)    # [N, dh]
        if concat:
            head_outs.append(ho)                            # register values
        else:
            g_sum = ho if g_sum is None else g_sum + ho     # register accumulate

    if concat:
        g = jnp.concatenate(head_outs, axis=-1)             # assembled once
    else:
        g = g_sum * (1.0 / heads)                           # mean over heads
    g = g + b_ref[...]                                      # GAT bias
    if relu:
        g = jnp.maximum(g, 0.0)                             # dropout = identity
    y = g + x                                               # fused residual
    mu = jnp.mean(y, axis=-1, keepdims=True)                # fused LayerNorm
    var = jnp.mean((y - mu) ** 2, axis=-1, keepdims=True)
    o_ref[0] = (y - mu) * lax.rsqrt(var + 1e-5) * lng_ref[...] + lnb_ref[...]


def dense_gat(x, gat_p, ln_p, *, heads, concat, relu=False,
              mask=None, mask_mode="dense", window=0):
    B, N, H = x.shape
    W, asrc, adst, bias = gat_p['W'], gat_p['asrc'], gat_p['adst'], gat_p['bias']
    hd = W.shape[1]
    dh = hd // heads
    out_dim = hd if concat else dh
    assert out_dim == H, "residual/LN fusion assumes GAT output dim == hidden"

    # Block-diagonal layouts so ONE matmul covers all heads for each of the
    # source / destination score terms.
    eye = jnp.eye(heads, dtype=jnp.float32)
    asrc_blk = (eye[:, :, None] * asrc[None, :, :]).reshape(heads, hd)
    adst_blk = (eye[:, :, None] * adst[None, :, :]).reshape(heads, hd).T

    args = [x]
    specs = [_batch_spec(x.shape)]
    if mask_mode == "dense":
        args.append(mask.astype(jnp.int8))
        specs.append(_batch_spec(mask.shape))
    tail = [W.astype(jnp.bfloat16), asrc_blk.astype(jnp.bfloat16),
            adst_blk.astype(jnp.bfloat16), bias.reshape(1, out_dim),
            ln_p['g'].reshape(1, H), ln_p['b'].reshape(1, H)]
    args += tail
    specs += [_inv_spec(a.shape) for a in tail]

    kernel = functools.partial(_gat_kernel, heads=heads, dh=dh, concat=concat,
                               relu=relu, mask_mode=mask_mode, window=window)
    return pl.pallas_call(
        kernel,
        out_shape=jax.ShapeDtypeStruct((B, N, H), jnp.float32),
        grid=(B,),
        in_specs=specs,
        out_specs=_batch_spec((B, N, H)),
        compiler_params=_CPARAMS,
    )(*args)


# ----------------------------------------------------------------------------
# Kernel 2: label attention, several batch elements per grid step
# ----------------------------------------------------------------------------
def _label_attn_kernel(seq_ref, aux_ref, o_ref):
    seq = seq_ref[...].astype(jnp.bfloat16)                 # [bb, T, H]
    aux = aux_ref[...].astype(jnp.bfloat16)                 # [bb, L, H]
    s = jnp.einsum('btd,bld->btl', seq, aux,
                   preferred_element_type=jnp.float32)      # [bb, T, L]
    s = s - jnp.max(s, axis=-1, keepdims=True)
    p = jnp.exp(s)
    p = p * pl.reciprocal(jnp.sum(p, axis=-1, keepdims=True), approx=True)
    o_ref[...] = jnp.einsum('btl,bld->btd', p.astype(jnp.bfloat16), aux,
                            preferred_element_type=jnp.float32)


def label_attention(seq, aux):
    B, T, H = seq.shape
    L = aux.shape[1]
    bb = _largest_divisor(B, 8)                             # fatter grid steps
    return pl.pallas_call(
        _label_attn_kernel,
        out_shape=jax.ShapeDtypeStruct((B, T, H), jnp.float32),
        grid=(B // bb,),
        in_specs=[pl.BlockSpec((bb, T, H), lambda i: (i, 0, 0)),
                  pl.BlockSpec((bb, L, H), lambda i: (i, 0, 0))],
        out_specs=pl.BlockSpec((bb, T, H), lambda i: (i, 0, 0)),
        compiler_params=_CPARAMS,
    )(seq, aux)


# ----------------------------------------------------------------------------
# Kernel 3: FFN (Linear -> ReLU -> Linear) + fused residual + LN, row-tiled
# ----------------------------------------------------------------------------
def _ffn_kernel(x_ref, w1_ref, b1_ref, w2_ref, b2_ref, lng_ref, lnb_ref, o_ref):
    x = x_ref[...]                                          # [tm, H]
    h = jnp.dot(x.astype(jnp.bfloat16), w1_ref[...],
                preferred_element_type=jnp.float32) + b1_ref[...]
    h = jnp.maximum(h, 0.0)
    f = jnp.dot(h.astype(jnp.bfloat16), w2_ref[...],
                preferred_element_type=jnp.float32) + b2_ref[...]
    y = f + x                                               # fused residual
    mu = jnp.mean(y, axis=-1, keepdims=True)
    var = jnp.mean((y - mu) ** 2, axis=-1, keepdims=True)
    o_ref[...] = (y - mu) * lax.rsqrt(var + 1e-5) * lng_ref[...] + lnb_ref[...]


def ffn_block(x, w1, b1, w2, b2, lng, lnb):
    B, N, H = x.shape
    M = B * N
    tm = _row_tile(M)
    weights = [w1.astype(jnp.bfloat16), b1.reshape(1, -1),
               w2.astype(jnp.bfloat16), b2.reshape(1, -1),
               lng.reshape(1, -1), lnb.reshape(1, -1)]
    out = pl.pallas_call(
        _ffn_kernel,
        out_shape=jax.ShapeDtypeStruct((M, H), jnp.float32),
        grid=(pl.cdiv(M, tm),),
        in_specs=[pl.BlockSpec((tm, H), lambda i: (i, 0))]
                 + [_inv_spec(w.shape) for w in weights],
        out_specs=pl.BlockSpec((tm, H), lambda i: (i, 0)),
        compiler_params=_CPARAMS,
    )(x.reshape(M, H), *weights)
    return out.reshape(B, N, H)


# ----------------------------------------------------------------------------
# Kernel 4: 3x residual ReLU MLP + hidden2tag, row-tiled, lane-dense output
# ----------------------------------------------------------------------------
def _head_kernel(x_ref, wfc_ref, bfc_ref, wt_ref, bt_ref, e_ref, *, n_iter):
    x = x_ref[...]                                          # [tm, H]
    for _ in range(n_iter):
        t = jnp.dot(x.astype(jnp.bfloat16), wfc_ref[...],
                    preferred_element_type=jnp.float32) + bfc_ref[...]
        x = x + jnp.maximum(t, 0.0)                         # dropout = identity
    e_ref[...] = jnp.dot(x.astype(jnp.bfloat16), wt_ref[...],
                         preferred_element_type=jnp.float32) + bt_ref[...]


def head_forward(x, wfc, bfc, wtag, btag, n_iter=3):
    B, T, H = x.shape
    K = wtag.shape[1]
    KP = 128 * pl.cdiv(K, 128)                              # lane-dense emissions
    wt_pad = jnp.zeros((H, KP), jnp.float32).at[:, :K].set(wtag).astype(jnp.bfloat16)
    bt_pad = jnp.zeros((1, KP), jnp.float32).at[:, :K].set(btag)
    M = B * T
    tm = _row_tile(M)
    weights = [wfc.astype(jnp.bfloat16), bfc.reshape(1, -1), wt_pad, bt_pad]
    kernel = functools.partial(_head_kernel, n_iter=n_iter)
    e = pl.pallas_call(
        kernel,
        out_shape=jax.ShapeDtypeStruct((M, KP), jnp.float32),
        grid=(pl.cdiv(M, tm),),
        in_specs=[pl.BlockSpec((tm, H), lambda i: (i, 0))]
                 + [_inv_spec(w.shape) for w in weights],
        out_specs=pl.BlockSpec((tm, KP), lambda i: (i, 0)),
        compiler_params=_CPARAMS,
    )(x.reshape(M, H), *weights)
    return e[:, :K].reshape(B, T, K)                        # strip lane padding


# ----------------------------------------------------------------------------
# Kernel 5: MaskRCNNGuidedEncoder computable core (spec module), row-tiled.
# TODO(synk): maskrcnn_resnet50_fpn detection + per-box crop/interpolate +
# ResNet50 ImageFeatureExtractor are pretrained CNNs with data-dependent crops
# and have no Pallas equivalent; per-category candidate region features and a
# validity mask arrive precomputed.
# ----------------------------------------------------------------------------
def _guided_kernel(feats_ref, mask_ref, aux_ref, wsim_ref, bsim_ref,
                   wout_ref, bout_ref, o_ref):
    feats = feats_ref[...]                                  # [m, R, H] f32
    m, R, H = feats.shape
    valid = (mask_ref[...].astype(jnp.int32) > 0).astype(jnp.float32)   # [m, R]
    aux = aux_ref[...]                                      # [m, H]
    # sim_proj over every (row, region) in one MXU matmul (R padded to 8k, so
    # the reshapes are layout-trivial).
    proj = jnp.dot(feats.reshape(m * R, H).astype(jnp.bfloat16), wsim_ref[...],
                   preferred_element_type=jnp.float32) + bsim_ref[...]
    proj = proj.reshape(m, R, H)
    aux3 = aux[:, None, :]                                  # [m, 1, H]
    # cosine similarity; denominator via ONE rsqrt on squared norms
    dot = jnp.sum(proj * aux3, axis=-1)                     # [m, R]
    pn2 = jnp.sum(proj * proj, axis=-1)                     # [m, R]
    an2 = jnp.sum(aux * aux, axis=-1)[:, None]              # [m, 1]
    sim = dot * lax.rsqrt(jnp.maximum(pn2 * an2, 1e-16))    # [m, R]
    # masked softmax over candidates; empty category -> zero aggregate
    sim = jnp.where(valid > 0, sim, -1e30)
    sim = sim - jnp.max(sim, axis=-1, keepdims=True)
    p = jnp.exp(sim) * valid
    denom = jnp.maximum(jnp.sum(p, axis=-1, keepdims=True), 1e-20)
    p = p * pl.reciprocal(denom, approx=True)               # [m, R]
    agg = jnp.sum(p[:, :, None] * feats, axis=1)            # [m, H] (orig feats)
    o_ref[...] = jnp.dot(agg.astype(jnp.bfloat16), wout_ref[...],
                         preferred_element_type=jnp.float32) + bout_ref[...]


def maskrcnn_guided_encoder(region_feats, region_mask, aux_text_features, p):
    """region_feats [B,4,R,H], region_mask [B,4,R], aux_text [B,4,H] -> [B,4,H]."""
    B, C, R, H = region_feats.shape
    M = B * C
    Rp = 8 * pl.cdiv(R, 8)                                  # sublane-aligned regions
    feats = jnp.zeros((M, Rp, H), jnp.float32).at[:, :R, :].set(
        region_feats.reshape(M, R, H))
    mask = jnp.zeros((M, Rp), jnp.int8).at[:, :R].set(
        region_mask.reshape(M, R).astype(jnp.int8))
    aux = aux_text_features.reshape(M, H)
    tm = _row_tile(M)
    weights = [p['w_sim'].astype(jnp.bfloat16), p['b_sim'].reshape(1, -1),
               p['w_out'].astype(jnp.bfloat16), p['b_out'].reshape(1, -1)]
    out = pl.pallas_call(
        _guided_kernel,
        out_shape=jax.ShapeDtypeStruct((M, H), jnp.float32),
        grid=(pl.cdiv(M, tm),),
        in_specs=[pl.BlockSpec((tm, Rp, H), lambda i: (i, 0, 0)),
                  pl.BlockSpec((tm, Rp), lambda i: (i, 0)),
                  pl.BlockSpec((tm, H), lambda i: (i, 0))]
                 + [_inv_spec(w.shape) for w in weights],
        out_specs=pl.BlockSpec((tm, H), lambda i: (i, 0)),
        compiler_params=_CPARAMS,
    )(feats, mask, aux, *weights)
    return out.reshape(B, C, H)


# ----------------------------------------------------------------------------
# Plain-JAX glue
# ----------------------------------------------------------------------------
def cosine_sim(a, b, eps=1e-8):
    an = a / jnp.maximum(jnp.linalg.norm(a, axis=-1, keepdims=True), eps)
    bn = b / jnp.maximum(jnp.linalg.norm(b, axis=-1, keepdims=True), eps)
    return an @ bn.T


# TextEncoder: 2 x (GATConv concat=False -> dropout -> LN(x+res)); band
# adjacency (|i-j| <= window) generated inside the kernel (no mask DMA).
def text_encoder_forward(layers, x, window_size=2, heads=4):
    for p in layers:
        x = dense_gat(x, p['gat'], p['ln'], heads=heads, concat=False,
                      relu=False, mask_mode="band", window=window_size)
    return x


# AuxiliaryEncoder: type embed + 3 x (GAT -> LN -> FFN -> LN); label graph is
# fully connected -> no masking work at all.
def aux_encoder_forward(params, label_embeddings, heads=4):
    x = label_embeddings + params['type_embed'][None, :, :]
    for p in params['layers']:
        x = dense_gat(x, p['gat'], p['ln'], heads=heads, concat=True,
                      relu=False, mask_mode="full")
        # NOTE: the reference module reuses the SAME LayerNorm parameters after
        # both sub-layers; kept as-is to preserve semantics.
        x = ffn_block(x, p['w1'], p['b1'], p['w2'], p['b2'],
                      p['ln']['g'], p['ln']['b'])
    return x


# GraphFusion (image_repr=None path): chain + top-k text<->label + label-label;
# mask is int8 (the only per-batch adjacency DMA'd).  Self loops guarantee
# every softmax row has at least one unmasked source (no NaN).
def graph_fusion_forward(layers, text_repr, label_repr, top_k=3, heads=4):
    B, T, H = text_repr.shape
    L = label_repr.shape[1]
    N = T + L

    def build_mask(text, label):
        idx = jnp.arange(T)
        chain = jnp.abs(idx[:, None] - idx[None, :]) == 1
        sim = cosine_sim(text, label)                       # [T, L]
        _, topk_idx = lax.top_k(sim, top_k)
        memb = jnp.sum(jax.nn.one_hot(topk_idx, L, dtype=jnp.float32), axis=1) > 0
        A = jnp.zeros((N, N), jnp.bool_)
        A = A.at[:T, :T].set(chain)
        A = A.at[:T, T:].set(memb)
        A = A.at[T:, :T].set(memb.T)
        A = A.at[T:, T:].set(True)                          # label-label all pairs
        A = jnp.logical_or(A, jnp.eye(N, dtype=jnp.bool_))  # GATConv self loops
        return A.astype(jnp.int8)

    masks = jax.vmap(build_mask)(text_repr, label_repr)
    x = jnp.concatenate([text_repr, label_repr], axis=1)    # [B, N, H]
    for p in layers:
        x = dense_gat(x, p['gat'], p['ln'], heads=heads, concat=True,
                      relu=True, mask=masks, mask_mode="dense")
    return x[:, :T, :]


# CRF Viterbi decode (plain JAX; sequential scan, not a tiled Pallas hot path).
def crf_decode(emissions, start, trans, end):
    def decode_one(em):                                     # em: [T, K]
        def fwd(score, e_t):
            bcast = score[:, None] + trans                  # [K_prev, K_next]
            return jnp.max(bcast, axis=0) + e_t, jnp.argmax(bcast, axis=0)

        init = start + em[0]
        score, history = lax.scan(fwd, init, em[1:])        # history: [T-1, K]
        last = jnp.argmax(score + end)

        def back(nxt, h):
            prev = h[nxt]
            return prev, prev

        _, head_tags = lax.scan(back, last, history, reverse=True)
        return jnp.concatenate([head_tags, last[None]], axis=0).astype(jnp.int32)

    return jax.vmap(decode_one)(emissions)


# ----------------------------------------------------------------------------
# Full forward (eval mode: every nn.Dropout is identity)
# ----------------------------------------------------------------------------
def model_forward(params, input_ids, attention_mask, label_embeddings,
                  image_tensor=None):
    # TODO(synk): pretrained BertModel replaced by a deterministic embedding
    # lookup producing last_hidden_state [B, T, H].
    seq = jnp.take(params['bert_embed'], input_ids, axis=0)
    seq = text_encoder_forward(params['text_encoder'], seq)
    enhanced_aux = aux_encoder_forward(params['aux_encoder'], label_embeddings)
    label_context = label_attention(seq, enhanced_aux)      # [B, T, H]
    # image_tensor=None path: Mask R-CNN image branch skipped (image_features
    # is None in the reference forward).  The guided encoder kernel itself is
    # exercised separately in __main__.
    enhanced = graph_fusion_forward(params['graph_fusion'], seq, label_context)
    emissions = head_forward(enhanced, params['fc_w'], params['fc_b'],
                             params['tag_w'], params['tag_b'])
    pred = crf_decode(emissions, params['crf_start'], params['crf_trans'],
                      params['crf_end'])
    return pred, emissions


# ----------------------------------------------------------------------------
# Deterministic parameter init
# ----------------------------------------------------------------------------
def init_params(key, H, num_tags, vocab, heads=4):
    keys = iter(jax.random.split(key, 128))

    def nk():
        return next(keys)

    def glorot(shape):
        fi, fo = shape[0], shape[-1]
        lim = (6.0 / (fi + fo)) ** 0.5
        return jax.random.uniform(nk(), shape, jnp.float32, -lim, lim)

    def gat(out_per_head, concat):
        out_dim = heads * out_per_head if concat else out_per_head
        return dict(W=glorot((H, heads * out_per_head)),
                    asrc=glorot((heads, out_per_head)),
                    adst=glorot((heads, out_per_head)),
                    bias=jnp.zeros((out_dim,), jnp.float32))

    def ln():
        return dict(g=jnp.ones((H,), jnp.float32), b=jnp.zeros((H,), jnp.float32))

    params = {}
    params['bert_embed'] = 0.1 * jax.random.normal(nk(), (vocab, H), jnp.float32)
    params['text_encoder'] = [dict(gat=gat(H, concat=False), ln=ln())
                              for _ in range(2)]
    params['aux_encoder'] = dict(
        type_embed=0.1 * jax.random.normal(nk(), (4, H), jnp.float32),
        layers=[dict(gat=gat(H // heads, concat=True), ln=ln(),
                     w1=glorot((H, 2 * H)), b1=jnp.zeros((2 * H,), jnp.float32),
                     w2=glorot((2 * H, H)), b2=jnp.zeros((H,), jnp.float32))
                for _ in range(3)])
    params['graph_fusion'] = [dict(gat=gat(H // heads, concat=True), ln=ln())
                              for _ in range(3)]
    params['fc_w'] = glorot((H, H))
    params['fc_b'] = jnp.zeros((H,), jnp.float32)
    params['tag_w'] = glorot((H, num_tags))
    params['tag_b'] = jnp.zeros((num_tags,), jnp.float32)
    params['crf_start'] = 0.1 * jax.random.normal(nk(), (num_tags,), jnp.float32)
    params['crf_end'] = 0.1 * jax.random.normal(nk(), (num_tags,), jnp.float32)
    params['crf_trans'] = 0.1 * jax.random.normal(nk(), (num_tags, num_tags),
                                                  jnp.float32)
    # MaskRCNNGuidedEncoder projections (sim_proj / out_proj)
    params['mrcnn'] = dict(w_sim=glorot((H, H)), b_sim=jnp.zeros((H,), jnp.float32),
                           w_out=glorot((H, H)), b_out=jnp.zeros((H,), jnp.float32))
    return params


# ----------------------------------------------------------------------------
if __name__ == "__main__":
    B, T, H, L, K, VOCAB, R = 2, 8, 32, 4, 9, 100, 5

    key = jax.random.PRNGKey(0)
    kp, kid, klab, kreg, kcnt = jax.random.split(key, 5)

    params = init_params(kp, H=H, num_tags=K, vocab=VOCAB)
    input_ids = jax.random.randint(kid, (B, T), 0, VOCAB)
    attention_mask = jnp.ones((B, T), jnp.int32)
    label_embeddings = jax.random.normal(klab, (B, L, H), jnp.float32)

    # Text path (image_tensor=None)
    fwd = jax.jit(functools.partial(model_forward, params))
    pred, emissions = fwd(input_ids, attention_mask, label_embeddings)
    jax.block_until_ready((pred, emissions))
    assert pred.shape == (B, T)
    assert emissions.shape == (B, T, K)

    # MaskRCNNGuidedEncoder (spec module): guided attention over precomputed
    # per-category region candidate features; one category left empty to
    # exercise the zero-candidate branch.
    region_feats = jax.random.normal(kreg, (B, 4, R, H), jnp.float32)
    counts = jax.random.randint(kcnt, (B, 4), 0, R + 1).at[0, 2].set(0)
    region_mask = (jnp.arange(R)[None, None, :] < counts[:, :, None]).astype(jnp.int8)

    @jax.jit
    def image_branch(rf, rm, labels):
        aux_text = aux_encoder_forward(params['aux_encoder'], labels)  # [B, 4, H]
        return maskrcnn_guided_encoder(rf, rm, aux_text, params['mrcnn'])

    img_feats = image_branch(region_feats, region_mask, label_embeddings)
    jax.block_until_ready(img_feats)
    assert img_feats.shape == (B, 4, H)

    print("KERNEL_OK")
</pallas_src>

<mosaic_0001>
module attributes {stable_mosaic.version = 11 : i64} {
  func.func @_gat_kernel(%arg0: i32, %arg1: memref<1x8x32xf32, #tpu.memory_space<vmem>>, %arg2: memref<32x128xbf16, #tpu.memory_space<vmem>>, %arg3: memref<4x128xbf16, #tpu.memory_space<vmem>>, %arg4: memref<128x4xbf16, #tpu.memory_space<vmem>>, %arg5: memref<1x32xf32, #tpu.memory_space<vmem>>, %arg6: memref<1x32xf32, #tpu.memory_space<vmem>>, %arg7: memref<1x32xf32, #tpu.memory_space<vmem>>, %arg8: memref<1x8x32xf32, #tpu.memory_space<vmem>>) attributes {dimension_semantics = [#tpu.dimension_semantics<parallel>], iteration_bounds = array<i64: 2>, scalar_prefetch = 0 : i64, scratch_operands = 0 : i64, tpu.core_type = #tpu.core_type<tc>, window_params = [{transform_indices = @transform_0, window_bounds = array<i64: 1, 8, 32>}, {pipeline_mode = #tpu.pipeline_mode<synchronous>, transform_indices = @transform_1, window_bounds = array<i64: 32, 128>}, {pipeline_mode = #tpu.pipeline_mode<synchronous>, transform_indices = @transform_2, window_bounds = array<i64: 4, 128>}, {pipeline_mode = #tpu.pipeline_mode<synchronous>, transform_indices = @transform_3, window_bounds = array<i64: 128, 4>}, {pipeline_mode = #tpu.pipeline_mode<synchronous>, transform_indices = @transform_4, window_bounds = array<i64: 1, 32>}, {pipeline_mode = #tpu.pipeline_mode<synchronous>, transform_indices = @transform_5, window_bounds = array<i64: 1, 32>}, {pipeline_mode = #tpu.pipeline_mode<synchronous>, transform_indices = @transform_6, window_bounds = array<i64: 1, 32>}, {transform_indices = @transform_7, window_bounds = array<i64: 1, 8, 32>}]} {
    %c0 = arith.constant 0 : index
    %c0_0 = arith.constant 0 : index
    %c0_1 = arith.constant 0 : index
    %0 = vector.load %arg1[%c0, %c0_0, %c0_1] : memref<1x8x32xf32, #tpu.memory_space<vmem>>, vector<1x8x32xf32>
    %1 = vector.shape_cast %0 : vector<1x8x32xf32> to vector<8x32xf32>
    %2 = arith.truncf %1 : vector<8x32xf32> to vector<8x32xbf16>
    %c0_2 = arith.constant 0 : index
    %c0_3 = arith.constant 0 : index
    %3 = vector.load %arg2[%c0_2, %c0_3] : memref<32x128xbf16, #tpu.memory_space<vmem>>, vector<32x128xbf16>
    %cst = arith.constant dense<0.000000e+00> : vector<8x128xf32>
    %4 = tpu.matmul %2, %3, %cst {dimension_numbers = #tpu.dot_dimension_numbers<[1], [0], [0], [1], [0, 0, 1, 1], [], []>} : vector<8x32xbf16>, vector<32x128xbf16>, vector<8x128xf32> -> vector<8x128xf32>
    %5 = arith.truncf %4 : vector<8x128xf32> to vector<8x128xbf16>
    %c0_4 = arith.constant 0 : index
    %c0_5 = arith.constant 0 : index
    %6 = vector.load %arg3[%c0_4, %c0_5] : memref<4x128xbf16, #tpu.memory_space<vmem>>, vector<4x128xbf16>
    %cst_6 = arith.constant dense<0.000000e+00> : vector<4x8xf32>
    %7 = tpu.matmul %6, %5, %cst_6 {dimension_numbers = #tpu.dot_dimension_numbers<[1], [1], [0], [0], [0, 0, 1, 0], [], []>} : vector<4x128xbf16>, vector<8x128xbf16>, vector<4x8xf32> -> vector<4x8xf32>
    %c0_7 = arith.constant 0 : index
    %c0_8 = arith.constant 0 : index
    %8 = vector.load %arg4[%c0_7, %c0_8] : memref<128x4xbf16, #tpu.memory_space<vmem>>, vector<128x4xbf16>
    %cst_9 = arith.constant dense<0.000000e+00> : vector<8x4xf32>
    %9 = tpu.matmul %5, %8, %cst_9 {dimension_numbers = #tpu.dot_dimension_numbers<[1], [0], [0], [1], [0, 0, 1, 1], [], []>} : vector<8x128xbf16>, vector<128x4xbf16>, vector<8x4xf32> -> vector<8x4xf32>
    %10 = tpu.iota {dimensions = array<i32: 0>} : vector<8x8xi32>
    %11 = tpu.iota {dimensions = array<i32: 1>} : vector<8x8xi32>
    %12 = arith.subi %10, %11 : vector<8x8xi32>
    %13 = math.absi %12 : vector<8x8xi32>
    %c2_i32 = arith.constant 2 : i32
    %14 = vector.broadcast %c2_i32 : i32 to vector<8x8xi32>
    %15 = arith.cmpi sle, %13, %14 : vector<8x8xi32>
    %cst_10 = arith.constant 0.000000e+00 : f32
    %cst_11 = arith.constant -1.000000e+30 : f32
    %16 = vector.broadcast %cst_10 : f32 to vector<8x8xf32>
    %17 = vector.broadcast %cst_11 : f32 to vector<8x8xf32>
    %18 = arith.select %15, %16, %17 : vector<8x8xi1>, vector<8x8xf32>
    %19 = vector.extract_strided_slice %9 {offsets = [0, 0], sizes = [8, 1], strides = [1, 1]} : vector<8x4xf32> to vector<8x1xf32>
    %20 = vector.extract_strided_slice %7 {offsets = [0, 0], sizes = [1, 8], strides = [1, 1]} : vector<4x8xf32> to vector<1x8xf32>
    %21 = vector.broadcast %19 : vector<8x1xf32> to vector<8x8xf32>
    %22 = vector.broadcast %20 : vector<1x8xf32> to vector<8x8xf32>
    %23 = arith.addf %21, %22 : vector<8x8xf32>
    %cst_12 = arith.constant 0.000000e+00 : f32
    %24 = vector.broadcast %cst_12 : f32 to vector<8x8xf32>
    %25 = arith.cmpf ogt, %23, %24 : vector<8x8xf32>
    %cst_13 = arith.constant 2.000000e-01 : f32
    %26 = vector.broadcast %cst_13 : f32 to vector<8x8xf32>
    %27 = arith.mulf %26, %23 : vector<8x8xf32>
    %28 = arith.select %25, %23, %27 : vector<8x8xi1>, vector<8x8xf32>
    %29 = arith.addf %28, %18 : vector<8x8xf32>
    %cst_14 = arith.constant dense<0xFF800000> : vector<8xf32>
    %30 = vector.multi_reduction <maximumf>, %29, %cst_14 [1] : vector<8x8xf32> to vector<8xf32>
    %31 = vector.shape_cast %30 : vector<8xf32> to vector<8x1xf32>
    %32 = vector.broadcast %31 : vector<8x1xf32> to vector<8x8xf32>
    %33 = arith.subf %29, %32 : vector<8x8xf32>
    %34 = math.exp %33 : vector<8x8xf32>
    %cst_15 = arith.constant dense<0.000000e+00> : vector<8xf32>
    %35 = vector.multi_reduction <add>, %34, %cst_15 [1] : vector<8x8xf32> to vector<8xf32>
    %36 = vector.shape_cast %35 : vector<8xf32> to vector<8x1xf32>
    %37 = tpu.reciprocal %36 {approx = true} : vector<8x1xf32> -> vector<8x1xf32>
    %38 = vector.broadcast %37 : vector<8x1xf32> to vector<8x8xf32>
    %39 = arith.mulf %34, %38 : vector<8x8xf32>
    %40 = arith.truncf %39 : vector<8x8xf32> to vector<8x8xbf16>
    %41 = vector.extract_strided_slice %5 {offsets = [0, 0], sizes = [8, 32], strides = [1, 1]} : vector<8x128xbf16> to vector<8x32xbf16>
    %cst_16 = arith.constant dense<0.000000e+00> : vector<8x32xf32>
    %42 = tpu.matmul %40, %41, %cst_16 {dimension_numbers = #tpu.dot_dimension_numbers<[1], [0], [0], [1], [0, 0, 1, 1], [], []>} : vector<8x8xbf16>, vector<8x32xbf16>, vector<8x32xf32> -> vector<8x32xf32>
    %43 = vector.extract_strided_slice %9 {offsets = [0, 1], sizes = [8, 1], strides = [1, 1]} : vector<8x4xf32> to vector<8x1xf32>
    %44 = vector.extract_strided_slice %7 {offsets = [1, 0], sizes = [1, 8], strides = [1, 1]} : vector<4x8xf32> to vector<1x8xf32>
    %45 = vector.broadcast %43 : vector<8x1xf32> to vector<8x8xf32>
    %46 = vector.broadcast %44 : vector<1x8xf32> to vector<8x8xf32>
    %47 = arith.addf %45, %46 : vector<8x8xf32>
    %cst_17 = arith.constant 0.000000e+00 : f32
    %48 = vector.broadcast %cst_17 : f32 to vector<8x8xf32>
    %49 = arith.cmpf ogt, %47, %48 : vector<8x8xf32>
    %cst_18 = arith.constant 2.000000e-01 : f32
    %50 = vector.broadcast %cst_18 : f32 to vector<8x8xf32>
    %51 = arith.mulf %50, %47 : vector<8x8xf32>
    %52 = arith.select %49, %47, %51 : vector<8x8xi1>, vector<8x8xf32>
    %53 = arith.addf %52, %18 : vector<8x8xf32>
    %cst_19 = arith.constant dense<0xFF800000> : vector<8xf32>
    %54 = vector.multi_reduction <maximumf>, %53, %cst_19 [1] : vector<8x8xf32> to vector<8xf32>
    %55 = vector.shape_cast %54 : vector<8xf32> to vector<8x1xf32>
    %56 = vector.broadcast %55 : vector<8x1xf32> to vector<8x8xf32>
    %57 = arith.subf %53, %56 : vector<8x8xf32>
    %58 = math.exp %57 : vector<8x8xf32>
    %cst_20 = arith.constant dense<0.000000e+00> : vector<8xf32>
    %59 = vector.multi_reduction <add>, %58, %cst_20 [1] : vector<8x8xf32> to vector<8xf32>
    %60 = vector.shape_cast %59 : vector<8xf32> to vector<8x1xf32>
    %61 = tpu.reciprocal %60 {approx = true} : vector<8x1xf32> -> vector<8x1xf32>
    %62 = vector.broadcast %61 : vector<8x1xf32> to vector<8x8xf32>
    %63 = arith.mulf %58, %62 : vector<8x8xf32>
    %64 = arith.truncf %63 : vector<8x8xf32> to vector<8x8xbf16>
    %65 = vector.extract_strided_slice %5 {offsets = [0, 32], sizes = [8, 32], strides = [1, 1]} : vector<8x128xbf16> to vector<8x32xbf16>
    %cst_21 = arith.constant dense<0.000000e+00> : vector<8x32xf32>
    %66 = tpu.matmul %64, %65, %cst_21 {dimension_numbers = #tpu.dot_dimension_numbers<[1], [0], [0], [1], [0, 0, 1, 1], [], []>} : vector<8x8xbf16>, vector<8x32xbf16>, vector<8x32xf32> -> vector<8x32xf32>
    %67 = arith.addf %42, %66 : vector<8x32xf32>
    %68 = vector.extract_strided_slice %9 {offsets = [0, 2], sizes = [8, 1], strides = [1, 1]} : vector<8x4xf32> to vector<8x1xf32>
    %69 = vector.extract_strided_slice %7 {offsets = [2, 0], sizes = [1, 8], strides = [1, 1]} : vector<4x8xf32> to vector<1x8xf32>
    %70 = vector.broadcast %68 : vector<8x1xf32> to vector<8x8xf32>
    %71 = vector.broadcast %69 : vector<1x8xf32> to vector<8x8xf32>
    %72 = arith.addf %70, %71 : vector<8x8xf32>
    %cst_22 = arith.constant 0.000000e+00 : f32
    %73 = vector.broadcast %cst_22 : f32 to vector<8x8xf32>
    %74 = arith.cmpf ogt, %72, %73 : vector<8x8xf32>
    %cst_23 = arith.constant 2.000000e-01 : f32
    %75 = vector.broadcast %cst_23 : f32 to vector<8x8xf32>
    %76 = arith.mulf %75, %72 : vector<8x8xf32>
    %77 = arith.select %74, %72, %76 : vector<8x8xi1>, vector<8x8xf32>
    %78 = arith.addf %77, %18 : vector<8x8xf32>
    %cst_24 = arith.constant dense<0xFF800000> : vector<8xf32>
    %79 = vector.multi_reduction <maximumf>, %78, %cst_24 [1] : vector<8x8xf32> to vector<8xf32>
    %80 = vector.shape_cast %79 : vector<8xf32> to vector<8x1xf32>
    %81 = vector.broadcast %80 : vector<8x1xf32> to vector<8x8xf32>
    %82 = arith.subf %78, %81 : vector<8x8xf32>
    %83 = math.exp %82 : vector<8x8xf32>
    %cst_25 = arith.constant dense<0.000000e+00> : vector<8xf32>
    %84 = vector.multi_reduction <add>, %83, %cst_25 [1] : vector<8x8xf32> to vector<8xf32>
    %85 = vector.shape_cast %84 : vector<8xf32> to vector<8x1xf32>
    %86 = tpu.reciprocal %85 {approx = true} : vector<8x1xf32> -> vector<8x1xf32>
    %87 = vector.broadcast %86 : vector<8x1xf32> to vector<8x8xf32>
    %88 = arith.mulf %83, %87 : vector<8x8xf32>
    %89 = arith.truncf %88 : vector<8x8xf32> to vector<8x8xbf16>
    %90 = vector.extract_strided_slice %5 {offsets = [0, 64], sizes = [8, 32], strides = [1, 1]} : vector<8x128xbf16> to vector<8x32xbf16>
    %cst_26 = arith.constant dense<0.000000e+00> : vector<8x32xf32>
    %91 = tpu.matmul %89, %90, %cst_26 {dimension_numbers = #tpu.dot_dimension_numbers<[1], [0], [0], [1], [0, 0, 1, 1], [], []>} : vector<8x8xbf16>, vector<8x32xbf16>, vector<8x32xf32> -> vector<8x32xf32>
    %92 = arith.addf %67, %91 : vector<8x32xf32>
    %93 = vector.extract_strided_slice %9 {offsets = [0, 3], sizes = [8, 1], strides = [1, 1]} : vector<8x4xf32> to vector<8x1xf32>
    %94 = vector.extract_strided_slice %7 {offsets = [3, 0], sizes = [1, 8], strides = [1, 1]} : vector<4x8xf32> to vector<1x8xf32>
    %95 = vector.broadcast %93 : vector<8x1xf32> to vector<8x8xf32>
    %96 = vector.broadcast %94 : vector<1x8xf32> to vector<8x8xf32>
    %97 = arith.addf %95, %96 : vector<8x8xf32>
    %cst_27 = arith.constant 0.000000e+00 : f32
    %98 = vector.broadcast %cst_27 : f32 to vector<8x8xf32>
    %99 = arith.cmpf ogt, %97, %98 : vector<8x8xf32>
    %cst_28 = arith.constant 2.000000e-01 : f32
    %100 = vector.broadcast %cst_28 : f32 to vector<8x8xf32>
    %101 = arith.mulf %100, %97 : vector<8x8xf32>
    %102 = arith.select %99, %97, %101 : vector<8x8xi1>, vector<8x8xf32>
    %103 = arith.addf %102, %18 : vector<8x8xf32>
    %cst_29 = arith.constant dense<0xFF800000> : vector<8xf32>
    %104 = vector.multi_reduction <maximumf>, %103, %cst_29 [1] : vector<8x8xf32> to vector<8xf32>
    %105 = vector.shape_cast %104 : vector<8xf32> to vector<8x1xf32>
    %106 = vector.broadcast %105 : vector<8x1xf32> to vector<8x8xf32>
    %107 = arith.subf %103, %106 : vector<8x8xf32>
    %108 = math.exp %107 : vector<8x8xf32>
    %cst_30 = arith.constant dense<0.000000e+00> : vector<8xf32>
    %109 = vector.multi_reduction <add>, %108, %cst_30 [1] : vector<8x8xf32> to vector<8xf32>
    %110 = vector.shape_cast %109 : vector<8xf32> to vector<8x1xf32>
    %111 = tpu.reciprocal %110 {approx = true} : vector<8x1xf32> -> vector<8x1xf32>
    %112 = vector.broadcast %111 : vector<8x1xf32> to vector<8x8xf32>
    %113 = arith.mulf %108, %112 : vector<8x8xf32>
    %114 = arith.truncf %113 : vector<8x8xf32> to vector<8x8xbf16>
    %115 = vector.extract_strided_slice %5 {offsets = [0, 96], sizes = [8, 32], strides = [1, 1]} : vector<8x128xbf16> to vector<8x32xbf16>
    %cst_31 = arith.constant dense<0.000000e+00> : vector<8x32xf32>
    %116 = tpu.matmul %114, %115, %cst_31 {dimension_numbers = #tpu.dot_dimension_numbers<[1], [0], [0], [1], [0, 0, 1, 1], [], []>} : vector<8x8xbf16>, vector<8x32xbf16>, vector<8x32xf32> -> vector<8x32xf32>
    %117 = arith.addf %92, %116 : vector<8x32xf32>
    %cst_32 = arith.constant 2.500000e-01 : f32
    %118 = vector.broadcast %cst_32 : f32 to vector<8x32xf32>
    %119 = arith.mulf %117, %118 : vector<8x32xf32>
    %c0_33 = arith.constant 0 : index
    %c0_34 = arith.constant 0 : index
    %120 = vector.load %arg5[%c0_33, %c0_34] : memref<1x32xf32, #tpu.memory_space<vmem>>, vector<1x32xf32>
    %121 = vector.broadcast %120 : vector<1x32xf32> to vector<8x32xf32>
    %122 = arith.addf %119, %121 : vector<8x32xf32>
    %123 = arith.addf %122, %1 : vector<8x32xf32>
    %cst_35 = arith.constant dense<0.000000e+00> : vector<8xf32>
    %124 = vector.multi_reduction <add>, %123, %cst_35 [1] : vector<8x32xf32> to vector<8xf32>
    %125 = vector.shape_cast %124 : vector<8xf32> to vector<8x1xf32>
    %cst_36 = arith.constant 3.200000e+01 : f32
    %126 = vector.broadcast %cst_36 : f32 to vector<8x1xf32>
    %127 = arith.divf %125, %126 : vector<8x1xf32>
    %128 = vector.broadcast %127 : vector<8x1xf32> to vector<8x32xf32>
    %129 = arith.subf %123, %128 : vector<8x32xf32>
    %130 = arith.mulf %129, %129 : vector<8x32xf32>
    %cst_37 = arith.constant dense<0.000000e+00> : vector<8xf32>
    %131 = vector.multi_reduction <add>, %130, %cst_37 [1] : vector<8x32xf32> to vector<8xf32>
    %132 = vector.shape_cast %131 : vector<8xf32> to vector<8x1xf32>
    %cst_38 = arith.constant 3.200000e+01 : f32
    %133 = vector.broadcast %cst_38 : f32 to vector<8x1xf32>
    %134 = arith.divf %132, %133 : vector<8x1xf32>
    %135 = vector.broadcast %127 : vector<8x1xf32> to vector<8x32xf32>
    %136 = arith.subf %123, %135 : vector<8x32xf32>
    %cst_39 = arith.constant 9.99999974E-6 : f32
    %137 = vector.broadcast %cst_39 : f32 to vector<8x1xf32>
    %138 = arith.addf %134, %137 : vector<8x1xf32>
    %139 = math.rsqrt %138 : vector<8x1xf32>
    %140 = vector.broadcast %139 : vector<8x1xf32> to vector<8x32xf32>
    %141 = arith.mulf %136, %140 : vector<8x32xf32>
    %c0_40 = arith.constant 0 : index
    %c0_41 = arith.constant 0 : index
    %142 = vector.load %arg6[%c0_40, %c0_41] : memref<1x32xf32, #tpu.memory_space<vmem>>, vector<1x32xf32>
    %143 = vector.broadcast %142 : vector<1x32xf32> to vector<8x32xf32>
    %144 = arith.mulf %141, %143 : vector<8x32xf32>
    %c0_42 = arith.constant 0 : index
    %c0_43 = arith.constant 0 : index
    %145 = vector.load %arg7[%c0_42, %c0_43] : memref<1x32xf32, #tpu.memory_space<vmem>>, vector<1x32xf32>
    %146 = vector.broadcast %145 : vector<1x32xf32> to vector<8x32xf32>
    %147 = arith.addf %144, %146 : vector<8x32xf32>
    %c0_44 = arith.constant 0 : index
    %c0_45 = arith.constant 0 : index
    %c0_46 = arith.constant 0 : index
    %148 = vector.load %arg8[%c0_44, %c0_45, %c0_46] : memref<1x8x32xf32, #tpu.memory_space<vmem>>, vector<1x8x32xf32>
    %149 = vector.shape_cast %148 : vector<1x8x32xf32> to vector<8x32xf32>
    %150 = vector.shape_cast %147 : vector<8x32xf32> to vector<1x8x32xf32>
    tpu.vector_store %arg8[%c0_44, %c0_45, %c0_46], %150 {strides = array<i32>} : memref<1x8x32xf32, #tpu.memory_space<vmem>>, vector<1x8x32xf32>,
    return
  }
  func.func @transform_0(%arg0: i32) -> (i32, i32, i32) {
    %c0_i32 = arith.constant 0 : i32
    %c0_i32_0 = arith.constant 0 : i32
    %c0_i32_1 = arith.constant 0 : i32
    return %arg0, %c0_i32, %c0_i32_0 : i32, i32, i32
  }
  func.func @transform_1(%arg0: i32) -> (i32, i32) {
    %c0_i32 = arith.constant 0 : i32
    %c0_i32_0 = arith.constant 0 : i32
    %c0_i32_1 = arith.constant 0 : i32
    return %c0_i32, %c0_i32_0 : i32, i32
  }
  func.func @transform_2(%arg0: i32) -> (i32, i32) {
    %c0_i32 = arith.constant 0 : i32
    %c0_i32_0 = arith.constant 0 : i32
    %c0_i32_1 = arith.constant 0 : i32
    return %c0_i32, %c0_i32_0 : i32, i32
  }
  func.func @transform_3(%arg0: i32) -> (i32, i32) {
    %c0_i32 = arith.constant 0 : i32
    %c0_i32_0 = arith.constant 0 : i32
    %c0_i32_1 = arith.constant 0 : i32
    return %c0_i32, %c0_i32_0 : i32, i32
  }
  func.func @transform_4(%arg0: i32) -> (i32, i32) {
    %c0_i32 = arith.constant 0 : i32
    %c0_i32_0 = arith.constant 0 : i32
    %c0_i32_1 = arith.constant 0 : i32
    return %c0_i32, %c0_i32_0 : i32, i32
  }
  func.func @transform_5(%arg0: i32) -> (i32, i32) {
    %c0_i32 = arith.constant 0 : i32
    %c0_i32_0 = arith.constant 0 : i32
    %c0_i32_1 = arith.constant 0 : i32
    return %c0_i32, %c0_i32_0 : i32, i32
  }
  func.func @transform_6(%arg0: i32) -> (i32, i32) {
    %c0_i32 = arith.constant 0 : i32
    %c0_i32_0 = arith.constant 0 : i32
    %c0_i32_1 = arith.constant 0 : i32
    return %c0_i32, %c0_i32_0 : i32, i32
  }
  func.func @transform_7(%arg0: i32) -> (i32, i32, i32) {
    %c0_i32 = arith.constant 0 : i32
    %c0_i32_0 = arith.constant 0 : i32
    %c0_i32_1 = arith.constant 0 : i32
    return %arg0, %c0_i32, %c0_i32_0 : i32, i32, i32
  }
}

module attributes {stable_mosaic.version = 11 : i64} {
  func.func @_gat_kernel(%arg0: i32, %arg1: memref<1x4x32xf32, #tpu.memory_space<vmem>>, %arg2: memref<32x32xbf16, #tpu.memory_space<vmem>>, %arg3: memref<4x32xbf16, #tpu.memory_space<vmem>>, %arg4: memref<32x4xbf16, #tpu.memory_space<vmem>>, %arg5: memref<1x32xf32, #tpu.memory_space<vmem>>, %arg6: memref<1x32xf32, #tpu.memory_space<vmem>>, %arg7: memref<1x32xf32, #tpu.memory_space<vmem>>, %arg8: memref<1x4x32xf32, #tpu.memory_space<vmem>>) attributes {dimension_semantics = [#tpu.dimension_semantics<parallel>], iteration_bounds = array<i64: 2>, scalar_prefetch = 0 : i64, scratch_operands = 0 : i64, tpu.core_type = #tpu.core_type<tc>, window_params = [{transform_indices = @transform_0, window_bounds = array<i64: 1, 4, 32>}, {pipeline_mode = #tpu.pipeline_mode<synchronous>, transform_indices = @transform_1, window_bounds = array<i64: 32, 32>}, {pipeline_mode = #tpu.pipeline_mode<synchronous>, transform_indices = @transform_2, window_bounds = array<i64: 4, 32>}, {pipeline_mode = #tpu.pipeline_mode<synchronous>, transform_indices = @transform_3, window_bounds = array<i64: 32, 4>}, {pipeline_mode = #tpu.pipeline_mode<synchronous>, transform_indices = @transform_4, window_bounds = array<i64: 1, 32>}, {pipeline_mode = #tpu.pipeline_mode<synchronous>, transform_indices = @transform_5, window_bounds = array<i64: 1, 32>}, {pipeline_mode = #tpu.pipeline_mode<synchronous>, transform_indices = @transform_6, window_bounds = array<i64: 1, 32>}, {transform_indices = @transform_7, window_bounds = array<i64: 1, 4, 32>}]} {
    %c0 = arith.constant 0 : index
    %c0_0 = arith.constant 0 : index
    %c0_1 = arith.constant 0 : index
    %0 = vector.load %arg1[%c0, %c0_0, %c0_1] : memref<1x4x32xf32, #tpu.memory_space<vmem>>, vector<1x4x32xf32>
    %1 = vector.shape_cast %0 : vector<1x4x32xf32> to vector<4x32xf32>
    %2 = arith.truncf %1 : vector<4x32xf32> to vector<4x32xbf16>
    %c0_2 = arith.constant 0 : index
    %c0_3 = arith.constant 0 : index
    %3 = vector.load %arg2[%c0_2, %c0_3] : memref<32x32xbf16, #tpu.memory_space<vmem>>, vector<32x32xbf16>
    %cst = arith.constant dense<0.000000e+00> : vector<4x32xf32>
    %4 = tpu.matmul %2, %3, %cst {dimension_numbers = #tpu.dot_dimension_numbers<[1], [0], [0], [1], [0, 0, 1, 1], [], []>} : vector<4x32xbf16>, vector<32x32xbf16>, vector<4x32xf32> -> vector<4x32xf32>
    %5 = arith.truncf %4 : vector<4x32xf32> to vector<4x32xbf16>
    %c0_4 = arith.constant 0 : index
    %c0_5 = arith.constant 0 : index
    %6 = vector.load %arg3[%c0_4, %c0_5] : memref<4x32xbf16, #tpu.memory_space<vmem>>, vector<4x32xbf16>
    %cst_6 = arith.constant dense<0.000000e+00> : vector<4x4xf32>
    %7 = tpu.matmul %6, %5, %cst_6 {dimension_numbers = #tpu.dot_dimension_numbers<[1], [1], [0], [0], [0, 0, 1, 0], [], []>} : vector<4x32xbf16>, vector<4x32xbf16>, vector<4x4xf32> -> vector<4x4xf32>
    %c0_7 = arith.constant 0 : index
    %c0_8 = arith.constant 0 : index
    %8 = vector.load %arg4[%c0_7, %c0_8] : memref<32x4xbf16, #tpu.memory_space<vmem>>, vector<32x4xbf16>
    %cst_9 = arith.constant dense<0.000000e+00> : vector<4x4xf32>
    %9 = tpu.matmul %5, %8, %cst_9 {dimension_numbers = #tpu.dot_dimension_numbers<[1], [0], [0], [1], [0, 0, 1, 1], [], []>} : vector<4x32xbf16>, vector<32x4xbf16>, vector<4x4xf32> -> vector<4x4xf32>
    %10 = vector.extract_strided_slice %9 {offsets = [0, 0], sizes = [4, 1], strides = [1, 1]} : vector<4x4xf32> to vector<4x1xf32>
    %11 = vector.extract_strided_slice %7 {offsets = [0, 0], sizes = [1, 4], strides = [1, 1]} : vector<4x4xf32> to vector<1x4xf32>
    %12 = vector.broadcast %10 : vector<4x1xf32> to vector<4x4xf32>
    %13 = vector.broadcast %11 : vector<1x4xf32> to vector<4x4xf32>
    %14 = arith.addf %12, %13 : vector<4x4xf32>
    %cst_10 = arith.constant 0.000000e+00 : f32
    %15 = vector.broadcast %cst_10 : f32 to vector<4x4xf32>
    %16 = arith.cmpf ogt, %14, %15 : vector<4x4xf32>
    %cst_11 = arith.constant 2.000000e-01 : f32
    %17 = vector.broadcast %cst_11 : f32 to vector<4x4xf32>
    %18 = arith.mulf %17, %14 : vector<4x4xf32>
    %19 = arith.select %16, %14, %18 : vector<4x4xi1>, vector<4x4xf32>
    %cst_12 = arith.constant dense<0xFF800000> : vector<4xf32>
    %20 = vector.multi_reduction <maximumf>, %19, %cst_12 [1] : vector<4x4xf32> to vector<4xf32>
    %21 = vector.shape_cast %20 : vector<4xf32> to vector<4x1xf32>
    %22 = vector.broadcast %21 : vector<4x1xf32> to vector<4x4xf32>
    %23 = arith.subf %19, %22 : vector<4x4xf32>
    %24 = math.exp %23 : vector<4x4xf32>
    %cst_13 = arith.constant dense<0.000000e+00> : vector<4xf32>
    %25 = vector.multi_reduction <add>, %24, %cst_13 [1] : vector<4x4xf32> to vector<4xf32>
    %26 = vector.shape_cast %25 : vector<4xf32> to vector<4x1xf32>
    %27 = tpu.reciprocal %26 {approx = true} : vector<4x1xf32> -> vector<4x1xf32>
    %28 = vector.broadcast %27 : vector<4x1xf32> to vector<4x4xf32>
    %29 = arith.mulf %24, %28 : vector<4x4xf32>
    %30 = arith.truncf %29 : vector<4x4xf32> to vector<4x4xbf16>
    %31 = vector.extract_strided_slice %5 {offsets = [0, 0], sizes = [4, 8], strides = [1, 1]} : vector<4x32xbf16> to vector<4x8xbf16>
    %cst_14 = arith.constant dense<0.000000e+00> : vector<4x8xf32>
    %32 = tpu.matmul %30, %31, %cst_14 {dimension_numbers = #tpu.dot_dimension_numbers<[1], [0], [0], [1], [0, 0, 1, 1], [], []>} : vector<4x4xbf16>, vector<4x8xbf16>, vector<4x8xf32> -> vector<4x8xf32>
    %33 = vector.extract_strided_slice %9 {offsets = [0, 1], sizes = [4, 1], strides = [1, 1]} : vector<4x4xf32> to vector<4x1xf32>
    %34 = vector.extract_strided_slice %7 {offsets = [1, 0], sizes = [1, 4], strides = [1, 1]} : vector<4x4xf32> to vector<1x4xf32>
    %35 = vector.broadcast %33 : vector<4x1xf32> to vector<4x4xf32>
    %36 = vector.broadcast %34 : vector<1x4xf32> to vector<4x4xf32>
    %37 = arith.addf %35, %36 : vector<4x4xf32>
    %cst_15 = arith.constant 0.000000e+00 : f32
    %38 = vector.broadcast %cst_15 : f32 to vector<4x4xf32>
    %39 = arith.cmpf ogt, %37, %38 : vector<4x4xf32>
    %cst_16 = arith.constant 2.000000e-01 : f32
    %40 = vector.broadcast %cst_16 : f32 to vector<4x4xf32>
    %41 = arith.mulf %40, %37 : vector<4x4xf32>
    %42 = arith.select %39, %37, %41 : vector<4x4xi1>, vector<4x4xf32>
    %cst_17 = arith.constant dense<0xFF800000> : vector<4xf32>
    %43 = vector.multi_reduction <maximumf>, %42, %cst_17 [1] : vector<4x4xf32> to vector<4xf32>
    %44 = vector.shape_cast %43 : vector<4xf32> to vector<4x1xf32>
    %45 = vector.broadcast %44 : vector<4x1xf32> to vector<4x4xf32>
    %46 = arith.subf %42, %45 : vector<4x4xf32>
    %47 = math.exp %46 : vector<4x4xf32>
    %cst_18 = arith.constant dense<0.000000e+00> : vector<4xf32>
    %48 = vector.multi_reduction <add>, %47, %cst_18 [1] : vector<4x4xf32> to vector<4xf32>
    %49 = vector.shape_cast %48 : vector<4xf32> to vector<4x1xf32>
    %50 = tpu.reciprocal %49 {approx = true} : vector<4x1xf32> -> vector<4x1xf32>
    %51 = vector.broadcast %50 : vector<4x1xf32> to vector<4x4xf32>
    %52 = arith.mulf %47, %51 : vector<4x4xf32>
    %53 = arith.truncf %52 : vector<4x4xf32> to vector<4x4xbf16>
    %54 = vector.extract_strided_slice %5 {offsets = [0, 8], sizes = [4, 8], strides = [1, 1]} : vector<4x32xbf16> to vector<4x8xbf16>
    %cst_19 = arith.constant dense<0.000000e+00> : vector<4x8xf32>
    %55 = tpu.matmul %53, %54, %cst_19 {dimension_numbers = #tpu.dot_dimension_numbers<[1], [0], [0], [1], [0, 0, 1, 1], [], []>} : vector<4x4xbf16>, vector<4x8xbf16>, vector<4x8xf32> -> vector<4x8xf32>
    %56 = vector.extract_strided_slice %9 {offsets = [0, 2], sizes = [4, 1], strides = [1, 1]} : vector<4x4xf32> to vector<4x1xf32>
    %57 = vector.extract_strided_slice %7 {offsets = [2, 0], sizes = [1, 4], strides = [1, 1]} : vector<4x4xf32> to vector<1x4xf32>
    %58 = vector.broadcast %56 : vector<4x1xf32> to vector<4x4xf32>
    %59 = vector.broadcast %57 : vector<1x4xf32> to vector<4x4xf32>
    %60 = arith.addf %58, %59 : vector<4x4xf32>
    %cst_20 = arith.constant 0.000000e+00 : f32
    %61 = vector.broadcast %cst_20 : f32 to vector<4x4xf32>
    %62 = arith.cmpf ogt, %60, %61 : vector<4x4xf32>
    %cst_21 = arith.constant 2.000000e-01 : f32
    %63 = vector.broadcast %cst_21 : f32 to vector<4x4xf32>
    %64 = arith.mulf %63, %60 : vector<4x4xf32>
    %65 = arith.select %62, %60, %64 : vector<4x4xi1>, vector<4x4xf32>
    %cst_22 = arith.constant dense<0xFF800000> : vector<4xf32>
    %66 = vector.multi_reduction <maximumf>, %65, %cst_22 [1] : vector<4x4xf32> to vector<4xf32>
    %67 = vector.shape_cast %66 : vector<4xf32> to vector<4x1xf32>
    %68 = vector.broadcast %67 : vector<4x1xf32> to vector<4x4xf32>
    %69 = arith.subf %65, %68 : vector<4x4xf32>
    %70 = math.exp %69 : vector<4x4xf32>
    %cst_23 = arith.constant dense<0.000000e+00> : vector<4xf32>
    %71 = vector.multi_reduction <add>, %70, %cst_23 [1] : vector<4x4xf32> to vector<4xf32>
    %72 = vector.shape_cast %71 : vector<4xf32> to vector<4x1xf32>
    %73 = tpu.reciprocal %72 {approx = true} : vector<4x1xf32> -> vector<4x1xf32>
    %74 = vector.broadcast %73 : vector<4x1xf32> to vector<4x4xf32>
    %75 = arith.mulf %70, %74 : vector<4x4xf32>
    %76 = arith.truncf %75 : vector<4x4xf32> to vector<4x4xbf16>
    %77 = vector.extract_strided_slice %5 {offsets = [0, 16], sizes = [4, 8], strides = [1, 1]} : vector<4x32xbf16> to vector<4x8xbf16>
    %cst_24 = arith.constant dense<0.000000e+00> : vector<4x8xf32>
    %78 = tpu.matmul %76, %77, %cst_24 {dimension_numbers = #tpu.dot_dimension_numbers<[1], [0], [0], [1], [0, 0, 1, 1], [], []>} : vector<4x4xbf16>, vector<4x8xbf16>, vector<4x8xf32> -> vector<4x8xf32>
    %79 = vector.extract_strided_slice %9 {offsets = [0, 3], sizes = [4, 1], strides = [1, 1]} : vector<4x4xf32> to vector<4x1xf32>
    %80 = vector.extract_strided_slice %7 {offsets = [3, 0], sizes = [1, 4], strides = [1, 1]} : vector<4x4xf32> to vector<1x4xf32>
    %81 = vector.broadcast %79 : vector<4x1xf32> to vector<4x4xf32>
    %82 = vector.broadcast %80 : vector<1x4xf32> to vector<4x4xf32>
    %83 = arith.addf %81, %82 : vector<4x4xf32>
    %cst_25 = arith.constant 0.000000e+00 : f32
    %84 = vector.broadcast %cst_25 : f32 to vector<4x4xf32>
    %85 = arith.cmpf ogt, %83, %84 : vector<4x4xf32>
    %cst_26 = arith.constant 2.000000e-01 : f32
    %86 = vector.broadcast %cst_26 : f32 to vector<4x4xf32>
    %87 = arith.mulf %86, %83 : vector<4x4xf32>
    %88 = arith.select %85, %83, %87 : vector<4x4xi1>, vector<4x4xf32>
    %cst_27 = arith.constant dense<0xFF800000> : vector<4xf32>
    %89 = vector.multi_reduction <maximumf>, %88, %cst_27 [1] : vector<4x4xf32> to vector<4xf32>
    %90 = vector.shape_cast %89 : vector<4xf32> to vector<4x1xf32>
    %91 = vector.broadcast %90 : vector<4x1xf32> to vector<4x4xf32>
    %92 = arith.subf %88, %91 : vector<4x4xf32>
    %93 = math.exp %92 : vector<4x4xf32>
    %cst_28 = arith.constant dense<0.000000e+00> : vector<4xf32>
    %94 = vector.multi_reduction <add>, %93, %cst_28 [1] : vector<4x4xf32> to vector<4xf32>
    %95 = vector.shape_cast %94 : vector<4xf32> to vector<4x1xf32>
    %96 = tpu.reciprocal %95 {approx = true} : vector<4x1xf32> -> vector<4x1xf32>
    %97 = vector.broadcast %96 : vector<4x1xf32> to vector<4x4xf32>
    %98 = arith.mulf %93, %97 : vector<4x4xf32>
    %99 = arith.truncf %98 : vector<4x4xf32> to vector<4x4xbf16>
    %100 = vector.extract_strided_slice %5 {offsets = [0, 24], sizes = [4, 8], strides = [1, 1]} : vector<4x32xbf16> to vector<4x8xbf16>
    %cst_29 = arith.constant dense<0.000000e+00> : vector<4x8xf32>
    %101 = tpu.matmul %99, %100, %cst_29 {dimension_numbers = #tpu.dot_dimension_numbers<[1], [0], [0], [1], [0, 0, 1, 1], [], []>} : vector<4x4xbf16>, vector<4x8xbf16>, vector<4x8xf32> -> vector<4x8xf32>
    %102 = tpu.concatenate %32, %55, %78, %101 in 1 : vector<4x8xf32>, vector<4x8xf32>, vector<4x8xf32>, vector<4x8xf32> -> vector<4x32xf32>
    %c0_30 = arith.constant 0 : index
    %c0_31 = arith.constant 0 : index
    %103 = vector.load %arg5[%c0_30, %c0_31] : memref<1x32xf32, #tpu.memory_space<vmem>>, vector<1x32xf32>
    %104 = vector.broadcast %103 : vector<1x32xf32> to vector<4x32xf32>
    %105 = arith.addf %102, %104 : vector<4x32xf32>
    %106 = arith.addf %105, %1 : vector<4x32xf32>
    %cst_32 = arith.constant dense<0.000000e+00> : vector<4xf32>
    %107 = vector.multi_reduction <add>, %106, %cst_32 [1] : vector<4x32xf32> to vector<4xf32>
    %108 = vector.shape_cast %107 : vector<4xf32> to vector<4x1xf32>
    %cst_33 = arith.constant 3.200000e+01 : f32
    %109 = vector.broadcast %cst_33 : f32 to vector<4x1xf32>
    %110 = arith.divf %108, %109 : vector<4x1xf32>
    %111 = vector.broadcast %110 : vector<4x1xf32> to vector<4x32xf32>
    %112 = arith.subf %106, %111 : vector<4x32xf32>
    %113 = arith.mulf %112, %112 : vector<4x32xf32>
    %cst_34 = arith.constant dense<0.000000e+00> : vector<4xf32>
    %114 = vector.multi_reduction <add>, %113, %cst_34 [1] : vector<4x32xf32> to vector<4xf32>
    %115 = vector.shape_cast %114 : vector<4xf32> to vector<4x1xf32>
    %cst_35 = arith.constant 3.200000e+01 : f32
    %116 = vector.broadcast %cst_35 : f32 to vector<4x1xf32>
    %117 = arith.divf %115, %116 : vector<4x1xf32>
    %118 = vector.broadcast %110 : vector<4x1xf32> to vector<4x32xf32>
    %119 = arith.subf %106, %118 : vector<4x32xf32>
    %cst_36 = arith.constant 9.99999974E-6 : f32
    %120 = vector.broadcast %cst_36 : f32 to vector<4x1xf32>
    %121 = arith.addf %117, %120 : vector<4x1xf32>
    %122 = math.rsqrt %121 : vector<4x1xf32>
    %123 = vector.broadcast %122 : vector<4x1xf32> to vector<4x32xf32>
    %124 = arith.mulf %119, %123 : vector<4x32xf32>
    %c0_37 = arith.constant 0 : index
    %c0_38 = arith.constant 0 : index
    %125 = vector.load %arg6[%c0_37, %c0_38] : memref<1x32xf32, #tpu.memory_space<vmem>>, vector<1x32xf32>
    %126 = vector.broadcast %125 : vector<1x32xf32> to vector<4x32xf32>
    %127 = arith.mulf %124, %126 : vector<4x32xf32>
    %c0_39 = arith.constant 0 : index
    %c0_40 = arith.constant 0 : index
    %128 = vector.load %arg7[%c0_39, %c0_40] : memref<1x32xf32, #tpu.memory_space<vmem>>, vector<1x32xf32>
    %129 = vector.broadcast %128 : vector<1x32xf32> to vector<4x32xf32>
    %130 = arith.addf %127, %129 : vector<4x32xf32>
    %c0_41 = arith.constant 0 : index
    %c0_42 = arith.constant 0 : index
    %c0_43 = arith.constant 0 : index
    %131 = vector.load %arg8[%c0_41, %c0_42, %c0_43] : memref<1x4x32xf32, #tpu.memory_space<vmem>>, vector<1x4x32xf32>
    %132 = vector.shape_cast %131 : vector<1x4x32xf32> to vector<4x32xf32>
    %133 = vector.shape_cast %130 : vector<4x32xf32> to vector<1x4x32xf32>
    tpu.vector_store %arg8[%c0_41, %c0_42, %c0_43], %133 {strides = array<i32>} : memref<1x4x32xf32, #tpu.memory_space<vmem>>, vector<1x4x32xf32>,
    return
  }
  func.func @transform_0(%arg0: i32) -> (i32, i32, i32) {
    %c0_i32 = arith.constant 0 : i32
    %c0_i32_0 = arith.constant 0 : i32
    %c0_i32_1 = arith.constant 0 : i32
    return %arg0, %c0_i32, %c0_i32_0 : i32, i32, i32
  }
  func.func @transform_1(%arg0: i32) -> (i32, i32) {
    %c0_i32 = arith.constant 0 : i32
    %c0_i32_0 = arith.constant 0 : i32
    %c0_i32_1 = arith.constant 0 : i32
    return %c0_i32, %c0_i32_0 : i32, i32
  }
  func.func @transform_2(%arg0: i32) -> (i32, i32) {
    %c0_i32 = arith.constant 0 : i32
    %c0_i32_0 = arith.constant 0 : i32
    %c0_i32_1 = arith.constant 0 : i32
    return %c0_i32, %c0_i32_0 : i32, i32
  }
  func.func @transform_3(%arg0: i32) -> (i32, i32) {
    %c0_i32 = arith.constant 0 : i32
    %c0_i32_0 = arith.constant 0 : i32
    %c0_i32_1 = arith.constant 0 : i32
    return %c0_i32, %c0_i32_0 : i32, i32
  }
  func.func @transform_4(%arg0: i32) -> (i32, i32) {
    %c0_i32 = arith.constant 0 : i32
    %c0_i32_0 = arith.constant 0 : i32
    %c0_i32_1 = arith.constant 0 : i32
    return %c0_i32, %c0_i32_0 : i32, i32
  }
  func.func @transform_5(%arg0: i32) -> (i32, i32) {
    %c0_i32 = arith.constant 0 : i32
    %c0_i32_0 = arith.constant 0 : i32
    %c0_i32_1 = arith.constant 0 : i32
    return %c0_i32, %c0_i32_0 : i32, i32
  }
  func.func @transform_6(%arg0: i32) -> (i32, i32) {
    %c0_i32 = arith.constant 0 : i32
    %c0_i32_0 = arith.constant 0 : i32
    %c0_i32_1 = arith.constant 0 : i32
    return %c0_i32, %c0_i32_0 : i32, i32
  }
  func.func @transform_7(%arg0: i32) -> (i32, i32, i32) {
    %c0_i32 = arith.constant 0 : i32
    %c0_i32_0 = arith.constant 0 : i32
    %c0_i32_1 = arith.constant 0 : i32
    return %arg0, %c0_i32, %c0_i32_0 : i32, i32, i32
  }
}

module attributes {stable_mosaic.version = 11 : i64} {
  func.func @_ffn_kernel(%arg0: i32, %arg1: memref<8x32xf32, #tpu.memory_space<vmem>>, %arg2: memref<32x64xbf16, #tpu.memory_space<vmem>>, %arg3: memref<1x64xf32, #tpu.memory_space<vmem>>, %arg4: memref<64x32xbf16, #tpu.memory_space<vmem>>, %arg5: memref<1x32xf32, #tpu.memory_space<vmem>>, %arg6: memref<1x32xf32, #tpu.memory_space<vmem>>, %arg7: memref<1x32xf32, #tpu.memory_space<vmem>>, %arg8: memref<8x32xf32, #tpu.memory_space<vmem>>) attributes {dimension_semantics = [#tpu.dimension_semantics<parallel>], iteration_bounds = array<i64: 1>, scalar_prefetch = 0 : i64, scratch_operands = 0 : i64, tpu.core_type = #tpu.core_type<tc>, window_params = [{transform_indices = @transform_0, window_bounds = array<i64: 8, 32>}, {pipeline_mode = #tpu.pipeline_mode<synchronous>, transform_indices = @transform_1, window_bounds = array<i64: 32, 64>}, {pipeline_mode = #tpu.pipeline_mode<synchronous>, transform_indices = @transform_2, window_bounds = array<i64: 1, 64>}, {pipeline_mode = #tpu.pipeline_mode<synchronous>, transform_indices = @transform_3, window_bounds = array<i64: 64, 32>}, {pipeline_mode = #tpu.pipeline_mode<synchronous>, transform_indices = @transform_4, window_bounds = array<i64: 1, 32>}, {pipeline_mode = #tpu.pipeline_mode<synchronous>, transform_indices = @transform_5, window_bounds = array<i64: 1, 32>}, {pipeline_mode = #tpu.pipeline_mode<synchronous>, transform_indices = @transform_6, window_bounds = array<i64: 1, 32>}, {transform_indices = @transform_7, window_bounds = array<i64: 8, 32>}]} {
    %c0 = arith.constant 0 : index
    %c0_0 = arith.constant 0 : index
    %0 = vector.load %arg1[%c0, %c0_0] : memref<8x32xf32, #tpu.memory_space<vmem>>, vector<8x32xf32>
    %1 = arith.truncf %0 : vector<8x32xf32> to vector<8x32xbf16>
    %c0_1 = arith.constant 0 : index
    %c0_2 = arith.constant 0 : index
    %2 = vector.load %arg2[%c0_1, %c0_2] : memref<32x64xbf16, #tpu.memory_space<vmem>>, vector<32x64xbf16>
    %cst = arith.constant dense<0.000000e+00> : vector<8x64xf32>
    %3 = tpu.matmul %1, %2, %cst {dimension_numbers = #tpu.dot_dimension_numbers<[1], [0], [0], [1], [0, 0, 1, 1], [], []>} : vector<8x32xbf16>, vector<32x64xbf16>, vector<8x64xf32> -> vector<8x64xf32>
    %c0_3 = arith.constant 0 : index
    %c0_4 = arith.constant 0 : index
    %4 = vector.load %arg3[%c0_3, %c0_4] : memref<1x64xf32, #tpu.memory_space<vmem>>, vector<1x64xf32>
    %5 = vector.broadcast %4 : vector<1x64xf32> to vector<8x64xf32>
    %6 = arith.addf %3, %5 : vector<8x64xf32>
    %cst_5 = arith.constant 0.000000e+00 : f32
    %7 = vector.broadcast %cst_5 : f32 to vector<8x64xf32>
    %8 = arith.maximumf %6, %7 : vector<8x64xf32>
    %9 = arith.truncf %8 : vector<8x64xf32> to vector<8x64xbf16>
    %c0_6 = arith.constant 0 : index
    %c0_7 = arith.constant 0 : index
    %10 = vector.load %arg4[%c0_6, %c0_7] : memref<64x32xbf16, #tpu.memory_space<vmem>>, vector<64x32xbf16>
    %cst_8 = arith.constant dense<0.000000e+00> : vector<8x32xf32>
    %11 = tpu.matmul %9, %10, %cst_8 {dimension_numbers = #tpu.dot_dimension_numbers<[1], [0], [0], [1], [0, 0, 1, 1], [], []>} : vector<8x64xbf16>, vector<64x32xbf16>, vector<8x32xf32> -> vector<8x32xf32>
    %c0_9 = arith.constant 0 : index
    %c0_10 = arith.constant 0 : index
    %12 = vector.load %arg5[%c0_9, %c0_10] : memref<1x32xf32, #tpu.memory_space<vmem>>, vector<1x32xf32>
    %13 = vector.broadcast %12 : vector<1x32xf32> to vector<8x32xf32>
    %14 = arith.addf %11, %13 : vector<8x32xf32>
    %15 = arith.addf %14, %0 : vector<8x32xf32>
    %cst_11 = arith.constant dense<0.000000e+00> : vector<8xf32>
    %16 = vector.multi_reduction <add>, %15, %cst_11 [1] : vector<8x32xf32> to vector<8xf32>
    %17 = vector.shape_cast %16 : vector<8xf32> to vector<8x1xf32>
    %cst_12 = arith.constant 3.200000e+01 : f32
    %18 = vector.broadcast %cst_12 : f32 to vector<8x1xf32>
    %19 = arith.divf %17, %18 : vector<8x1xf32>
    %20 = vector.broadcast %19 : vector<8x1xf32> to vector<8x32xf32>
    %21 = arith.subf %15, %20 : vector<8x32xf32>
    %22 = arith.mulf %21, %21 : vector<8x32xf32>
    %cst_13 = arith.constant dense<0.000000e+00> : vector<8xf32>
    %23 = vector.multi_reduction <add>, %22, %cst_13 [1] : vector<8x32xf32> to vector<8xf32>
    %24 = vector.shape_cast %23 : vector<8xf32> to vector<8x1xf32>
    %cst_14 = arith.constant 3.200000e+01 : f32
    %25 = vector.broadcast %cst_14 : f32 to vector<8x1xf32>
    %26 = arith.divf %24, %25 : vector<8x1xf32>
    %27 = vector.broadcast %19 : vector<8x1xf32> to vector<8x32xf32>
    %28 = arith.subf %15, %27 : vector<8x32xf32>
    %cst_15 = arith.constant 9.99999974E-6 : f32
    %29 = vector.broadcast %cst_15 : f32 to vector<8x1xf32>
    %30 = arith.addf %26, %29 : vector<8x1xf32>
    %31 = math.rsqrt %30 : vector<8x1xf32>
    %32 = vector.broadcast %31 : vector<8x1xf32> to vector<8x32xf32>
    %33 = arith.mulf %28, %32 : vector<8x32xf32>
    %c0_16 = arith.constant 0 : index
    %c0_17 = arith.constant 0 : index
    %34 = vector.load %arg6[%c0_16, %c0_17] : memref<1x32xf32, #tpu.memory_space<vmem>>, vector<1x32xf32>
    %35 = vector.broadcast %34 : vector<1x32xf32> to vector<8x32xf32>
    %36 = arith.mulf %33, %35 : vector<8x32xf32>
    %c0_18 = arith.constant 0 : index
    %c0_19 = arith.constant 0 : index
    %37 = vector.load %arg7[%c0_18, %c0_19] : memref<1x32xf32, #tpu.memory_space<vmem>>, vector<1x32xf32>
    %38 = vector.broadcast %37 : vector<1x32xf32> to vector<8x32xf32>
    %39 = arith.addf %36, %38 : vector<8x32xf32>
    %c0_20 = arith.constant 0 : index
    %c0_21 = arith.constant 0 : index
    %40 = vector.load %arg8[%c0_20, %c0_21] : memref<8x32xf32, #tpu.memory_space<vmem>>, vector<8x32xf32>
    tpu.vector_store %arg8[%c0_20, %c0_21], %39 {strides = array<i32>} : memref<8x32xf32, #tpu.memory_space<vmem>>, vector<8x32xf32>,
    return
  }
  func.func @transform_0(%arg0: i32) -> (i32, i32) {
    %c0_i32 = arith.constant 0 : i32
    %c0_i32_0 = arith.constant 0 : i32
    return %arg0, %c0_i32 : i32, i32
  }
  func.func @transform_1(%arg0: i32) -> (i32, i32) {
    %c0_i32 = arith.constant 0 : i32
    %c0_i32_0 = arith.constant 0 : i32
    %c0_i32_1 = arith.constant 0 : i32
    return %c0_i32, %c0_i32_0 : i32, i32
  }
  func.func @transform_2(%arg0: i32) -> (i32, i32) {
    %c0_i32 = arith.constant 0 : i32
    %c0_i32_0 = arith.constant 0 : i32
    %c0_i32_1 = arith.constant 0 : i32
    return %c0_i32, %c0_i32_0 : i32, i32
  }
  func.func @transform_3(%arg0: i32) -> (i32, i32) {
    %c0_i32 = arith.constant 0 : i32
    %c0_i32_0 = arith.constant 0 : i32
    %c0_i32_1 = arith.constant 0 : i32
    return %c0_i32, %c0_i32_0 : i32, i32
  }
  func.func @transform_4(%arg0: i32) -> (i32, i32) {
    %c0_i32 = arith.constant 0 : i32
    %c0_i32_0 = arith.constant 0 : i32
    %c0_i32_1 = arith.constant 0 : i32
    return %c0_i32, %c0_i32_0 : i32, i32
  }
  func.func @transform_5(%arg0: i32) -> (i32, i32) {
    %c0_i32 = arith.constant 0 : i32
    %c0_i32_0 = arith.constant 0 : i32
    %c0_i32_1 = arith.constant 0 : i32
    return %c0_i32, %c0_i32_0 : i32, i32
  }
  func.func @transform_6(%arg0: i32) -> (i32, i32) {
    %c0_i32 = arith.constant 0 : i32
    %c0_i32_0 = arith.constant 0 : i32
    %c0_i32_1 = arith.constant 0 : i32
    return %c0_i32, %c0_i32_0 : i32, i32
  }
  func.func @transform_7(%arg0: i32) -> (i32, i32) {
    %c0_i32 = arith.constant 0 : i32
    %c0_i32_0 = arith.constant 0 : i32
    return %arg0, %c0_i32 : i32, i32
  }
}

module attributes {stable_mosaic.version = 11 : i64} {
  func.func @_label_attn_kernel(%arg0: i32, %arg1: memref<2x8x32xf32, #tpu.memory_space<vmem>>, %arg2: memref<2x4x32xf32, #tpu.memory_space<vmem>>, %arg3: memref<2x8x32xf32, #tpu.memory_space<vmem>>) attributes {dimension_semantics = [#tpu.dimension_semantics<parallel>], iteration_bounds = array<i64: 1>, scalar_prefetch = 0 : i64, scratch_operands = 0 : i64, tpu.core_type = #tpu.core_type<tc>, window_params = [{transform_indices = @transform_0, window_bounds = array<i64: 2, 8, 32>}, {transform_indices = @transform_1, window_bounds = array<i64: 2, 4, 32>}, {transform_indices = @transform_2, window_bounds = array<i64: 2, 8, 32>}]} {
    %c0 = arith.constant 0 : index
    %c0_0 = arith.constant 0 : index
    %c0_1 = arith.constant 0 : index
    %0 = vector.load %arg1[%c0, %c0_0, %c0_1] : memref<2x8x32xf32, #tpu.memory_space<vmem>>, vector<2x8x32xf32>
    %1 = arith.truncf %0 : vector<2x8x32xf32> to vector<2x8x32xbf16>
    %c0_2 = arith.constant 0 : index
    %c0_3 = arith.constant 0 : index
    %c0_4 = arith.constant 0 : index
    %2 = vector.load %arg2[%c0_2, %c0_3, %c0_4] : memref<2x4x32xf32, #tpu.memory_space<vmem>>, vector<2x4x32xf32>
    %3 = arith.truncf %2 : vector<2x4x32xf32> to vector<2x4x32xbf16>
    "tpu.trace_start"() <{level = 10 : i32, message = "btd,bld->btl"}> : () -> ()
    %cst = arith.constant dense<0.000000e+00> : vector<2x8x4xf32>
    %4 = tpu.matmul %1, %3, %cst {dimension_numbers = #tpu.dot_dimension_numbers<[2], [2], [1], [1], [0, 0, 0, 1, 1, 1], [0], [0]>} : vector<2x8x32xbf16>, vector<2x4x32xbf16>, vector<2x8x4xf32> -> vector<2x8x4xf32>
    "tpu.trace_stop"() : () -> ()
    %cst_5 = arith.constant dense<0xFF800000> : vector<2x8xf32>
    %5 = vector.multi_reduction <maximumf>, %4, %cst_5 [2] : vector<2x8x4xf32> to vector<2x8xf32>
    %6 = vector.shape_cast %5 : vector<2x8xf32> to vector<2x8x1xf32>
    %7 = vector.broadcast %6 : vector<2x8x1xf32> to vector<2x8x4xf32>
    %8 = arith.subf %4, %7 : vector<2x8x4xf32>
    %9 = math.exp %8 : vector<2x8x4xf32>
    %cst_6 = arith.constant dense<0.000000e+00> : vector<2x8xf32>
    %10 = vector.multi_reduction <add>, %9, %cst_6 [2] : vector<2x8x4xf32> to vector<2x8xf32>
    %11 = vector.shape_cast %10 : vector<2x8xf32> to vector<2x8x1xf32>
    %12 = tpu.reciprocal %11 {approx = true} : vector<2x8x1xf32> -> vector<2x8x1xf32>
    %13 = vector.broadcast %12 : vector<2x8x1xf32> to vector<2x8x4xf32>
    %14 = arith.mulf %9, %13 : vector<2x8x4xf32>
    %15 = arith.truncf %14 : vector<2x8x4xf32> to vector<2x8x4xbf16>
    "tpu.trace_start"() <{level = 10 : i32, message = "btl,bld->btd"}> : () -> ()
    %cst_7 = arith.constant dense<0.000000e+00> : vector<2x8x32xf32>
    %16 = tpu.matmul %15, %3, %cst_7 {dimension_numbers = #tpu.dot_dimension_numbers<[2], [1], [1], [2], [0, 0, 0, 1, 1, 2], [0], [0]>} : vector<2x8x4xbf16>, vector<2x4x32xbf16>, vector<2x8x32xf32> -> vector<2x8x32xf32>
    "tpu.trace_stop"() : () -> ()
    %c0_8 = arith.constant 0 : index
    %c0_9 = arith.constant 0 : index
    %c0_10 = arith.constant 0 : index
    %17 = vector.load %arg3[%c0_8, %c0_9, %c0_10] : memref<2x8x32xf32, #tpu.memory_space<vmem>>, vector<2x8x32xf32>
    tpu.vector_store %arg3[%c0_8, %c0_9, %c0_10], %16 {strides = array<i32>} : memref<2x8x32xf32, #tpu.memory_space<vmem>>, vector<2x8x32xf32>,
    return
  }
  func.func @transform_0(%arg0: i32) -> (i32, i32, i32) {
    %c0_i32 = arith.constant 0 : i32
    %c0_i32_0 = arith.constant 0 : i32
    %c0_i32_1 = arith.constant 0 : i32
    return %arg0, %c0_i32, %c0_i32_0 : i32, i32, i32
  }
  func.func @transform_1(%arg0: i32) -> (i32, i32, i32) {
    %c0_i32 = arith.constant 0 : i32
    %c0_i32_0 = arith.constant 0 : i32
    %c0_i32_1 = arith.constant 0 : i32
    return %arg0, %c0_i32, %c0_i32_0 : i32, i32, i32
  }
  func.func @transform_2(%arg0: i32) -> (i32, i32, i32) {
    %c0_i32 = arith.constant 0 : i32
    %c0_i32_0 = arith.constant 0 : i32
    %c0_i32_1 = arith.constant 0 : i32
    return %arg0, %c0_i32, %c0_i32_0 : i32, i32, i32
  }
}

module attributes {stable_mosaic.version = 11 : i64} {
  func.func @_gat_kernel(%arg0: i32, %arg1: memref<1x16x32xf32, #tpu.memory_space<vmem>>, %arg2: memref<1x16x16xi8, #tpu.memory_space<vmem>>, %arg3: memref<32x32xbf16, #tpu.memory_space<vmem>>, %arg4: memref<4x32xbf16, #tpu.memory_space<vmem>>, %arg5: memref<32x4xbf16, #tpu.memory_space<vmem>>, %arg6: memref<1x32xf32, #tpu.memory_space<vmem>>, %arg7: memref<1x32xf32, #tpu.memory_space<vmem>>, %arg8: memref<1x32xf32, #tpu.memory_space<vmem>>, %arg9: memref<1x16x32xf32, #tpu.memory_space<vmem>>) attributes {dimension_semantics = [#tpu.dimension_semantics<parallel>], iteration_bounds = array<i64: 2>, scalar_prefetch = 0 : i64, scratch_operands = 0 : i64, tpu.core_type = #tpu.core_type<tc>, window_params = [{transform_indices = @transform_0, window_bounds = array<i64: 1, 16, 32>}, {transform_indices = @transform_1, window_bounds = array<i64: 1, 16, 16>}, {pipeline_mode = #tpu.pipeline_mode<synchronous>, transform_indices = @transform_2, window_bounds = array<i64: 32, 32>}, {pipeline_mode = #tpu.pipeline_mode<synchronous>, transform_indices = @transform_3, window_bounds = array<i64: 4, 32>}, {pipeline_mode = #tpu.pipeline_mode<synchronous>, transform_indices = @transform_4, window_bounds = array<i64: 32, 4>}, {pipeline_mode = #tpu.pipeline_mode<synchronous>, transform_indices = @transform_5, window_bounds = array<i64: 1, 32>}, {pipeline_mode = #tpu.pipeline_mode<synchronous>, transform_indices = @transform_6, window_bounds = array<i64: 1, 32>}, {pipeline_mode = #tpu.pipeline_mode<synchronous>, transform_indices = @transform_7, window_bounds = array<i64: 1, 32>}, {transform_indices = @transform_8, window_bounds = array<i64: 1, 16, 32>}]} {
    %c0 = arith.constant 0 : index
    %c0_0 = arith.constant 0 : index
    %c0_1 = arith.constant 0 : index
    %0 = vector.load %arg1[%c0, %c0_0, %c0_1] : memref<1x16x32xf32, #tpu.memory_space<vmem>>, vector<1x16x32xf32>
    %1 = vector.shape_cast %0 : vector<1x16x32xf32> to vector<16x32xf32>
    %2 = arith.truncf %1 : vector<16x32xf32> to vector<16x32xbf16>
    %c0_2 = arith.constant 0 : index
    %c0_3 = arith.constant 0 : index
    %3 = vector.load %arg3[%c0_2, %c0_3] : memref<32x32xbf16, #tpu.memory_space<vmem>>, vector<32x32xbf16>
    %cst = arith.constant dense<0.000000e+00> : vector<16x32xf32>
    %4 = tpu.matmul %2, %3, %cst {dimension_numbers = #tpu.dot_dimension_numbers<[1], [0], [0], [1], [0, 0, 1, 1], [], []>} : vector<16x32xbf16>, vector<32x32xbf16>, vector<16x32xf32> -> vector<16x32xf32>
    %5 = arith.truncf %4 : vector<16x32xf32> to vector<16x32xbf16>
    %c0_4 = arith.constant 0 : index
    %c0_5 = arith.constant 0 : index
    %6 = vector.load %arg4[%c0_4, %c0_5] : memref<4x32xbf16, #tpu.memory_space<vmem>>, vector<4x32xbf16>
    %cst_6 = arith.constant dense<0.000000e+00> : vector<4x16xf32>
    %7 = tpu.matmul %6, %5, %cst_6 {dimension_numbers = #tpu.dot_dimension_numbers<[1], [1], [0], [0], [0, 0, 1, 0], [], []>} : vector<4x32xbf16>, vector<16x32xbf16>, vector<4x16xf32> -> vector<4x16xf32>
    %c0_7 = arith.constant 0 : index
    %c0_8 = arith.constant 0 : index
    %8 = vector.load %arg5[%c0_7, %c0_8] : memref<32x4xbf16, #tpu.memory_space<vmem>>, vector<32x4xbf16>
    %cst_9 = arith.constant dense<0.000000e+00> : vector<16x4xf32>
    %9 = tpu.matmul %5, %8, %cst_9 {dimension_numbers = #tpu.dot_dimension_numbers<[1], [0], [0], [1], [0, 0, 1, 1], [], []>} : vector<16x32xbf16>, vector<32x4xbf16>, vector<16x4xf32> -> vector<16x4xf32>
    %c0_10 = arith.constant 0 : index
    %c0_11 = arith.constant 0 : index
    %c0_12 = arith.constant 0 : index
    %10 = vector.load %arg2[%c0_10, %c0_11, %c0_12] : memref<1x16x16xi8, #tpu.memory_space<vmem>>, vector<1x16x16xi8>
    %11 = vector.shape_cast %10 : vector<1x16x16xi8> to vector<16x16xi8>
    %12 = arith.extsi %11 : vector<16x16xi8> to vector<16x16xi32>
    %c0_i32 = arith.constant 0 : i32
    %13 = vector.broadcast %c0_i32 : i32 to vector<16x16xi32>
    %14 = arith.cmpi sgt, %12, %13 : vector<16x16xi32>
    %cst_13 = arith.constant 0.000000e+00 : f32
    %cst_14 = arith.constant -1.000000e+30 : f32
    %15 = vector.broadcast %cst_13 : f32 to vector<16x16xf32>
    %16 = vector.broadcast %cst_14 : f32 to vector<16x16xf32>
    %17 = arith.select %14, %15, %16 : vector<16x16xi1>, vector<16x16xf32>
    %18 = vector.extract_strided_slice %9 {offsets = [0, 0], sizes = [16, 1], strides = [1, 1]} : vector<16x4xf32> to vector<16x1xf32>
    %19 = vector.extract_strided_slice %7 {offsets = [0, 0], sizes = [1, 16], strides = [1, 1]} : vector<4x16xf32> to vector<1x16xf32>
    %20 = vector.broadcast %18 : vector<16x1xf32> to vector<16x16xf32>
    %21 = vector.broadcast %19 : vector<1x16xf32> to vector<16x16xf32>
    %22 = arith.addf %20, %21 : vector<16x16xf32>
    %cst_15 = arith.constant 0.000000e+00 : f32
    %23 = vector.broadcast %cst_15 : f32 to vector<16x16xf32>
    %24 = arith.cmpf ogt, %22, %23 : vector<16x16xf32>
    %cst_16 = arith.constant 2.000000e-01 : f32
    %25 = vector.broadcast %cst_16 : f32 to vector<16x16xf32>
    %26 = arith.mulf %25, %22 : vector<16x16xf32>
    %27 = arith.select %24, %22, %26 : vector<16x16xi1>, vector<16x16xf32>
    %28 = arith.addf %27, %17 : vector<16x16xf32>
    %cst_17 = arith.constant dense<0xFF800000> : vector<16xf32>
    %29 = vector.multi_reduction <maximumf>, %28, %cst_17 [1] : vector<16x16xf32> to vector<16xf32>
    %30 = vector.shape_cast %29 : vector<16xf32> to vector<16x1xf32>
    %31 = vector.broadcast %30 : vector<16x1xf32> to vector<16x16xf32>
    %32 = arith.subf %28, %31 : vector<16x16xf32>
    %33 = math.exp %32 : vector<16x16xf32>
    %cst_18 = arith.constant dense<0.000000e+00> : vector<16xf32>
    %34 = vector.multi_reduction <add>, %33, %cst_18 [1] : vector<16x16xf32> to vector<16xf32>
    %35 = vector.shape_cast %34 : vector<16xf32> to vector<16x1xf32>
    %36 = tpu.reciprocal %35 {approx = true} : vector<16x1xf32> -> vector<16x1xf32>
    %37 = vector.broadcast %36 : vector<16x1xf32> to vector<16x16xf32>
    %38 = arith.mulf %33, %37 : vector<16x16xf32>
    %39 = arith.truncf %38 : vector<16x16xf32> to vector<16x16xbf16>
    %40 = vector.extract_strided_slice %5 {offsets = [0, 0], sizes = [16, 8], strides = [1, 1]} : vector<16x32xbf16> to vector<16x8xbf16>
    %cst_19 = arith.constant dense<0.000000e+00> : vector<16x8xf32>
    %41 = tpu.matmul %39, %40, %cst_19 {dimension_numbers = #tpu.dot_dimension_numbers<[1], [0], [0], [1], [0, 0, 1, 1], [], []>} : vector<16x16xbf16>, vector<16x8xbf16>, vector<16x8xf32> -> vector<16x8xf32>
    %42 = vector.extract_strided_slice %9 {offsets = [0, 1], sizes = [16, 1], strides = [1, 1]} : vector<16x4xf32> to vector<16x1xf32>
    %43 = vector.extract_strided_slice %7 {offsets = [1, 0], sizes = [1, 16], strides = [1, 1]} : vector<4x16xf32> to vector<1x16xf32>
    %44 = vector.broadcast %42 : vector<16x1xf32> to vector<16x16xf32>
    %45 = vector.broadcast %43 : vector<1x16xf32> to vector<16x16xf32>
    %46 = arith.addf %44, %45 : vector<16x16xf32>
    %cst_20 = arith.constant 0.000000e+00 : f32
    %47 = vector.broadcast %cst_20 : f32 to vector<16x16xf32>
    %48 = arith.cmpf ogt, %46, %47 : vector<16x16xf32>
    %cst_21 = arith.constant 2.000000e-01 : f32
    %49 = vector.broadcast %cst_21 : f32 to vector<16x16xf32>
    %50 = arith.mulf %49, %46 : vector<16x16xf32>
    %51 = arith.select %48, %46, %50 : vector<16x16xi1>, vector<16x16xf32>
    %52 = arith.addf %51, %17 : vector<16x16xf32>
    %cst_22 = arith.constant dense<0xFF800000> : vector<16xf32>
    %53 = vector.multi_reduction <maximumf>, %52, %cst_22 [1] : vector<16x16xf32> to vector<16xf32>
    %54 = vector.shape_cast %53 : vector<16xf32> to vector<16x1xf32>
    %55 = vector.broadcast %54 : vector<16x1xf32> to vector<16x16xf32>
    %56 = arith.subf %52, %55 : vector<16x16xf32>
    %57 = math.exp %56 : vector<16x16xf32>
    %cst_23 = arith.constant dense<0.000000e+00> : vector<16xf32>
    %58 = vector.multi_reduction <add>, %57, %cst_23 [1] : vector<16x16xf32> to vector<16xf32>
    %59 = vector.shape_cast %58 : vector<16xf32> to vector<16x1xf32>
    %60 = tpu.reciprocal %59 {approx = true} : vector<16x1xf32> -> vector<16x1xf32>
    %61 = vector.broadcast %60 : vector<16x1xf32> to vector<16x16xf32>
    %62 = arith.mulf %57, %61 : vector<16x16xf32>
    %63 = arith.truncf %62 : vector<16x16xf32> to vector<16x16xbf16>
    %64 = vector.extract_strided_slice %5 {offsets = [0, 8], sizes = [16, 8], strides = [1, 1]} : vector<16x32xbf16> to vector<16x8xbf16>
    %cst_24 = arith.constant dense<0.000000e+00> : vector<16x8xf32>
    %65 = tpu.matmul %63, %64, %cst_24 {dimension_numbers = #tpu.dot_dimension_numbers<[1], [0], [0], [1], [0, 0, 1, 1], [], []>} : vector<16x16xbf16>, vector<16x8xbf16>, vector<16x8xf32> -> vector<16x8xf32>
    %66 = vector.extract_strided_slice %9 {offsets = [0, 2], sizes = [16, 1], strides = [1, 1]} : vector<16x4xf32> to vector<16x1xf32>
    %67 = vector.extract_strided_slice %7 {offsets = [2, 0], sizes = [1, 16], strides = [1, 1]} : vector<4x16xf32> to vector<1x16xf32>
    %68 = vector.broadcast %66 : vector<16x1xf32> to vector<16x16xf32>
    %69 = vector.broadcast %67 : vector<1x16xf32> to vector<16x16xf32>
    %70 = arith.addf %68, %69 : vector<16x16xf32>
    %cst_25 = arith.constant 0.000000e+00 : f32
    %71 = vector.broadcast %cst_25 : f32 to vector<16x16xf32>
    %72 = arith.cmpf ogt, %70, %71 : vector<16x16xf32>
    %cst_26 = arith.constant 2.000000e-01 : f32
    %73 = vector.broadcast %cst_26 : f32 to vector<16x16xf32>
    %74 = arith.mulf %73, %70 : vector<16x16xf32>
    %75 = arith.select %72, %70, %74 : vector<16x16xi1>, vector<16x16xf32>
    %76 = arith.addf %75, %17 : vector<16x16xf32>
    %cst_27 = arith.constant dense<0xFF800000> : vector<16xf32>
    %77 = vector.multi_reduction <maximumf>, %76, %cst_27 [1] : vector<16x16xf32> to vector<16xf32>
    %78 = vector.shape_cast %77 : vector<16xf32> to vector<16x1xf32>
    %79 = vector.broadcast %78 : vector<16x1xf32> to vector<16x16xf32>
    %80 = arith.subf %76, %79 : vector<16x16xf32>
    %81 = math.exp %80 : vector<16x16xf32>
    %cst_28 = arith.constant dense<0.000000e+00> : vector<16xf32>
    %82 = vector.multi_reduction <add>, %81, %cst_28 [1] : vector<16x16xf32> to vector<16xf32>
    %83 = vector.shape_cast %82 : vector<16xf32> to vector<16x1xf32>
    %84 = tpu.reciprocal %83 {approx = true} : vector<16x1xf32> -> vector<16x1xf32>
    %85 = vector.broadcast %84 : vector<16x1xf32> to vector<16x16xf32>
    %86 = arith.mulf %81, %85 : vector<16x16xf32>
    %87 = arith.truncf %86 : vector<16x16xf32> to vector<16x16xbf16>
    %88 = vector.extract_strided_slice %5 {offsets = [0, 16], sizes = [16, 8], strides = [1, 1]} : vector<16x32xbf16> to vector<16x8xbf16>
    %cst_29 = arith.constant dense<0.000000e+00> : vector<16x8xf32>
    %89 = tpu.matmul %87, %88, %cst_29 {dimension_numbers = #tpu.dot_dimension_numbers<[1], [0], [0], [1], [0, 0, 1, 1], [], []>} : vector<16x16xbf16>, vector<16x8xbf16>, vector<16x8xf32> -> vector<16x8xf32>
    %90 = vector.extract_strided_slice %9 {offsets = [0, 3], sizes = [16, 1], strides = [1, 1]} : vector<16x4xf32> to vector<16x1xf32>
    %91 = vector.extract_strided_slice %7 {offsets = [3, 0], sizes = [1, 16], strides = [1, 1]} : vector<4x16xf32> to vector<1x16xf32>
    %92 = vector.broadcast %90 : vector<16x1xf32> to vector<16x16xf32>
    %93 = vector.broadcast %91 : vector<1x16xf32> to vector<16x16xf32>
    %94 = arith.addf %92, %93 : vector<16x16xf32>
    %cst_30 = arith.constant 0.000000e+00 : f32
    %95 = vector.broadcast %cst_30 : f32 to vector<16x16xf32>
    %96 = arith.cmpf ogt, %94, %95 : vector<16x16xf32>
    %cst_31 = arith.constant 2.000000e-01 : f32
    %97 = vector.broadcast %cst_31 : f32 to vector<16x16xf32>
    %98 = arith.mulf %97, %94 : vector<16x16xf32>
    %99 = arith.select %96, %94, %98 : vector<16x16xi1>, vector<16x16xf32>
    %100 = arith.addf %99, %17 : vector<16x16xf32>
    %cst_32 = arith.constant dense<0xFF800000> : vector<16xf32>
    %101 = vector.multi_reduction <maximumf>, %100, %cst_32 [1] : vector<16x16xf32> to vector<16xf32>
    %102 = vector.shape_cast %101 : vector<16xf32> to vector<16x1xf32>
    %103 = vector.broadcast %102 : vector<16x1xf32> to vector<16x16xf32>
    %104 = arith.subf %100, %103 : vector<16x16xf32>
    %105 = math.exp %104 : vector<16x16xf32>
    %cst_33 = arith.constant dense<0.000000e+00> : vector<16xf32>
    %106 = vector.multi_reduction <add>, %105, %cst_33 [1] : vector<16x16xf32> to vector<16xf32>
    %107 = vector.shape_cast %106 : vector<16xf32> to vector<16x1xf32>
    %108 = tpu.reciprocal %107 {approx = true} : vector<16x1xf32> -> vector<16x1xf32>
    %109 = vector.broadcast %108 : vector<16x1xf32> to vector<16x16xf32>
    %110 = arith.mulf %105, %109 : vector<16x16xf32>
    %111 = arith.truncf %110 : vector<16x16xf32> to vector<16x16xbf16>
    %112 = vector.extract_strided_slice %5 {offsets = [0, 24], sizes = [16, 8], strides = [1, 1]} : vector<16x32xbf16> to vector<16x8xbf16>
    %cst_34 = arith.constant dense<0.000000e+00> : vector<16x8xf32>
    %113 = tpu.matmul %111, %112, %cst_34 {dimension_numbers = #tpu.dot_dimension_numbers<[1], [0], [0], [1], [0, 0, 1, 1], [], []>} : vector<16x16xbf16>, vector<16x8xbf16>, vector<16x8xf32> -> vector<16x8xf32>
    %114 = tpu.concatenate %41, %65, %89, %113 in 1 : vector<16x8xf32>, vector<16x8xf32>, vector<16x8xf32>, vector<16x8xf32> -> vector<16x32xf32>
    %c0_35 = arith.constant 0 : index
    %c0_36 = arith.constant 0 : index
    %115 = vector.load %arg6[%c0_35, %c0_36] : memref<1x32xf32, #tpu.memory_space<vmem>>, vector<1x32xf32>
    %116 = vector.broadcast %115 : vector<1x32xf32> to vector<16x32xf32>
    %117 = arith.addf %114, %116 : vector<16x32xf32>
    %cst_37 = arith.constant 0.000000e+00 : f32
    %118 = vector.broadcast %cst_37 : f32 to vector<16x32xf32>
    %119 = arith.maximumf %117, %118 : vector<16x32xf32>
    %120 = arith.addf %119, %1 : vector<16x32xf32>
    %cst_38 = arith.constant dense<0.000000e+00> : vector<16xf32>
    %121 = vector.multi_reduction <add>, %120, %cst_38 [1] : vector<16x32xf32> to vector<16xf32>
    %122 = vector.shape_cast %121 : vector<16xf32> to vector<16x1xf32>
    %cst_39 = arith.constant 3.200000e+01 : f32
    %123 = vector.broadcast %cst_39 : f32 to vector<16x1xf32>
    %124 = arith.divf %122, %123 : vector<16x1xf32>
    %125 = vector.broadcast %124 : vector<16x1xf32> to vector<16x32xf32>
    %126 = arith.subf %120, %125 : vector<16x32xf32>
    %127 = arith.mulf %126, %126 : vector<16x32xf32>
    %cst_40 = arith.constant dense<0.000000e+00> : vector<16xf32>
    %128 = vector.multi_reduction <add>, %127, %cst_40 [1] : vector<16x32xf32> to vector<16xf32>
    %129 = vector.shape_cast %128 : vector<16xf32> to vector<16x1xf32>
    %cst_41 = arith.constant 3.200000e+01 : f32
    %130 = vector.broadcast %cst_41 : f32 to vector<16x1xf32>
    %131 = arith.divf %129, %130 : vector<16x1xf32>
    %132 = vector.broadcast %124 : vector<16x1xf32> to vector<16x32xf32>
    %133 = arith.subf %120, %132 : vector<16x32xf32>
    %cst_42 = arith.constant 9.99999974E-6 : f32
    %134 = vector.broadcast %cst_42 : f32 to vector<16x1xf32>
    %135 = arith.addf %131, %134 : vector<16x1xf32>
    %136 = math.rsqrt %135 : vector<16x1xf32>
    %137 = vector.broadcast %136 : vector<16x1xf32> to vector<16x32xf32>
    %138 = arith.mulf %133, %137 : vector<16x32xf32>
    %c0_43 = arith.constant 0 : index
    %c0_44 = arith.constant 0 : index
    %139 = vector.load %arg7[%c0_43, %c0_44] : memref<1x32xf32, #tpu.memory_space<vmem>>, vector<1x32xf32>
    %140 = vector.broadcast %139 : vector<1x32xf32> to vector<16x32xf32>
    %141 = arith.mulf %138, %140 : vector<16x32xf32>
    %c0_45 = arith.constant 0 : index
    %c0_46 = arith.constant 0 : index
    %142 = vector.load %arg8[%c0_45, %c0_46] : memref<1x32xf32, #tpu.memory_space<vmem>>, vector<1x32xf32>
    %143 = vector.broadcast %142 : vector<1x32xf32> to vector<16x32xf32>
    %144 = arith.addf %141, %143 : vector<16x32xf32>
    %c0_47 = arith.constant 0 : index
    %c0_48 = arith.constant 0 : index
    %c0_49 = arith.constant 0 : index
    %145 = vector.load %arg9[%c0_47, %c0_48, %c0_49] : memref<1x16x32xf32, #tpu.memory_space<vmem>>, vector<1x16x32xf32>
    %146 = vector.shape_cast %145 : vector<1x16x32xf32> to vector<16x32xf32>
    %147 = vector.shape_cast %144 : vector<16x32xf32> to vector<1x16x32xf32>
    tpu.vector_store %arg9[%c0_47, %c0_48, %c0_49], %147 {strides = array<i32>} : memref<1x16x32xf32, #tpu.memory_space<vmem>>, vector<1x16x32xf32>,
    return
  }
  func.func @transform_0(%arg0: i32) -> (i32, i32, i32) {
    %c0_i32 = arith.constant 0 : i32
    %c0_i32_0 = arith.constant 0 : i32
    %c0_i32_1 = arith.constant 0 : i32
    return %arg0, %c0_i32, %c0_i32_0 : i32, i32, i32
  }
  func.func @transform_1(%arg0: i32) -> (i32, i32, i32) {
    %c0_i32 = arith.constant 0 : i32
    %c0_i32_0 = arith.constant 0 : i32
    %c0_i32_1 = arith.constant 0 : i32
    return %arg0, %c0_i32, %c0_i32_0 : i32, i32, i32
  }
  func.func @transform_2(%arg0: i32) -> (i32, i32) {
    %c0_i32 = arith.constant 0 : i32
    %c0_i32_0 = arith.constant 0 : i32
    %c0_i32_1 = arith.constant 0 : i32
    return %c0_i32, %c0_i32_0 : i32, i32
  }
  func.func @transform_3(%arg0: i32) -> (i32, i32) {
    %c0_i32 = arith.constant 0 : i32
    %c0_i32_0 = arith.constant 0 : i32
    %c0_i32_1 = arith.constant 0 : i32
    return %c0_i32, %c0_i32_0 : i32, i32
  }
  func.func @transform_4(%arg0: i32) -> (i32, i32) {
    %c0_i32 = arith.constant 0 : i32
    %c0_i32_0 = arith.constant 0 : i32
    %c0_i32_1 = arith.constant 0 : i32
    return %c0_i32, %c0_i32_0 : i32, i32
  }
  func.func @transform_5(%arg0: i32) -> (i32, i32) {
    %c0_i32 = arith.constant 0 : i32
    %c0_i32_0 = arith.constant 0 : i32
    %c0_i32_1 = arith.constant 0 : i32
    return %c0_i32, %c0_i32_0 : i32, i32
  }
  func.func @transform_6(%arg0: i32) -> (i32, i32) {
    %c0_i32 = arith.constant 0 : i32
    %c0_i32_0 = arith.constant 0 : i32
    %c0_i32_1 = arith.constant 0 : i32
    return %c0_i32, %c0_i32_0 : i32, i32
  }
  func.func @transform_7(%arg0: i32) -> (i32, i32) {
    %c0_i32 = arith.constant 0 : i32
    %c0_i32_0 = arith.constant 0 : i32
    %c0_i32_1 = arith.constant 0 : i32
    return %c0_i32, %c0_i32_0 : i32, i32
  }
  func.func @transform_8(%arg0: i32) -> (i32, i32, i32) {
    %c0_i32 = arith.constant 0 : i32
    %c0_i32_0 = arith.constant 0 : i32
    %c0_i32_1 = arith.constant 0 : i32
    return %arg0, %c0_i32, %c0_i32_0 : i32, i32, i32
  }
}

module attributes {stable_mosaic.version = 11 : i64} {
  func.func @_head_kernel(%arg0: i32, %arg1: memref<16x32xf32, #tpu.memory_space<vmem>>, %arg2: memref<32x32xbf16, #tpu.memory_space<vmem>>, %arg3: memref<1x32xf32, #tpu.memory_space<vmem>>, %arg4: memref<32x128xbf16, #tpu.memory_space<vmem>>, %arg5: memref<1x128xf32, #tpu.memory_space<vmem>>, %arg6: memref<16x128xf32, #tpu.memory_space<vmem>>) attributes {dimension_semantics = [#tpu.dimension_semantics<parallel>], iteration_bounds = array<i64: 1>, scalar_prefetch = 0 : i64, scratch_operands = 0 : i64, tpu.core_type = #tpu.core_type<tc>, window_params = [{transform_indices = @transform_0, window_bounds = array<i64: 16, 32>}, {pipeline_mode = #tpu.pipeline_mode<synchronous>, transform_indices = @transform_1, window_bounds = array<i64: 32, 32>}, {pipeline_mode = #tpu.pipeline_mode<synchronous>, transform_indices = @transform_2, window_bounds = array<i64: 1, 32>}, {pipeline_mode = #tpu.pipeline_mode<synchronous>, transform_indices = @transform_3, window_bounds = array<i64: 32, 128>}, {pipeline_mode = #tpu.pipeline_mode<synchronous>, transform_indices = @transform_4, window_bounds = array<i64: 1, 128>}, {transform_indices = @transform_5, window_bounds = array<i64: 16, 128>}]} {
    %c0 = arith.constant 0 : index
    %c0_0 = arith.constant 0 : index
    %0 = vector.load %arg1[%c0, %c0_0] : memref<16x32xf32, #tpu.memory_space<vmem>>, vector<16x32xf32>
    %1 = arith.truncf %0 : vector<16x32xf32> to vector<16x32xbf16>
    %c0_1 = arith.constant 0 : index
    %c0_2 = arith.constant 0 : index
    %2 = vector.load %arg2[%c0_1, %c0_2] : memref<32x32xbf16, #tpu.memory_space<vmem>>, vector<32x32xbf16>
    %cst = arith.constant dense<0.000000e+00> : vector<16x32xf32>
    %3 = tpu.matmul %1, %2, %cst {dimension_numbers = #tpu.dot_dimension_numbers<[1], [0], [0], [1], [0, 0, 1, 1], [], []>} : vector<16x32xbf16>, vector<32x32xbf16>, vector<16x32xf32> -> vector<16x32xf32>
    %c0_3 = arith.constant 0 : index
    %c0_4 = arith.constant 0 : index
    %4 = vector.load %arg3[%c0_3, %c0_4] : memref<1x32xf32, #tpu.memory_space<vmem>>, vector<1x32xf32>
    %5 = vector.broadcast %4 : vector<1x32xf32> to vector<16x32xf32>
    %6 = arith.addf %3, %5 : vector<16x32xf32>
    %cst_5 = arith.constant 0.000000e+00 : f32
    %7 = vector.broadcast %cst_5 : f32 to vector<16x32xf32>
    %8 = arith.maximumf %6, %7 : vector<16x32xf32>
    %9 = arith.addf %0, %8 : vector<16x32xf32>
    %10 = arith.truncf %9 : vector<16x32xf32> to vector<16x32xbf16>
    %c0_6 = arith.constant 0 : index
    %c0_7 = arith.constant 0 : index
    %11 = vector.load %arg2[%c0_6, %c0_7] : memref<32x32xbf16, #tpu.memory_space<vmem>>, vector<32x32xbf16>
    %cst_8 = arith.constant dense<0.000000e+00> : vector<16x32xf32>
    %12 = tpu.matmul %10, %11, %cst_8 {dimension_numbers = #tpu.dot_dimension_numbers<[1], [0], [0], [1], [0, 0, 1, 1], [], []>} : vector<16x32xbf16>, vector<32x32xbf16>, vector<16x32xf32> -> vector<16x32xf32>
    %c0_9 = arith.constant 0 : index
    %c0_10 = arith.constant 0 : index
    %13 = vector.load %arg3[%c0_9, %c0_10] : memref<1x32xf32, #tpu.memory_space<vmem>>, vector<1x32xf32>
    %14 = vector.broadcast %13 : vector<1x32xf32> to vector<16x32xf32>
    %15 = arith.addf %12, %14 : vector<16x32xf32>
    %cst_11 = arith.constant 0.000000e+00 : f32
    %16 = vector.broadcast %cst_11 : f32 to vector<16x32xf32>
    %17 = arith.maximumf %15, %16 : vector<16x32xf32>
    %18 = arith.addf %9, %17 : vector<16x32xf32>
    %19 = arith.truncf %18 : vector<16x32xf32> to vector<16x32xbf16>
    %c0_12 = arith.constant 0 : index
    %c0_13 = arith.constant 0 : index
    %20 = vector.load %arg2[%c0_12, %c0_13] : memref<32x32xbf16, #tpu.memory_space<vmem>>, vector<32x32xbf16>
    %cst_14 = arith.constant dense<0.000000e+00> : vector<16x32xf32>
    %21 = tpu.matmul %19, %20, %cst_14 {dimension_numbers = #tpu.dot_dimension_numbers<[1], [0], [0], [1], [0, 0, 1, 1], [], []>} : vector<16x32xbf16>, vector<32x32xbf16>, vector<16x32xf32> -> vector<16x32xf32>
    %c0_15 = arith.constant 0 : index
    %c0_16 = arith.constant 0 : index
    %22 = vector.load %arg3[%c0_15, %c0_16] : memref<1x32xf32, #tpu.memory_space<vmem>>, vector<1x32xf32>
    %23 = vector.broadcast %22 : vector<1x32xf32> to vector<16x32xf32>
    %24 = arith.addf %21, %23 : vector<16x32xf32>
    %cst_17 = arith.constant 0.000000e+00 : f32
    %25 = vector.broadcast %cst_17 : f32 to vector<16x32xf32>
    %26 = arith.maximumf %24, %25 : vector<16x32xf32>
    %27 = arith.addf %18, %26 : vector<16x32xf32>
    %28 = arith.truncf %27 : vector<16x32xf32> to vector<16x32xbf16>
    %c0_18 = arith.constant 0 : index
    %c0_19 = arith.constant 0 : index
    %29 = vector.load %arg4[%c0_18, %c0_19] : memref<32x128xbf16, #tpu.memory_space<vmem>>, vector<32x128xbf16>
    %cst_20 = arith.constant dense<0.000000e+00> : vector<16x128xf32>
    %30 = tpu.matmul %28, %29, %cst_20 {dimension_numbers = #tpu.dot_dimension_numbers<[1], [0], [0], [1], [0, 0, 1, 1], [], []>} : vector<16x32xbf16>, vector<32x128xbf16>, vector<16x128xf32> -> vector<16x128xf32>
    %c0_21 = arith.constant 0 : index
    %c0_22 = arith.constant 0 : index
    %31 = vector.load %arg5[%c0_21, %c0_22] : memref<1x128xf32, #tpu.memory_space<vmem>>, vector<1x128xf32>
    %32 = vector.broadcast %31 : vector<1x128xf32> to vector<16x128xf32>
    %33 = arith.addf %30, %32 : vector<16x128xf32>
    %c0_23 = arith.constant 0 : index
    %c0_24 = arith.constant 0 : index
    %34 = vector.load %arg6[%c0_23, %c0_24] : memref<16x128xf32, #tpu.memory_space<vmem>>, vector<16x128xf32>
    tpu.vector_store %arg6[%c0_23, %c0_24], %33 {strides = array<i32>} : memref<16x128xf32, #tpu.memory_space<vmem>>, vector<16x128xf32>,
    return
  }
  func.func @transform_0(%arg0: i32) -> (i32, i32) {
    %c0_i32 = arith.constant 0 : i32
    %c0_i32_0 = arith.constant 0 : i32
    return %arg0, %c0_i32 : i32, i32
  }
  func.func @transform_1(%arg0: i32) -> (i32, i32) {
    %c0_i32 = arith.constant 0 : i32
    %c0_i32_0 = arith.constant 0 : i32
    %c0_i32_1 = arith.constant 0 : i32
    return %c0_i32, %c0_i32_0 : i32, i32
  }
  func.func @transform_2(%arg0: i32) -> (i32, i32) {
    %c0_i32 = arith.constant 0 : i32
    %c0_i32_0 = arith.constant 0 : i32
    %c0_i32_1 = arith.constant 0 : i32
    return %c0_i32, %c0_i32_0 : i32, i32
  }
  func.func @transform_3(%arg0: i32) -> (i32, i32) {
    %c0_i32 = arith.constant 0 : i32
    %c0_i32_0 = arith.constant 0 : i32
    %c0_i32_1 = arith.constant 0 : i32
    return %c0_i32, %c0_i32_0 : i32, i32
  }
  func.func @transform_4(%arg0: i32) -> (i32, i32) {
    %c0_i32 = arith.constant 0 : i32
    %c0_i32_0 = arith.constant 0 : i32
    %c0_i32_1 = arith.constant 0 : i32
    return %c0_i32, %c0_i32_0 : i32, i32
  }
  func.func @transform_5(%arg0: i32) -> (i32, i32) {
    %c0_i32 = arith.constant 0 : i32
    %c0_i32_0 = arith.constant 0 : i32
    return %arg0, %c0_i32 : i32, i32
  }
}

</mosaic_0001>

<bundles_post_ra>
// kernel: model_forward.13
= control target key start
LH: loop header
LB: loop body
LE: loop exit
PB: predicated region body
PF: predicated region fallthrough
CT: control target
= control target key end

     0   :  { %s1112_s24 = smov 0   ;;  %s1240_s0 = inlined_call_operand.vmem [shape: f32[2,8,32], index: 0, kind: input, shape index: {}]   ;;  %s1241_s1 = inlined_call_operand.vmem [shape: bf16[32,128], index: 1, kind: input, shape index: {}]   ;;  %s1242_s2 = inlined_call_operand.vmem [shape: bf16[4,128], index: 2, kind: input, shape index: {}]   ;;  %s1243_s3 = inlined_call_operand.vmem [shape: bf16[128,4], index: 3, kind: input, shape index: {}]   ;;  %s1244_s4 = inlined_call_operand.vmem [shape: f32[1,32], index: 4, kind: input, shape index: {}, may-alias: {4,6}]   ;;  %s1245_s5 = inlined_call_operand.vmem [shape: f32[1,32], index: 5, kind: input, shape index: {}]   ;;  %s1246_s6 = inlined_call_operand.vmem [shape: f32[1,32], index: 6, kind: input, shape index: {}, may-alias: {4,6}]   ;;  %s1247_s7 = inlined_call_operand.vmem [shape: f32[2,8,32], index: 7, kind: output, shape index: {}]  }
   0x1 LB: > { %s883_s25 = sadd.s32 4294967295, %s1060_s24   ;;  %p887_p0 = scmp.ge.s32.totalorder %s1060_s24, 1  ;;  %s1060_s24 = sphi %s1112_s24, %s17_s24  }
   0x2   : > { %p236_p1 = scmp.lt.s32.totalorder %s1060_s24, 3 }
   0x4   : > { %p237_p2 = pnand %p887_p0, %p236_p1 }
   0x5   : > { %v1026_v0 = vld [vmem:[%s1241_s1] sm:$0xff] (!%p237_p2)   ;;  %v1062_v1 = vmov (!%p237_p2), 0.0   ;;  %v1027_v2 = vld [vmem:[%s1241_s1 + $0x8] sm:$0xff] (!%p237_p2)   ;;  %vm1063_vm0 = vmmov (!%p237_p2), 0   ;;  %p266_p3 = scmp.lt.s32.totalorder (!%p237_p2), %s883_s25, 1  ;;  %vm293_vm1 = vcmask (!%p237_p2), 261120   ;;  %v483_v31 = vlaneseq (!%p237_p2) }
   0x6   : > { %240 = sbr.rel (%p237_p2) target bundleno = 1465 (0x5b9), region = 48  ;;  %933 = vmatprep.subr.bf16.mxu0 (!%p237_p2), %v1062_v1  ;;  %941 = vmatprep.subr.bf16.mxu1 (!%p237_p2), %v1062_v1  ;;  %v1028_v4 = vld [vmem:[%s1243_s3] sm:$0xff] (!%p237_p2)   ;;  %v1029_v6 = vld [vmem:[%s1243_s3 + $0x8] sm:$0xff] (!%p237_p2)   ;;  %v1030_v7 = vld [vmem:[%s1243_s3 + $0x10] sm:$0xff] (!%p237_p2)   ;;  %v1064_v13 = vmov (!%p237_p2), 2   ;;  %v1065_v14 = vmov (!%p237_p2), 1  }
   0x7   : > { %934 = vmatpush3.bf16.msra.mxu0 (!%p237_p2), %v1026_v0  ;;  %937 = vmatprep.mubr.msk.bf16.mxu0 (!%p237_p2), %vm1063_vm0, %v1062_v1  ;;  %v1031_v8 = vld [vmem:[%s1243_s3 + $0x18] sm:$0xff] (!%p237_p2)   ;;  %v1032_v9 = vld [vmem:[%s1243_s3 + $0x20] sm:$0xff] (!%p237_p2)   ;;  %v1033_v10 = vld [vmem:[%s1243_s3 + $0x28] sm:$0xff] (!%p237_p2)   ;;  %v1066_v25 = vmov (!%p237_p2), 3   ;;  %v1067_v26 = vmov (!%p237_p2), 0   ;;  %v484_v32 = vshrl.u32 (!%p237_p2), %v483_v31, 7 }
   0x8   : > { %935 = vmatprep.subr.bf16.mxu0 (!%p237_p2), %v1062_v1  ;;  %943 = vmatprep.mubr.msk.bf16.mxu1 (!%p237_p2), %vm1063_vm0, %v1062_v1  ;;  %v1034_v11 = vld [vmem:[%s1243_s3 + $0x30] sm:$0xff] (!%p237_p2)   ;;  %v1035_v12 = vld [vmem:[%s1243_s3 + $0x38] sm:$0xff] (!%p237_p2)   ;;  %v338_v20 = vld [vmem:[%s1242_s2] sm:$0x3] (!%p237_p2)  ;;  %v486_v33 = vand.u32 (!%p237_p2), 127, %v483_v31  ;;  %vm507_vm4 = vcmask (!%p237_p2), 64512  }
   0x9   : > { %1023 = vset.pattern.permute.xlu1 (!%p237_p2), %v1064_v13  ;;  %1021 = vset.pattern.permute.xlu0 (!%p237_p2), %v1065_v14  ;;  %v526_v36 = vsub.s32 (!%p237_p2), 1, %v484_v32  ;;  %v647_v37 = vsub.s32 (!%p237_p2), 2, %v484_v32  ;;  %v721_v43 = vsub.s32 (!%p237_p2), 3, %v484_v32  ;;  %v500_v44 = vsub.s32 (!%p237_p2), 0, %v484_v32  ;;  %s1069_s9 = smov (!%p237_p2), 96   ;;  %s1071_s11 = smov (!%p237_p2), 64  }
   0xa   : > { %v487_v34 = vsub.s32 (!%p237_p2), %v484_v32, %v486_v33  ;;  %v1068_v48 = vmov (!%p237_p2), -1e+30   ;;  %vm551_vm8 = vcmask (!%p237_p2), 1043456  }
   0xb   : > { %936 = vmatpush3.bf16.msra.mxu0 (!%p237_p2), %v1027_v2 }
   0xc   : > { %947 = vmatprep.subr.bf16.mxu0 (!%p237_p2), %v1062_v1  ;;  %v489_v35 = vsub.s32 (!%p237_p2), 0, %v487_v34 }
   0xd   : > { %s1249_s25 = smov (!%p266_p3, %s883_s25), 1 }
   0xe   : > { %s888_s30 = sshll.u32 %s1249_s25, 3  ;;  %v901_v38 = vmin.u32 %v489_v35, %v487_v34 }
   0xf   : > { %s269_s10 = scalar_lea.vmem %s1240_s0, %s888_s30  ;;  %s273_s20 = scalar_lea.vmem %s1247_s7, %s888_s30 }
  0x10   : > { %v1142_v3 = vld [vmem:[%s269_s10] sm:$0xff]  ;;  %vm491_vm2 = vcmp.le.s32.totalorder %v901_v38, 2  ;;  %s1070_s10 = smov 32  }
  0x11   : > { %v276_v5 = vpack.c.bf16 %v1142_v3, %v1142_v3  ;;  %v492_v49 = vsel %vm491_vm2, 0.0, %v1068_v48 }
  0x13   : > { %938 = vmatmul.mubr.msk.bf16.vlgmr.msra.gmra.mrb[0].mxu0 %vm293_vm1, %v276_v5 }
  0x14   : > { %948 = vmatpush3.bf16.msra.mxu0 %v1028_v4  ;;  %963 = vmatprep.mubr.msk.bf16.mxu0 %vm1063_vm0, %v1062_v1 }
  0x15   : > { %949 = vmatprep.subr.bf16.mxu0 %v1062_v1 }
  0x18   : > { %950 = vmatpush3.bf16.msra.mxu0 %v1029_v6 }
  0x19   : > { %951 = vmatprep.subr.bf16.mxu0 %v1062_v1 }
  0x1c   : > { %952 = vmatpush3.bf16.msra.mxu0 %v1030_v7 }
  0x1d   : > { %953 = vmatprep.subr.bf16.mxu0 %v1062_v1 }
  0x20   : > { %954 = vmatpush3.bf16.msra.mxu0 %v1031_v8 }
  0x21   : > { %955 = vmatprep.subr.bf16.mxu0 %v1062_v1 }
  0x24   : > { %956 = vmatpush3.bf16.msra.mxu0 %v1032_v9 }
  0x25   : > { %957 = vmatprep.subr.bf16.mxu0 %v1062_v1 }
  0x28   : > { %958 = vmatpush3.bf16.msra.mxu0 %v1033_v10 }
  0x29   : > { %959 = vmatprep.subr.bf16.mxu0 %v1062_v1 }
  0x2c   : > { %960 = vmatpush3.bf16.msra.mxu0 %v1034_v11 }
  0x2d   : > { %961 = vmatprep.subr.bf16.mxu0 %v1062_v1 }
  0x30   : > { %962 = vmatpush3.bf16.msra.mxu0 %v1035_v12 }
  0xe6   : > { %v331_v15 = vpop.f32.mrb[0].mxu0 }
  0xe7   : > { %v1180_v16 = vpack.c.bf16 %v331_v15, %v331_v15  ;;  %v939_v17 = vpop.f32.mrb[1].mxu0 }
  0xe8   : > { %v334_v18 = vpop.f32.mrb[2].mxu0 }
  0xe9   : > { %v940_v19 = vpop.f32.mrb[3].mxu0  ;;  %942 = vmatpush3.bf16.xpose.msra.mxu1 %v1180_v16  ;;  %964 = vmatmul.mubr.bf16.vlgmr.msra.gmra.mrb[4].mxu0 %v1180_v16  ;;  %v599_v38 = vsel %vm551_vm8, %v1180_v16, 0 }
  0xea   : > { %967 = vmatprep.subr.bf16.mxu1 %v1062_v1 }
  0xf0   : > { %944 = vmatmul.mubr.bf16.vlgmr.msra.gmra.mrb[0].mxu1 %v338_v20 }
  0xf1   : > { %969 = vmatprep.mubr.msk.bf16.mxu1 %vm1063_vm0, %v1062_v1 }
 0x1bc   : > { %v477_v21 = vpop.f32.mrb[4].mxu0 }
 0x1bd   : > { %642 = vperm.xlu1 %1023, %v477_v21   ;;  %521 = vperm.xlu0 %1021, %v477_v21   ;;  %v965_v22 = vpop.f32.mrb[5].mxu0 }
 0x1be   : > { %v480_v23 = vpop.f32.mrb[6].mxu0 }
 0x1bf   : > { %v966_v24 = vpop.f32.mrb[7].mxu0 }
 0x1c1   : > { %1024 = vset.pattern.permute.xlu1 %v1066_v25  ;;  %1022 = vset.pattern.permute.xlu0 %v1067_v26 }
 0x1c2   : > { %716 = vperm.xlu1 %1024, %v477_v21   ;;  %495 = vperm.xlu0 %1022, %v477_v21  }
 0x1c3   : > { %v373_v27 = vpop.f32.mrb[0].mxu1 }
 0x1c4   : > { %v945_v28 = vpop.f32.mrb[1].mxu1  ;;  %v527_v39 = vrot.slane %v373_v27, %v526_v36  ;;  %v648_v40 = vrot.slane %v373_v27, %v647_v37  ;;  %v722_v50 = vrot.slane %v373_v27, %v721_v43  ;;  %v501_v51 = vrot.slane %v373_v27, %v500_v44 }
 0x1c5   : > { %v376_v29 = vpop.f32.mrb[2].mxu1 }
 0x1c6   : > { %v946_v30 = vpop.f32.mrb[3].mxu1  ;;  %1025 = vset.pattern.permute.xlu0 %v1066_v25 }
 0x23c   : > { %v643_v41 = vpop.permute.xlu1 %642  ;;  %v522_v42 = vpop.permute.xlu0 %521 }
 0x23d   : > { %v528_v45 = vadd.f32 %v527_v39, %v522_v42  ;;  %v649_v46 = vadd.f32 %v648_v40, %v643_v41 }
 0x23f   : > { %vm529_vm3 = vcmp.gt.f32.partialorder %v528_v45, 0.0  ;;  %v530_v47 = vmul.f32 0.2, %v528_v45  ;;  %v651_v55 = vmul.f32 0.2, %v649_v46  ;;  %vm650_vm5 = vcmp.gt.f32.partialorder %v649_v46, 0.0 }
 0x241   : > { %v717_v52 = vpop.permute.xlu1 %716  ;;  %v496_v53 = vpop.permute.xlu0 %495  ;;  %v531_v54 = vsel %vm529_vm3, %v528_v45, %v530_v47  ;;  %v652_v0 = vsel %vm650_vm5, %v649_v46, %v651_v55 }
 0x242   : > { %v723_v56 = vadd.f32 %v722_v50, %v717_v52  ;;  %v502_v57 = vadd.f32 %v501_v51, %v496_v53  ;;  %v532_v58 = vadd.f32 %v531_v54, %v492_v49  ;;  %v653_v7 = vadd.f32 %v652_v0, %v492_v49  ;;  %v906_v53 = vld [vmem:[%s1244_s4] ss:$0 sm:$0xff] }
 0x244   : > { %vm724_vm6 = vcmp.gt.f32.partialorder %v723_v56, 0.0  ;;  %v725_v59 = vmul.f32 0.2, %v723_v56  ;;  %vm503_vm7 = vcmp.gt.f32.partialorder %v502_v57, 0.0  ;;  %v504_v60 = vmul.f32 0.2, %v502_v57 }
 0x245   : > { %v533_v61 = vsel %vm507_vm4, %v532_v58, -inf  ;;  %v654_v8 = vsel %vm507_vm4, %v653_v7, -inf }
 0x246   : > { %534 = vmax.xlane.f32.xlu1 %v533_v61  ;;  %v726_v62 = vsel %vm724_vm6, %v723_v56, %v725_v59  ;;  %v505_v63 = vsel %vm503_vm7, %v502_v57, %v504_v60 }
 0x247   : > { %v727_v2 = vadd.f32 %v726_v62, %v492_v49  ;;  %v506_v4 = vadd.f32 %v505_v63, %v492_v49 }
 0x249   : > { %v728_v5 = vsel %vm507_vm4, %v727_v2, -inf  ;;  %v508_v6 = vsel %vm507_vm4, %v506_v4, -inf }
 0x24a   : > { %729 = vmax.xlane.f32.xlu1 %v728_v5  ;;  %509 = vmax.xlane.f32.xlu0 %v508_v6 }
 0x24e   : > { %655 = vmax.xlane.f32.xlu0 %v654_v8  ;;  %v908_v8 = vld [vmem:[%s1246_s6] ss:$0 sm:$0xff] }
 0x2d3   : > { %v535_v9 = vpop.xlane.xlu1 %534 }
 0x2d4   : > { %v536_v10 = vsub.f32 %v532_v58, %v535_v9 }
 0x2d6   : > { %v537_v11 = vmul.f32 1.442695, %v536_v10 }
 0x2d7   : > { %v730_v12 = vpop.xlane.xlu1 %729  ;;  %v510_v13 = vpop.xlane.xlu0 %509 }
 0x2d8   : > { %1036 = vpow2.f32 %v537_v11  ;;  %v511_v14 = vsub.f32 %v506_v4, %v510_v13  ;;  %v731_v15 = vsub.f32 %v727_v2, %v730_v12 }
 0x2da   : > { %v512_v17 = vmul.f32 1.442695, %v511_v14  ;;  %v732_v20 = vmul.f32 1.442695, %v731_v15 }
 0x2db   : > { %v656_v18 = vpop.xlane.xlu0 %655 }
 0x2dc   : > { %v657_v19 = vsub.f32 %v653_v7, %v656_v18  ;;  %1038 = vpow2.f32 %v512_v17 }
 0x2de   : > { %v658_v21 = vmul.f32 1.442695, %v657_v19 }
 0x2e0   : > { %1040 = vpow2.f32 %v658_v21 }
 0x2e1   : > { %1042 = vpow2.f32 %v732_v20 }
 0x2e2   : > { %v1037_v22 = vpop.eup %1036 }
 0x2e3   : > { %v539_v23 = vsel %vm507_vm4, %v1037_v22, 0.0 }
 0x2e4   : > { %540 = vadd.xlane.f32.xlu0 %v539_v23 }
 0x2e6   : > { %v1039_v24 = vpop.eup %1038 }
 0x2e7   : > { %v514_v25 = vsel %vm507_vm4, %v1039_v24, 0.0 }
 0x2e8   : > { %515 = vadd.xlane.f32.xlu1 %v514_v25 }
 0x2ea   : > { %v1041_v26 = vpop.eup %1040 }
 0x2eb   : > { %v660_v27 = vsel %vm507_vm4, %v1041_v26, 0.0  ;;  %v1043_v28 = vpop.eup %1042 }
 0x2ec   : > { %661 = vadd.xlane.f32.xlu0 %v660_v27  ;;  %v734_v29 = vsel %vm507_vm4, %v1043_v28, 0.0 }
 0x2f0   : > { %735 = vadd.xlane.f32.xlu0 %v734_v29 }
 0x2f9   : > { %546 = vrot.lane.b32.xlu1 %v1180_v16, %s1069_s9 }
 0x2fd   : > { %740 = vrot.lane.b32.xlu1 %v1180_v16, %s1070_s10 }
 0x306   : > { %666 = vrot.lane.b32.xlu0 %v1180_v16, %s1071_s11 }
 0x371   : > { %v541_v30 = vpop.xlane.xlu0 %540 }
 0x372   : > { %1044 = vrcp.f32 %v541_v30 }
 0x375   : > { %v516_v31 = vpop.xlane.xlu1 %515 }
 0x376   : > { %1046 = vrcp.f32 %v516_v31 }
 0x379   : > { %v547_v32 = vpop.permute.xlu1 %546  ;;  %v662_v36 = vpop.xlane.xlu0 %661 }
 0x37a   : > { %v553_v33 = vsel %vm551_vm8, %v547_v32, 0  ;;  %1048 = vrcp.f32 %v662_v36 }
 0x37b   : > { %968 = vmatpush3.bf16.msra.mxu1 %v553_v33 }
 0x37c   : > { %v1045_v34 = vpop.eup %1044  ;;  %973 = vmatprep.subr.bf16.mxu1 %v1062_v1 }
 0x37d   : > { %v543_v35 = vmul.f32 %v1045_v34, %v1037_v22  ;;  %v736_v40 = vpop.xlane.xlu0 %735  ;;  %v741_v46 = vpop.permute.xlu1 %740 }
 0x37e   : > { %1050 = vrcp.f32 %v736_v40  ;;  %v746_v48 = vsel %vm551_vm8, %v741_v46, 0 }
 0x37f   : > { %v544_v37 = vpack.c.bf16 %v543_v35, %v543_v35 }
 0x380   : > { %v1047_v39 = vpop.eup %1046 }
 0x381   : > { %970 = vmatmul.mubr.msk.bf16.vlgmr.msra.gmra.mrb[4].mxu1 %vm507_vm4, %v544_v37  ;;  %v518_v41 = vmul.f32 %v1047_v39, %v1039_v24  ;;  %v667_v42 = vpop.permute.xlu0 %666 }
 0x382   : > { %974 = vmatpush3.bf16.msra.mxu1 %v599_v38  ;;  %975 = vmatprep.mubr.msk.bf16.mxu1 %vm1063_vm0, %v1062_v1  ;;  %v672_v44 = vsel %vm551_vm8, %v667_v42, 0 }
 0x383   : > { %979 = vmatprep.subr.bf16.mxu1 %v1062_v1  ;;  %v519_v43 = vpack.c.bf16 %v518_v41, %v518_v41 }
 0x384   : > { %v1049_v16 = vpop.eup %1048 }
 0x385   : > { %v664_v45 = vmul.f32 %v1049_v16, %v1041_v26 }
 0x387   : > { %v665_v47 = vpack.c.bf16 %v664_v45, %v664_v45 }
 0x388   : > { %v1051_v49 = vpop.eup %1050 }
 0x389   : > { %v738_v50 = vmul.f32 %v1051_v49, %v1043_v28 }
 0x38b   : > { %v739_v51 = vpack.c.bf16 %v738_v50, %v738_v50 }
 0x38d   : > { %976 = vmatmul.mubr.msk.bf16.vlgmr.msra.gmra.mrb[4].mxu1 %vm507_vm4, %v519_v43 }
 0x38e   : > { %980 = vmatpush3.bf16.msra.mxu1 %v672_v44  ;;  %981 = vmatprep.mubr.msk.bf16.mxu1 %vm1063_vm0, %v1062_v1 }
 0x38f   : > { %985 = vmatprep.subr.bf16.mxu1 %v1062_v1 }
 0x399   : > { %982 = vmatmul.mubr.msk.bf16.vlgmr.msra.gmra.mrb[4].mxu1 %vm507_vm4, %v665_v47 }
 0x39a   : > { %986 = vmatpush3.bf16.msra.mxu1 %v746_v48  ;;  %987 = vmatprep.mubr.msk.bf16.mxu1 %vm1063_vm0, %v1062_v1 }
 0x3a5   : > { %988 = vmatmul.mubr.msk.bf16.vlgmr.msra.gmra.mrb[4].mxu1 %vm507_vm4, %v739_v51 }
 0x478   : > { %v782_v52 = vpop.f32.mrb[4].mxu1 }
 0x479   : > { %v789_v54 = vmul.f32 0.25, %v782_v52  ;;  %v989_v55 = vpop.f32.mrb[5].mxu1 }
 0x47a   : > { %v785_v56 = vpop.f32.mrb[6].mxu1 }
 0x47b   : > { %v797_v57 = vadd.f32 %v906_v53, %v789_v54  ;;  %v990_v58 = vpop.f32.mrb[7].mxu1 }
 0x47d   : > { %v798_v59 = vadd.f32 %v797_v57, %v1142_v3  ;;  %v907_v3 = vld [vmem:[%s1245_s5] ss:$0 sm:$0xff] }
 0x47f   : > { %v799_v60 = vsel %vm293_vm1, %v798_v59, 0.0 }
 0x480   : > { %800 = vadd.xlane.f32.xlu1 %v799_v60 }
 0x50d   : > { %v801_v1 = vpop.xlane.xlu1 %800 }
 0x50e   : > { %v803_v61 = vmul.f32 0.03125, %v801_v1 }
 0x510   : > { %v804_v62 = vsub.f32 %v798_v59, %v803_v61 }
 0x512   : > { %v805_v63 = vmul.f32 %v804_v62, %v804_v62 }
 0x514   : > { %v806_v0 = vsel %vm293_vm1, %v805_v63, 0.0 }
 0x515   : > { %807 = vadd.xlane.f32.xlu0 %v806_v0 }
 0x5a2   : > { %v808_v2 = vpop.xlane.xlu0 %807 }
 0x5a3   : > { %v809_v4 = vmul.f32 0.03125, %v808_v2 }
 0x5a5   : > { %v810_v5 = vadd.f32 1e-05, %v809_v4 }
 0x5a7   : > { %1052 = vrsqrt.f32 %v810_v5 }
 0x5b1   : > { %v1053_v6 = vpop.eup %1052 }
 0x5b2   : > { %v812_v7 = vmul.f32 %v1053_v6, %v804_v62 }
 0x5b4   : > { %v820_v9 = vmul.f32 %v907_v3, %v812_v7 }
 0x5b6   : > { %v828_v10 = vadd.f32 %v908_v8, %v820_v9 }
 0x5b8   : > { %829 = vst.msk [vmem:[%s273_s20] sm:$0xff] %vm293_vm1, %v828_v10 }
 0x5b9 PF: > { %s17_s24 = sadd.s32 1, %s1060_s24  }
 0x5ba   : > { %p14_p4 = scmp.ge.s32.totalorder %s17_s24, 4  }
 0x5bc   :  { %16 = sbr.rel (!%p14_p4) target bundleno = 1 (0x1), region = 78 }

// kernel: model_forward.16
= control target key start
LH: loop header
LB: loop body
LE: loop exit
PB: predicated region body
PF: predicated region fallthrough
CT: control target
= control target key end

     0   :  { %v267_v0 = vmov 0.0   ;;  %vm268_vm0 = vmmov 0   ;;  %vm52_vm1 = vcmask 261120   ;;  %vm137_vm2 = vcmask 523264   ;;  %s349_s1 = inlined_call_operand.vmem [shape: bf16[32,64], index: 1, kind: input, shape index: {}]   ;;  %s350_s0 = inlined_call_operand.vmem [shape: f32[8,32], index: 0, kind: input, shape index: {}]   ;;  %s351_s3 = inlined_call_operand.vmem [shape: bf16[64,32], index: 3, kind: input, shape index: {}]   ;;  %s352_s2 = inlined_call_operand.vmem [shape: f32[1,64], index: 2, kind: input, shape index: {}]   ;;  %s353_s4 = inlined_call_operand.vmem [shape: f32[1,32], index: 4, kind: input, shape index: {}, may-alias: {4,6}]   ;;  %s354_s5 = inlined_call_operand.vmem [shape: f32[1,32], index: 5, kind: input, shape index: {}]   ;;  %s355_s6 = inlined_call_operand.vmem [shape: f32[1,32], index: 6, kind: input, shape index: {}, may-alias: {4,6}]   ;;  %s356_s7 = inlined_call_operand.vmem [shape: f32[8,32], index: 7, kind: output, shape index: {}]  }
   0x1   :  { %237 = vmatprep.subr.bf16.mxu0 %v267_v0  ;;  %v259_v1 = vld [vmem:[%s349_s1] sm:$0xff]   ;;  %241 = vmatprep.mubr.msk.bf16.mxu0 %vm268_vm0, %v267_v0  ;;  %v260_v2 = vld [vmem:[%s349_s1 + $0x8] sm:$0xff]   ;;  %v263_v7 = vld [vmem:[%s351_s3 + $0x10] sm:$0xff]  }
   0x2   :  { %245 = vmatprep.subr.bf16.mxu1 %v267_v0  ;;  %253 = vmatprep.mubr.msk.bf16.mxu1 %vm268_vm0, %v267_v0  ;;  %v27_v3 = vld [vmem:[%s350_s0] sm:$0xff]  ;;  %v262_v5 = vld [vmem:[%s351_s3 + $0x8] sm:$0xff]   ;;  %v264_v8 = vld [vmem:[%s351_s3 + $0x18] sm:$0xff]  }
   0x3   :  { %238 = vmatpush3.bf16.msra.mxu0 %v259_v1  ;;  %v261_v4 = vld [vmem:[%s351_s3] sm:$0xff]   ;;  %v28_v6 = vpack.c.bf16 %v27_v3, %v27_v3 }
   0x4   :  { %239 = vmatprep.subr.bf16.mxu0 %v267_v0  ;;  %246 = vmatpush3.bf16.msra.mxu1 %v261_v4  ;;  %v217_v9 = vld [vmem:[%s352_s2] ss:$0 sm:$0xff] }
   0x5   :  { %247 = vmatprep.subr.bf16.mxu1 %v267_v0  ;;  %v221_v17 = vld [vmem:[%s353_s4] ss:$0 sm:$0xff] }
   0x6   :  { %v227_v34 = vld [vmem:[%s354_s5] ss:$0 sm:$0xff] }
   0x7   :  { %240 = vmatpush3.bf16.msra.mxu0 %v260_v2  ;;  %v228_v36 = vld [vmem:[%s355_s6] ss:$0 sm:$0xff] }
   0x8   :  { %248 = vmatpush3.bf16.msra.mxu1 %v262_v5 }
   0x9   :  { %249 = vmatprep.subr.bf16.mxu1 %v267_v0 }
   0xa   :  { %242 = vmatmul.mubr.msk.bf16.vlgmr.msra.gmra.mrb[0].mxu0 %vm52_vm1, %v28_v6 }
   0xc   :  { %250 = vmatpush3.bf16.msra.mxu1 %v263_v7 }
   0xd   :  { %251 = vmatprep.subr.bf16.mxu1 %v267_v0 }
  0x10   :  { %252 = vmatpush3.bf16.msra.mxu1 %v264_v8 }
  0xdd   :  { %v90_v10 = vpop.f32.mrb[0].mxu0 }
  0xde   :  { %v91_v11 = vadd.f32 %v217_v9, %v90_v10  ;;  %v243_v12 = vpop.f32.mrb[1].mxu0 }
  0xdf   :  { %v93_v13 = vpop.f32.mrb[2].mxu0 }
  0xe0   :  { %v96_v14 = vmax.f32 %v91_v11, 0.0  ;;  %v244_v15 = vpop.f32.mrb[3].mxu0 }
  0xe2   :  { %v97_v16 = vpack.c.bf16 %v96_v14, %v96_v14 }
  0xe4   :  { %254 = vmatmul.mubr.msk.bf16.vlgmr.msra.gmra.mrb[0].mxu1 %vm137_vm2, %v97_v16 }
 0x1b7   :  { %v175_v18 = vpop.f32.mrb[0].mxu1 }
 0x1b8   :  { %v176_v19 = vadd.f32 %v221_v17, %v175_v18  ;;  %v255_v20 = vpop.f32.mrb[1].mxu1 }
 0x1b9   :  { %v178_v21 = vpop.f32.mrb[2].mxu1 }
 0x1ba   :  { %v256_v22 = vpop.f32.mrb[3].mxu1  ;;  %v181_v23 = vadd.f32 %v176_v19, %v27_v3 }
 0x1bc   :  { %v182_v24 = vsel %vm52_vm1, %v181_v23, 0.0 }
 0x1bd   :  { %183 = vadd.xlane.f32.xlu0 %v182_v24 }
 0x24a   :  { %v184_v25 = vpop.xlane.xlu0 %183 }
 0x24b   :  { %v186_v26 = vmul.f32 0.03125, %v184_v25 }
 0x24d   :  { %v187_v27 = vsub.f32 %v181_v23, %v186_v26 }
 0x24f   :  { %v188_v28 = vmul.f32 %v187_v27, %v187_v27 }
 0x251   :  { %v189_v29 = vsel %vm52_vm1, %v188_v28, 0.0 }
 0x252   :  { %190 = vadd.xlane.f32.xlu0 %v189_v29 }
 0x2df   :  { %v191_v30 = vpop.xlane.xlu0 %190 }
 0x2e0   :  { %v192_v31 = vmul.f32 0.03125, %v191_v30 }
 0x2e2   :  { %v193_v32 = vadd.f32 1e-05, %v192_v31 }
 0x2e4   :  { %265 = vrsqrt.f32 %v193_v32 }
 0x2ee   :  { %v266_v33 = vpop.eup %265 }
 0x2ef   :  { %v195_v35 = vmul.f32 %v266_v33, %v187_v27 }
 0x2f1   :  { %v203_v37 = vmul.f32 %v227_v34, %v195_v35 }
 0x2f3   :  { %v211_v38 = vadd.f32 %v228_v36, %v203_v37 }
 0x2f5   :  { %212 = vst.msk [vmem:[%s356_s7] sm:$0xff] %vm52_vm1, %v211_v38 }

// kernel: model_forward.21
= control target key start
LH: loop header
LB: loop body
LE: loop exit
PB: predicated region body
PF: predicated region fallthrough
CT: control target
= control target key end

     0   :  { %v281_v0 = vmov 0.0   ;;  %vm20_vm0 = vcmask 261120   ;;  %vm282_vm1 = vmmov 0   ;;  %vm113_vm2 = vcmask 31744   ;;  %s332_s1 = inlined_call_operand.vmem [shape: f32[2,4,32], index: 1, kind: input, shape index: {}]   ;;  %s333_s0 = inlined_call_operand.vmem [shape: f32[2,8,32], index: 0, kind: input, shape index: {}]   ;;  %s334_s2 = inlined_call_operand.vmem [shape: f32[2,8,32], index: 2, kind: output, shape index: {}]  }
   0x1   :  { %247 = vmatprep.subr.bf16.mxu0 %v281_v0  ;;  %v16_v1 = vld [vmem:[%s332_s1] sm:$0xf]  ;;  %253 = vmatprep.subr.bf16.mxu1 %v281_v0  ;;  %v17_v2 = vld [vmem:[%s332_s1 + $0x4] sm:$0xf]  ;;  %v13_v8 = vld [vmem:[%s333_s0 + $0x8] sm:$0xff]  ;;  %vm141_vm3 = vcmask 1041408  }
   0x2   :  { %v18_v3 = vpack.c.bf16 %v16_v1, %v16_v1  ;;  %v19_v4 = vpack.c.bf16 %v17_v2, %v17_v2  ;;  %249 = vmatprep.mubr.msk.bf16.mxu0 %vm282_vm1, %v281_v0  ;;  %255 = vmatprep.mubr.msk.bf16.mxu1 %vm282_vm1, %v281_v0  ;;  %v12_v7 = vld [vmem:[%s333_s0] sm:$0xff]  ;;  %v15_v10 = vpack.c.bf16 %v13_v8, %v13_v8 }
   0x3   :  { %v14_v9 = vpack.c.bf16 %v12_v7, %v12_v7 }
   0x4   :  { %v25_v5 = vsel %vm20_vm0, %v18_v3, 0  ;;  %v71_v6 = vsel %vm20_vm0, %v19_v4, 0  ;;  %v142_v31 = vsel %vm141_vm3, %v18_v3, 0  ;;  %v187_v32 = vsel %vm141_vm3, %v19_v4, 0 }
   0x5   :  { %248 = vmatpush3.bf16.xpose.msra.mxu0 %v25_v5  ;;  %254 = vmatpush3.bf16.xpose.msra.mxu1 %v71_v6 }
   0x6   :  { %259 = vmatprep.subr.bf16.mxu0 %v281_v0  ;;  %265 = vmatprep.subr.bf16.mxu1 %v281_v0 }
   0xc   :  { %250 = vmatmul.mubr.msk.bf16.vlgmr.msra.gmra.mrb[0].mxu0 %vm20_vm0, %v14_v9  ;;  %256 = vmatmul.mubr.msk.bf16.vlgmr.msra.gmra.mrb[0].mxu1 %vm20_vm0, %v15_v10 }
   0xd   :  { %261 = vmatprep.mubr.msk.bf16.mxu0 %vm282_vm1, %v281_v0  ;;  %267 = vmatprep.mubr.msk.bf16.mxu1 %vm282_vm1, %v281_v0 }
   0xe   :  { %260 = vmatpush3.bf16.msra.mxu0 %v142_v31  ;;  %266 = vmatpush3.bf16.msra.mxu1 %v187_v32 }
  0xdf   :  { %v61_v11 = vpop.f32.mrb[0].mxu0  ;;  %v107_v12 = vpop.f32.mrb[0].mxu1 }
  0xe0   :  { %v251_v13 = vpop.f32.mrb[1].mxu0  ;;  %v257_v14 = vpop.f32.mrb[1].mxu1  ;;  %v114_v15 = vsel %vm113_vm2, %v61_v11, -inf  ;;  %v117_v20 = vsel %vm113_vm2, %v107_v12, -inf }
  0xe1   :  { %115 = vmax.xlane.f32.xlu0 %v114_v15  ;;  %v64_v16 = vpop.f32.mrb[2].mxu0  ;;  %v110_v17 = vpop.f32.mrb[2].mxu1 }
  0xe2   :  { %v252_v18 = vpop.f32.mrb[3].mxu0  ;;  %v258_v19 = vpop.f32.mrb[3].mxu1 }
  0xe5   :  { %118 = vmax.xlane.f32.xlu0 %v117_v20 }
 0x16e   :  { %v116_v21 = vpop.xlane.xlu0 %115 }
 0x16f   :  { %v120_v22 = vsub.f32 %v61_v11, %v116_v21 }
 0x171   :  { %v122_v23 = vmul.f32 1.442695, %v120_v22 }
 0x172   :  { %v119_v24 = vpop.xlane.xlu0 %118 }
 0x173   :  { %273 = vpow2.f32 %v122_v23  ;;  %v121_v25 = vsub.f32 %v107_v12, %v119_v24 }
 0x175   :  { %v124_v26 = vmul.f32 1.442695, %v121_v25 }
 0x177   :  { %275 = vpow2.f32 %v124_v26 }
 0x17d   :  { %v274_v27 = vpop.eup %273 }
 0x17e   :  { %v126_v28 = vsel %vm113_vm2, %v274_v27, 0.0 }
 0x17f   :  { %127 = vadd.xlane.f32.xlu1 %v126_v28 }
 0x181   :  { %v276_v29 = vpop.eup %275 }
 0x182   :  { %v129_v30 = vsel %vm113_vm2, %v276_v29, 0.0 }
 0x183   :  { %130 = vadd.xlane.f32.xlu1 %v129_v30 }
 0x20c   :  { %v128_v33 = vpop.xlane.xlu1 %127 }
 0x20d   :  { %277 = vrcp.f32 %v128_v33 }
 0x210   :  { %v131_v34 = vpop.xlane.xlu1 %130 }
 0x211   :  { %279 = vrcp.f32 %v131_v34 }
 0x217   :  { %v278_v35 = vpop.eup %277 }
 0x218   :  { %v134_v36 = vmul.f32 %v278_v35, %v274_v27 }
 0x21a   :  { %v136_v37 = vpack.c.bf16 %v134_v36, %v134_v36 }
 0x21b   :  { %v280_v38 = vpop.eup %279 }
 0x21c   :  { %v135_v39 = vmul.f32 %v280_v38, %v276_v29  ;;  %262 = vmatmul.mubr.msk.bf16.vlgmr.msra.gmra.mrb[4].mxu0 %vm113_vm2, %v136_v37 }
 0x21e   :  { %v137_v40 = vpack.c.bf16 %v135_v39, %v135_v39 }
 0x220   :  { %268 = vmatmul.mubr.msk.bf16.vlgmr.msra.gmra.mrb[4].mxu1 %vm113_vm2, %v137_v40 }
 0x2ef   :  { %v178_v41 = vpop.f32.mrb[4].mxu0 }
 0x2f0   :  { %229 = vst.msk [vmem:[%s334_s2] sm:$0xff] %vm20_vm0, %v178_v41  ;;  %v263_v42 = vpop.f32.mrb[5].mxu0 }
 0x2f1   :  { %v181_v43 = vpop.f32.mrb[6].mxu0 }
 0x2f2   :  { %v264_v44 = vpop.f32.mrb[7].mxu0 }
 0x2f3   :  { %v223_v45 = vpop.f32.mrb[4].mxu1 }
 0x2f4   :  { %230 = vst.msk [vmem:[%s334_s2 + $0x8] sm:$0xff] %vm20_vm0, %v223_v45  ;;  %v269_v46 = vpop.f32.mrb[5].mxu1 }
 0x2f5   :  { %v226_v47 = vpop.f32.mrb[6].mxu1 }
 0x2f6   :  { %v270_v48 = vpop.f32.mrb[7].mxu1 }

// kernel: model_forward.15
= control target key start
LH: loop header
LB: loop body
LE: loop exit
PB: predicated region body
PF: predicated region fallthrough
CT: control target
= control target key end

     0   :  { %s1035_s24 = smov 0   ;;  %s1142_s0 = inlined_call_operand.vmem [shape: f32[2,4,32], index: 0, kind: input, shape index: {}]   ;;  %s1143_s1 = inlined_call_operand.vmem [shape: bf16[32,32], index: 1, kind: input, shape index: {}]   ;;  %s1144_s2 = inlined_call_operand.vmem [shape: bf16[4,32], index: 2, kind: input, shape index: {}]   ;;  %s1145_s3 = inlined_call_operand.vmem [shape: bf16[32,4], index: 3, kind: input, shape index: {}]   ;;  %s1146_s4 = inlined_call_operand.vmem [shape: f32[1,32], index: 4, kind: input, shape index: {}, may-alias: {4,6}]   ;;  %s1147_s5 = inlined_call_operand.vmem [shape: f32[1,32], index: 5, kind: input, shape index: {}]   ;;  %s1148_s6 = inlined_call_operand.vmem [shape: f32[1,32], index: 6, kind: input, shape index: {}, may-alias: {4,6}]   ;;  %s1149_s7 = inlined_call_operand.vmem [shape: f32[2,4,32], index: 7, kind: output, shape index: {}]  }
   0x1 LB: > { %s843_s25 = sadd.s32 4294967295, %s981_s24   ;;  %p847_p0 = scmp.ge.s32.totalorder %s981_s24, 1  ;;  %s981_s24 = sphi %s1035_s24, %s17_s24  }
   0x2   : > { %p236_p1 = scmp.lt.s32.totalorder %s981_s24, 3 }
   0x4   : > { %p237_p2 = pnand %p847_p0, %p236_p1 }
   0x5   : > { %v953_v0 = vld [vmem:[%s1143_s1] sm:$0xff] (!%p237_p2)   ;;  %v983_v1 = vmov (!%p237_p2), 0.0   ;;  %v954_v2 = vld [vmem:[%s1143_s1 + $0x8] sm:$0xff] (!%p237_p2)   ;;  %vm984_vm0 = vmmov (!%p237_p2), 0   ;;  %p266_p3 = scmp.lt.s32.totalorder (!%p237_p2), %s843_s25, 1  ;;  %vm293_vm1 = vcmask (!%p237_p2), 261120   ;;  %v446_v27 = vlaneseq (!%p237_p2) }
   0x6   : > { %240 = sbr.rel (%p237_p2) target bundleno = 1598 (0x63e), region = 48  ;;  %882 = vmatprep.subr.bf16.mxu0 (!%p237_p2), %v983_v1  ;;  %890 = vmatprep.subr.bf16.mxu1 (!%p237_p2), %v983_v1  ;;  %v955_v4 = vld [vmem:[%s1145_s3] sm:$0xff] (!%p237_p2)   ;;  %v956_v6 = vld [vmem:[%s1145_s3 + $0x8] sm:$0xff] (!%p237_p2)   ;;  %v985_v7 = vmov (!%p237_p2), 2   ;;  %v986_v8 = vmov (!%p237_p2), 0   ;;  %vm471_vm2 = vcmask (!%p237_p2), 1041408  }
   0x7   : > { %883 = vmatpush3.bf16.msra.mxu0 (!%p237_p2), %v953_v0  ;;  %886 = vmatprep.mubr.msk.bf16.mxu0 (!%p237_p2), %vm984_vm0, %v983_v1  ;;  %v338_v15 = vld [vmem:[%s1144_s2] sm:$0x3] (!%p237_p2)  ;;  %v987_v21 = vmov (!%p237_p2), 3   ;;  %v988_v22 = vmov (!%p237_p2), 1   ;;  %v447_v28 = vshrl.u32 (!%p237_p2), %v446_v27, 7  ;;  %vm454_vm4 = vcmask (!%p237_p2), 27648  }
   0x8   : > { %884 = vmatprep.subr.bf16.mxu0 (!%p237_p2), %v983_v1  ;;  %892 = vmatprep.mubr.msk.bf16.mxu1 (!%p237_p2), %vm984_vm0, %v983_v1  ;;  %s989_s17 = smov (!%p237_p2), 112   ;;  %s990_s18 = smov (!%p237_p2), 120   ;;  %vm467_vm8 = vcmask (!%p237_p2), 31744   ;;  %vm743_vm9 = vcmask (!%p237_p2), 64512   ;;  %vm745_vm10 = vcmask (!%p237_p2), 130048   ;;  %vm747_vm11 = vcmask (!%p237_p2), 195584  }
   0x9   : > { %950 = vset.pattern.permute.xlu1 (!%p237_p2), %v985_v7  ;;  %948 = vset.pattern.permute.xlu0 (!%p237_p2), %v986_v8  ;;  %v448_v29 = vsub.s32 (!%p237_p2), 0, %v447_v28  ;;  %v593_v30 = vsub.s32 (!%p237_p2), 2, %v447_v28  ;;  %v665_v32 = vsub.s32 (!%p237_p2), 3, %v447_v28  ;;  %v520_v33 = vsub.s32 (!%p237_p2), 1, %v447_v28  ;;  %s991_s19 = smov (!%p237_p2), 104   ;;  %s992_s20 = smov (!%p237_p2), 8  }
   0xa   : > { %s993_s21 = smov (!%p237_p2), 16   ;;  %s994_s22 = smov (!%p237_p2), 24   ;;  %vm758_vm12 = vcmask (!%p237_p2), 257024  }
   0xb   : > { %885 = vmatpush3.bf16.msra.mxu0 (!%p237_p2), %v954_v2 }
   0xc   : > { %896 = vmatprep.subr.bf16.mxu0 (!%p237_p2), %v983_v1 }
   0xd   : > { %s1151_s25 = smov (!%p266_p3, %s843_s25), 1 }
   0xe   : > { %s848_s30 = sshll.u32 %s1151_s25, 2 }
   0xf   : > { %s269_s10 = scalar_lea.vmem %s1142_s0, %s848_s30  ;;  %s273_s11 = scalar_lea.vmem %s1149_s7, %s848_s30 }
  0x10   : > { %v1065_v3 = vld [vmem:[%s269_s10] sm:$0xf] }
  0x11   : > { %v276_v5 = vpack.c.bf16 %v1065_v3, %v1065_v3 }
  0x13   : > { %887 = vmatmul.mubr.msk.bf16.vlgmr.msra.gmra.mrb[0].mxu0 %vm293_vm1, %v276_v5 }
  0x14   : > { %897 = vmatpush3.bf16.msra.mxu0 %v955_v4  ;;  %900 = vmatprep.mubr.msk.bf16.mxu0 %vm984_vm0, %v983_v1 }
  0x15   : > { %898 = vmatprep.subr.bf16.mxu0 %v983_v1 }
  0x18   : > { %899 = vmatpush3.bf16.msra.mxu0 %v956_v6 }
  0x19   : > { %910 = vmatprep.subr.bf16.mxu0 %v983_v1 }
  0xe6   : > { %v331_v9 = vpop.f32.mrb[0].mxu0 }
  0xe7   : > { %v1080_v10 = vpack.c.bf16 %v331_v9, %v331_v9  ;;  %v888_v11 = vpop.f32.mrb[1].mxu0 }
  0xe8   : > { %v334_v12 = vpop.f32.mrb[2].mxu0 }
  0xe9   : > { %v889_v13 = vpop.f32.mrb[3].mxu0  ;;  %901 = vmatmul.mubr.msk.bf16.vlgmr.msra.gmra.mrb[4].mxu0 %vm293_vm1, %v1080_v10  ;;  %v343_v14 = vsel %vm293_vm1, %v1080_v10, 0  ;;  %v472_v16 = vsel %vm471_vm2, %v1080_v10, 0 }
  0xea   : > { %891 = vmatpush3.bf16.xpose.msra.mxu1 %v343_v14  ;;  %912 = vmatprep.mubr.msk.bf16.mxu0 %vm984_vm0, %v983_v1 }
  0xeb   : > { %904 = vmatprep.subr.bf16.mxu1 %v983_v1 }
  0xf1   : > { %893 = vmatmul.mubr.msk.bf16.vlgmr.msra.gmra.mrb[0].mxu1 %vm293_vm1, %v338_v15 }
  0xf2   : > { %905 = vmatpush3.bf16.msra.mxu1 %v472_v16  ;;  %906 = vmatprep.mubr.msk.bf16.mxu1 %vm984_vm0, %v983_v1 }
  0xf3   : > { %916 = vmatprep.subr.bf16.mxu1 %v983_v1 }
 0x1bc   : > { %v435_v17 = vpop.f32.mrb[4].mxu0 }
 0x1bd   : > { %588 = vperm.xlu1 %950, %v435_v17   ;;  %443 = vperm.xlu0 %948, %v435_v17   ;;  %v902_v18 = vpop.f32.mrb[5].mxu0 }
 0x1be   : > { %v438_v19 = vpop.f32.mrb[6].mxu0 }
 0x1bf   : > { %v903_v20 = vpop.f32.mrb[7].mxu0 }
 0x1c1   : > { %951 = vset.pattern.permute.xlu1 %v987_v21  ;;  %949 = vset.pattern.permute.xlu0 %v988_v22 }
 0x1c2   : > { %660 = vperm.xlu1 %951, %v435_v17   ;;  %515 = vperm.xlu0 %949, %v435_v17  }
 0x1c4   : > { %v379_v23 = vpop.f32.mrb[0].mxu1 }
 0x1c5   : > { %v894_v24 = vpop.f32.mrb[1].mxu1  ;;  %v449_v31 = vrot.slane %v379_v23, %v448_v29  ;;  %v594_v34 = vrot.slane %v379_v23, %v593_v30  ;;  %v666_v38 = vrot.slane %v379_v23, %v665_v32  ;;  %v521_v39 = vrot.slane %v379_v23, %v520_v33 }
 0x1c6   : > { %v382_v25 = vpop.f32.mrb[2].mxu1  ;;  %952 = vset.pattern.permute.xlu0 %v987_v21 }
 0x1c7   : > { %v895_v26 = vpop.f32.mrb[3].mxu1 }
 0x23c   : > { %v589_v35 = vpop.permute.xlu1 %588  ;;  %v444_v36 = vpop.permute.xlu0 %443 }
 0x23d   : > { %v450_v37 = vadd.f32 %v449_v31, %v444_v36  ;;  %v595_v40 = vadd.f32 %v594_v34, %v589_v35 }
 0x23f   : > { %v452_v41 = vmul.f32 0.2, %v450_v37  ;;  %vm451_vm3 = vcmp.gt.f32.partialorder %v450_v37, 0.0  ;;  %v597_v48 = vmul.f32 0.2, %v595_v40  ;;  %vm596_vm7 = vcmp.gt.f32.partialorder %v595_v40, 0.0 }
 0x241   : > { %v661_v42 = vpop.permute.xlu1 %660  ;;  %v516_v43 = vpop.permute.xlu0 %515  ;;  %v453_v44 = vsel %vm451_vm3, %v450_v37, %v452_v41  ;;  %v598_v55 = vsel %vm596_vm7, %v595_v40, %v597_v48 }
 0x242   : > { %v667_v45 = vadd.f32 %v666_v38, %v661_v42  ;;  %v522_v46 = vadd.f32 %v521_v39, %v516_v43  ;;  %v455_v47 = vsel %vm454_vm4, %v453_v44, -inf  ;;  %v599_v56 = vsel %vm454_vm4, %v598_v55, -inf }
 0x243   : > { %456 = vmax.xlane.f32.xlu1 %v455_v47 }
 0x244   : > { %v669_v49 = vmul.f32 0.2, %v667_v45  ;;  %v524_v50 = vmul.f32 0.2, %v522_v46  ;;  %vm668_vm5 = vcmp.gt.f32.partialorder %v667_v45, 0.0  ;;  %vm523_vm6 = vcmp.gt.f32.partialorder %v522_v46, 0.0 }
 0x246   : > { %v670_v51 = vsel %vm668_vm5, %v667_v45, %v669_v49  ;;  %v525_v52 = vsel %vm523_vm6, %v522_v46, %v524_v50 }
 0x247   : > { %v671_v53 = vsel %vm454_vm4, %v670_v51, -inf  ;;  %v526_v54 = vsel %vm454_vm4, %v525_v52, -inf }
 0x248   : > { %672 = vmax.xlane.f32.xlu1 %v671_v53  ;;  %527 = vmax.xlane.f32.xlu0 %v526_v54 }
 0x24c   : > { %600 = vmax.xlane.f32.xlu0 %v599_v56 }
 0x2d0   : > { %v457_v57 = vpop.xlane.xlu1 %456 }
 0x2d1   : > { %v458_v58 = vsub.f32 %v453_v44, %v457_v57 }
 0x2d3   : > { %v459_v59 = vmul.f32 1.442695, %v458_v58 }
 0x2d5   : > { %957 = vpow2.f32 %v459_v59  ;;  %v528_v60 = vpop.xlane.xlu0 %527  ;;  %v673_v11 = vpop.xlane.xlu1 %672 }
 0x2d6   : > { %v529_v61 = vsub.f32 %v525_v52, %v528_v60  ;;  %v674_v12 = vsub.f32 %v670_v51, %v673_v11  ;;  %v863_v11 = vld [vmem:[%s1148_s6] ss:$0 sm:$0xff] }
 0x2d8   : > { %v530_v62 = vmul.f32 1.442695, %v529_v61  ;;  %v675_v13 = vmul.f32 1.442695, %v674_v12 }
 0x2d9   : > { %v601_v63 = vpop.xlane.xlu0 %600 }
 0x2da   : > { %v602_v0 = vsub.f32 %v598_v55, %v601_v63  ;;  %959 = vpow2.f32 %v530_v62  ;;  %v861_v55 = vld [vmem:[%s1146_s4] ss:$0 sm:$0xff] }
 0x2dc   : > { %v603_v2 = vmul.f32 1.442695, %v602_v0 }
 0x2de   : > { %961 = vpow2.f32 %v603_v2 }
 0x2df   : > { %v958_v4 = vpop.eup %957  ;;  %963 = vpow2.f32 %v675_v13 }
 0x2e0   : > { %v461_v5 = vsel %vm454_vm4, %v958_v4, 0.0 }
 0x2e1   : > { %462 = vadd.xlane.f32.xlu0 %v461_v5 }
 0x2e4   : > { %v960_v6 = vpop.eup %959 }
 0x2e5   : > { %v532_v7 = vsel %vm454_vm4, %v960_v6, 0.0 }
 0x2e6   : > { %533 = vadd.xlane.f32.xlu1 %v532_v7 }
 0x2e8   : > { %v962_v8 = vpop.eup %961 }
 0x2e9   : > { %v605_v9 = vsel %vm454_vm4, %v962_v8, 0.0  ;;  %v964_v14 = vpop.eup %963 }
 0x2ea   : > { %606 = vadd.xlane.f32.xlu0 %v605_v9  ;;  %v677_v15 = vsel %vm454_vm4, %v964_v14, 0.0 }
 0x2f7   : > { %611 = vrot.lane.b32.xlu1 %v1080_v10, %s989_s17 }
 0x300   : > { %539 = vrot.lane.b32.xlu0 %v1080_v10, %s990_s18 }
 0x31b   : > { %678 = vadd.xlane.f32.xlu1 %v677_v15 }
 0x32c   : > { %683 = vrot.lane.b32.xlu1 %v1080_v10, %s991_s19 }
 0x36e   : > { %v463_v16 = vpop.xlane.xlu0 %462 }
 0x36f   : > { %965 = vrcp.f32 %v463_v16 }
 0x373   : > { %v534_v17 = vpop.xlane.xlu1 %533 }
 0x374   : > { %967 = vrcp.f32 %v534_v17 }
 0x377   : > { %v607_v18 = vpop.xlane.xlu0 %606  ;;  %v612_v21 = vpop.permute.xlu1 %611 }
 0x378   : > { %969 = vrcp.f32 %v607_v18  ;;  %v617_v25 = vsel %vm471_vm2, %v612_v21, 0 }
 0x379   : > { %v966_v19 = vpop.eup %965 }
 0x37a   : > { %v465_v20 = vmul.f32 %v966_v19, %v958_v4 }
 0x37b   : > { %v540_v22 = vpop.permute.xlu0 %539 }
 0x37c   : > { %v545_v23 = vsel %vm471_vm2, %v540_v22, 0  ;;  %v466_v24 = vpack.c.bf16 %v465_v20, %v465_v20 }
 0x37d   : > { %911 = vmatpush3.bf16.msra.mxu0 %v545_v23 }
 0x37e   : > { %907 = vmatmul.mubr.msk.bf16.vlgmr.msra.gmra.mrb[4].mxu1 %vm467_vm8, %v466_v24  ;;  %922 = vmatprep.subr.bf16.mxu0 %v983_v1  ;;  %v968_v10 = vpop.eup %967 }
 0x37f   : > { %917 = vmatpush3.bf16.msra.mxu1 %v617_v25  ;;  %918 = vmatprep.mubr.msk.bf16.mxu1 %vm984_vm0, %v983_v1  ;;  %v536_v26 = vmul.f32 %v968_v10, %v960_v6 }
 0x381   : > { %v537_v28 = vpack.c.bf16 %v536_v26, %v536_v26 }
 0x382   : > { %v970_v27 = vpop.eup %969 }
 0x383   : > { %v609_v29 = vmul.f32 %v970_v27, %v962_v8  ;;  %913 = vmatmul.mubr.msk.bf16.vlgmr.msra.gmra.mrb[8].mxu0 %vm467_vm8, %v537_v28 }
 0x384   : > { %924 = vmatprep.mubr.msk.bf16.mxu0 %vm984_vm0, %v983_v1 }
 0x385   : > { %v610_v30 = vpack.c.bf16 %v609_v29, %v609_v29 }
 0x387   : > { %919 = vmatmul.mubr.msk.bf16.vlgmr.msra.gmra.mrb[8].mxu1 %vm467_vm8, %v610_v30 }
 0x3a8   : > { %v679_v31 = vpop.xlane.xlu1 %678 }
 0x3a9   : > { %971 = vrcp.f32 %v679_v31 }
 0x3ac   : > { %v684_v32 = vpop.permute.xlu1 %683 }
 0x3ad   : > { %v689_v33 = vsel %vm471_vm2, %v684_v32, 0 }
 0x3ae   : > { %923 = vmatpush3.bf16.msra.mxu0 %v689_v33 }
 0x3b3   : > { %v972_v34 = vpop.eup %971 }
 0x3b4   : > { %v681_v35 = vmul.f32 %v972_v34, %v964_v14 }
 0x3b6   : > { %v682_v36 = vpack.c.bf16 %v681_v35, %v681_v35 }
 0x3b8   : > { %925 = vmatmul.mubr.msk.bf16.vlgmr.msra.gmra.mrb[12].mxu0 %vm467_vm8, %v682_v36 }
 0x451   : > { %v508_v37 = vpop.f32.mrb[4].mxu1 }
 0x452   : > { %v908_v38 = vpop.f32.mrb[5].mxu1 }
 0x453   : > { %v511_v39 = vpop.f32.mrb[6].mxu1 }
 0x454   : > { %v909_v40 = vpop.f32.mrb[7].mxu1 }
 0x456   : > { %v581_v41 = vpop.f32.mrb[8].mxu0 }
 0x457   : > { %732 = vrot.lane.b32.xlu0 %v581_v41, %s992_s20  ;;  %v914_v1 = vpop.f32.mrb[9].mxu0 }
 0x458   : > { %v584_v42 = vpop.f32.mrb[10].mxu0 }
 0x459   : > { %v915_v43 = vpop.f32.mrb[11].mxu0 }
 0x45a   : > { %v653_v44 = vpop.f32.mrb[8].mxu1 }
 0x45b   : > { %736 = vrot.lane.b32.xlu1 %v653_v44, %s993_s21  ;;  %v920_v45 = vpop.f32.mrb[9].mxu1 }
 0x45c   : > { %v656_v46 = vpop.f32.mrb[10].mxu1 }
 0x45d   : > { %v921_v47 = vpop.f32.mrb[11].mxu1 }
 0x48b   : > { %v725_v48 = vpop.f32.mrb[12].mxu0 }
 0x48c   : > { %740 = vrot.lane.b32.xlu0 %v725_v48, %s994_s22  ;;  %v926_v49 = vpop.f32.mrb[13].mxu0 }
 0x48d   : > { %v728_v50 = vpop.f32.mrb[14].mxu0 }
 0x48e   : > { %v927_v51 = vpop.f32.mrb[15].mxu0 }
 0x4c9   : > { %v733_v52 = vpop.permute.xlu0 %732 }
 0x4ca   : > { %v744_v54 = vsel %vm743_vm9, %v508_v37, %v733_v52 }
 0x4cd   : > { %v737_v53 = vpop.permute.xlu1 %736 }
 0x4ce   : > { %v746_v56 = vsel %vm745_vm10, %v744_v54, %v737_v53 }
 0x4fe   : > { %v741_v57 = vpop.permute.xlu0 %740 }
 0x4ff   : > { %v748_v58 = vsel %vm747_vm11, %v746_v56, %v741_v57 }
 0x500   : > { %v756_v59 = vadd.f32 %v861_v55, %v748_v58 }
 0x502   : > { %v757_v60 = vadd.f32 %v756_v59, %v1065_v3  ;;  %v862_v3 = vld [vmem:[%s1147_s5] ss:$0 sm:$0xff] }
 0x504   : > { %v759_v61 = vsel %vm758_vm12, %v757_v60, 0.0 }
 0x505   : > { %760 = vadd.xlane.f32.xlu1 %v759_v61 }
 0x592   : > { %v761_v62 = vpop.xlane.xlu1 %760 }
 0x593   : > { %v763_v63 = vmul.f32 0.03125, %v761_v62 }
 0x595   : > { %v764_v0 = vsub.f32 %v757_v60, %v763_v63 }
 0x597   : > { %v765_v2 = vmul.f32 %v764_v0, %v764_v0 }
 0x599   : > { %v766_v4 = vsel %vm758_vm12, %v765_v2, 0.0 }
 0x59a   : > { %767 = vadd.xlane.f32.xlu0 %v766_v4 }
 0x627   : > { %v768_v5 = vpop.xlane.xlu0 %767 }
 0x628   : > { %v769_v6 = vmul.f32 0.03125, %v768_v5 }
 0x62a   : > { %v770_v7 = vadd.f32 1e-05, %v769_v6 }
 0x62c   : > { %973 = vrsqrt.f32 %v770_v7 }
 0x636   : > { %v974_v8 = vpop.eup %973 }
 0x637   : > { %v772_v9 = vmul.f32 %v974_v8, %v764_v0 }
 0x639   : > { %v780_v12 = vmul.f32 %v862_v3, %v772_v9 }
 0x63b   : > { %v788_v13 = vadd.f32 %v863_v11, %v780_v12 }
 0x63d   : > { %789 = vst.msk [vmem:[%s273_s11] sm:$0xf] %vm758_vm12, %v788_v13 }
 0x63e PF: > { %s17_s24 = sadd.s32 1, %s981_s24  }
 0x63f   : > { %p14_p4 = scmp.ge.s32.totalorder %s17_s24, 4  }
 0x641   :  { %16 = sbr.rel (!%p14_p4) target bundleno = 1 (0x1), region = 78 }

// kernel: custom-call.4
= control target key start
LH: loop header
LB: loop body
LE: loop exit
PB: predicated region body
PF: predicated region fallthrough
CT: control target
= control target key end

     0   :  { %s6_s0 = inlined_call_operand.vmem [shape: s32[7,2,9], index: 0, kind: output, shape index: {}]  }

// kernel: model_forward.22
= control target key start
LH: loop header
LB: loop body
LE: loop exit
PB: predicated region body
PF: predicated region fallthrough
CT: control target
= control target key end

     0   :  { %s1261_s27 = smov 0   ;;  %s1394_s0 = inlined_call_operand.vmem [shape: f32[2,16,32], index: 0, kind: input, shape index: {}]   ;;  %s1395_s1 = inlined_call_operand.vmem [shape: s8[2,16,16], index: 1, kind: input, shape index: {}]   ;;  %s1396_s2 = inlined_call_operand.vmem [shape: bf16[32,32], index: 2, kind: input, shape index: {}]   ;;  %s1397_s3 = inlined_call_operand.vmem [shape: bf16[4,32], index: 3, kind: input, shape index: {}]   ;;  %s1398_s4 = inlined_call_operand.vmem [shape: bf16[32,4], index: 4, kind: input, shape index: {}]   ;;  %s1399_s5 = inlined_call_operand.vmem [shape: f32[1,32], index: 5, kind: input, shape index: {}, may-alias: {5,7}]   ;;  %s1400_s6 = inlined_call_operand.vmem [shape: f32[1,32], index: 6, kind: input, shape index: {}]   ;;  %s1401_s7 = inlined_call_operand.vmem [shape: f32[1,32], index: 7, kind: input, shape index: {}, may-alias: {5,7}]   ;;  %s1402_s8 = inlined_call_operand.vmem [shape: f32[2,16,32], index: 8, kind: output, shape index: {}]  }
   0x1 LB: > { %s1032_s28 = sadd.s32 4294967295, %s1201_s27   ;;  %p1036_p0 = scmp.ge.s32.totalorder %s1201_s27, 1  ;;  %s1201_s27 = sphi %s1261_s27, %s18_s27  }
   0x2   : > { %p272_p1 = scmp.lt.s32.totalorder %s1201_s27, 3 }
   0x4   : > { %p273_p2 = pnand %p1036_p0, %p272_p1 }
   0x5   : > { %v1155_v0 = vld [vmem:[%s1396_s2] sm:$0xff] (!%p273_p2)   ;;  %v1203_v1 = vmov (!%p273_p2), 0.0   ;;  %v1156_v2 = vld [vmem:[%s1396_s2 + $0x8] sm:$0xff] (!%p273_p2)   ;;  %vm1204_vm0 = vmmov (!%p273_p2), 0   ;;  %p311_p3 = scmp.lt.s32.totalorder (!%p273_p2), %s1032_s28, 1  ;;  %vm346_vm1 = vcmask (!%p273_p2), 261120   ;;  %v514_v27 = vlaneseq (!%p273_p2) }
   0x6   : > { %276 = sbr.rel (%p273_p2) target bundleno = 1565 (0x61d), region = 52  ;;  %1082 = vmatprep.subr.bf16.mxu0 (!%p273_p2), %v1203_v1  ;;  %1090 = vmatprep.subr.bf16.mxu1 (!%p273_p2), %v1203_v1  ;;  %v1157_v5 = vld [vmem:[%s1398_s4] sm:$0xff] (!%p273_p2)   ;;  %v1158_v7 = vld [vmem:[%s1398_s4 + $0x8] sm:$0xff] (!%p273_p2)   ;;  %v1205_v8 = vmov (!%p273_p2), 1   ;;  %v1206_v9 = vmov (!%p273_p2), 0   ;;  %v1207_v22 = vmov (!%p273_p2), 2  }
   0x7   : > { %1083 = vmatpush3.bf16.msra.mxu0 (!%p273_p2), %v1155_v0  ;;  %1086 = vmatprep.mubr.msk.bf16.mxu0 (!%p273_p2), %vm1204_vm0, %v1203_v1  ;;  %v392_v16 = vld [vmem:[%s1397_s3] sm:$0x3] (!%p273_p2)  ;;  %v1208_v26 = vmov (!%p273_p2), 3   ;;  %v515_v28 = vshrl.u32 (!%p273_p2), %v514_v27, 7  ;;  %v1209_v40 = vmov (!%p273_p2), -1e+30  }
   0x8   : > { %1084 = vmatprep.subr.bf16.mxu0 (!%p273_p2), %v1203_v1  ;;  %1092 = vmatprep.mubr.msk.bf16.mxu1 (!%p273_p2), %vm1204_vm0, %v1203_v1  ;;  %vm528_vm6 = vcmask (!%p273_p2), 130048   ;;  %s1210_s25 = smov (!%p273_p2), 120   ;;  %s1211_s26 = smov (!%p273_p2), 104   ;;  %vm897_vm13 = vcmask (!%p273_p2), 64512   ;;  %vm902_vm14 = vcmask (!%p273_p2), 195584  }
   0x9   : > { %1150 = vset.pattern.permute.xlu1 (!%p273_p2), %v1205_v8  ;;  %1149 = vset.pattern.permute.xlu0 (!%p273_p2), %v1206_v9  ;;  %v606_v30 = vsub.s32 (!%p273_p2), 1, %v515_v28  ;;  %v516_v31 = vsub.s32 (!%p273_p2), 0, %v515_v28  ;;  %v699_v46 = vsub.s32 (!%p273_p2), 2, %v515_v28  ;;  %v791_v61 = vsub.s32 (!%p273_p2), 3, %v515_v28  ;;  %s1212_s29 = smov (!%p273_p2), 112   ;;  %s1213_s30 = smov (!%p273_p2), 8  }
   0xa   : > { %s1214_s9 = smov (!%p273_p2), 16   ;;  %s1215_s10 = smov (!%p273_p2), 24  }
   0xb   : > { %1085 = vmatpush3.bf16.msra.mxu0 (!%p273_p2), %v1156_v2 }
   0xc   : > { %1096 = vmatprep.subr.bf16.mxu0 (!%p273_p2), %v1203_v1 }
   0xd   : > { %s1404_s28 = smov (!%p311_p3, %s1032_s28), 1 }
   0xe   : > { %s1059_s11 = sshll.u32 %s1404_s28, 4  ;;  %s1060_s21 = sshll.u32 %s1404_s28, 2 }
   0xf   : > { %s315_s14 = scalar_lea.vmem %s1394_s0, %s1059_s11  ;;  %s320_s24 = scalar_lea.vmem %s1395_s1, %s1060_s21 }
  0x10   : > { %v1291_v3 = vld [vmem:[%s315_s14] sm:$0xff]  ;;  %v1293_v4 = vld [vmem:[%s315_s14 + $0x8] sm:$0xff]  ;;  %s325_s20 = scalar_lea.vmem %s1402_s8, %s1059_s11 }
  0x11   : > { %v329_v6 = vpack.c.bf16 %v1293_v4, %v1291_v3  ;;  %v1063_v29 = vld [vmem:[%s320_s24] sm:$0xf]  }
  0x12   : > { %v1064_v32 = vunpack.c.0.s8 %v1063_v29  ;;  %v1065_v35 = vunpack.c.1.s8 %v1063_v29 }
  0x13   : > { %1087 = vmatmul.mubr.msk.bf16.vlgmr.msra.gmra.mrb[0].mxu0 %vm346_vm1, %v329_v6 }
  0x14   : > { %1097 = vmatpush3.bf16.msra.mxu0 %v1157_v5  ;;  %1100 = vmatprep.mubr.msk.bf16.mxu0 %vm1204_vm0, %v1203_v1  ;;  %vm500_vm2 = vcmp.gt.s32.totalorder %v1064_v32, 0  ;;  %vm501_vm3 = vcmp.gt.s32.totalorder %v1065_v35, 0 }
  0x15   : > { %1098 = vmatprep.subr.bf16.mxu0 %v1203_v1  ;;  %v502_v41 = vsel %vm500_vm2, 0.0, %v1209_v40  ;;  %v503_v53 = vsel %vm501_vm3, 0.0, %v1209_v40 }
  0x18   : > { %1099 = vmatpush3.bf16.msra.mxu0 %v1158_v7 }
  0x19   : > { %1110 = vmatprep.subr.bf16.mxu0 %v1203_v1 }
  0xe6   : > { %v384_v10 = vpop.f32.mrb[0].mxu0 }
  0xe7   : > { %v1088_v11 = vpop.f32.mrb[1].mxu0 }
  0xe8   : > { %v387_v12 = vpop.f32.mrb[2].mxu0 }
  0xe9   : > { %v1308_v13 = vpack.c.bf16 %v387_v12, %v384_v10  ;;  %v1089_v14 = vpop.f32.mrb[3].mxu0 }
  0xeb   : > { %1101 = vmatmul.mubr.msk.bf16.vlgmr.msra.gmra.mrb[4].mxu0 %vm346_vm1, %v1308_v13  ;;  %v397_v15 = vsel %vm346_vm1, %v1308_v13, 0 }
  0xec   : > { %1091 = vmatpush3.bf16.xpose.msra.mxu1 %v397_v15  ;;  %1112 = vmatprep.mubr.msk.bf16.mxu0 %vm1204_vm0, %v1203_v1 }
  0xed   : > { %1104 = vmatprep.subr.bf16.mxu1 %v1203_v1 }
  0xf3   : > { %1093 = vmatmul.mubr.msk.bf16.vlgmr.msra.gmra.mrb[0].mxu1 %vm346_vm1, %v392_v16 }
  0xf4   : > { %1105 = vmatpush3.bf16.msra.mxu1 %v1308_v13  ;;  %1106 = vmatprep.mubr.msk.bf16.mxu1 %vm1204_vm0, %v1203_v1 }
  0xf5   : > { %1116 = vmatprep.subr.bf16.mxu1 %v1203_v1 }
 0x1be   : > { %v489_v17 = vpop.f32.mrb[4].mxu0 }
 0x1bf   : > { %597 = vperm.xlu1 %1150, %v489_v17   ;;  %506 = vperm.xlu0 %1149, %v489_v17   ;;  %v1102_v18 = vpop.f32.mrb[5].mxu0 }
 0x1c0   : > { %v492_v19 = vpop.f32.mrb[6].mxu0 }
 0x1c1   : > { %v1103_v20 = vpop.f32.mrb[7].mxu0 }
 0x1c3   : > { %601 = vperm.xlu1 %1150, %v492_v19   ;;  %511 = vperm.xlu0 %1149, %v492_v19  }
 0x1c6   : > { %v1325_v21 = vpop.f32.mrb[0].mxu1 }
 0x1c7   : > { %1152 = vset.pattern.permute.xlu1 %v1207_v22  ;;  %1151 = vset.pattern.permute.xlu0 %v1207_v22  ;;  %v1094_v23 = vpop.f32.mrb[1].mxu1  ;;  %v607_v33 = vrot.slane %v1325_v21, %v606_v30  ;;  %v517_v34 = vrot.slane %v1325_v21, %v516_v31  ;;  %v700_v57 = vrot.slane %v1325_v21, %v699_v46 }
 0x1c8   : > { %694 = vperm.xlu1 %1152, %v492_v19   ;;  %690 = vperm.xlu0 %1151, %v489_v17   ;;  %v436_v24 = vpop.f32.mrb[2].mxu1  ;;  %v792_v10 = vrot.slane %v1325_v21, %v791_v61 }
 0x1c9   : > { %v1095_v25 = vpop.f32.mrb[3].mxu1 }
 0x1cc   : > { %1153 = vset.pattern.permute.xlu1 %v1208_v26  ;;  %1154 = vset.pattern.permute.xlu0 %v1208_v26 }
 0x1cd   : > { %782 = vperm.xlu1 %1153, %v489_v17   ;;  %786 = vperm.xlu0 %1154, %v492_v19  }
 0x23e   : > { %v598_v36 = vpop.permute.xlu1 %597  ;;  %v507_v37 = vpop.permute.xlu0 %506 }
 0x23f   : > { %v608_v38 = vadd.f32 %v607_v33, %v598_v36  ;;  %v518_v39 = vadd.f32 %v517_v34, %v507_v37 }
 0x241   : > { %vm610_vm4 = vcmp.gt.f32.partialorder %v608_v38, 0.0  ;;  %v612_v42 = vmul.f32 0.2, %v608_v38  ;;  %vm520_vm5 = vcmp.gt.f32.partialorder %v518_v39, 0.0  ;;  %v522_v43 = vmul.f32 0.2, %v518_v39 }
 0x242   : > { %v602_v44 = vpop.permute.xlu1 %601  ;;  %v512_v45 = vpop.permute.xlu0 %511 }
 0x243   : > { %v609_v47 = vadd.f32 %v607_v33, %v602_v44  ;;  %v519_v48 = vadd.f32 %v517_v34, %v512_v45  ;;  %v524_v49 = vsel %vm520_vm5, %v518_v39, %v522_v43  ;;  %v614_v50 = vsel %vm610_vm4, %v608_v38, %v612_v42 }
 0x244   : > { %v526_v51 = vadd.f32 %v524_v49, %v502_v41  ;;  %v1333_v52 = vadd.f32 %v614_v50, %v502_v41 }
 0x245   : > { %vm611_vm7 = vcmp.gt.f32.partialorder %v609_v47, 0.0  ;;  %v613_v54 = vmul.f32 0.2, %v609_v47  ;;  %vm521_vm8 = vcmp.gt.f32.partialorder %v519_v48, 0.0  ;;  %v523_v55 = vmul.f32 0.2, %v519_v48 }
 0x246   : > { %v529_v56 = vsel %vm528_vm6, %v526_v51, -inf  ;;  %v618_v5 = vsel %vm528_vm6, %v1333_v52, -inf }
 0x247   : > { %530 = vmax.xlane.f32.xlu1 %v529_v56  ;;  %v695_v58 = vpop.permute.xlu1 %694  ;;  %v691_v59 = vpop.permute.xlu0 %690  ;;  %v525_v60 = vsel %vm521_vm8, %v519_v48, %v523_v55  ;;  %v615_v62 = vsel %vm611_vm7, %v609_v47, %v613_v54 }
 0x248   : > { %v702_v63 = vadd.f32 %v700_v57, %v695_v58  ;;  %v701_v0 = vadd.f32 %v700_v57, %v691_v59  ;;  %v527_v2 = vadd.f32 %v525_v60, %v503_v53  ;;  %v617_v6 = vadd.f32 %v615_v62, %v503_v53 }
 0x24a   : > { %vm704_vm9 = vcmp.gt.f32.partialorder %v702_v63, 0.0  ;;  %v706_v7 = vmul.f32 0.2, %v702_v63  ;;  %vm703_vm10 = vcmp.gt.f32.partialorder %v701_v0, 0.0  ;;  %v705_v8 = vmul.f32 0.2, %v701_v0 }
 0x24b   : > { %619 = vmax.xlane.f32.xlu1 %v618_v5  ;;  %v532_v9 = vsel %vm528_vm6, %v527_v2, -inf  ;;  %v621_v19 = vsel %vm528_vm6, %v617_v6, -inf }
 0x24c   : > { %533 = vmax.xlane.f32.xlu0 %v532_v9  ;;  %v783_v11 = vpop.permute.xlu1 %782  ;;  %v787_v12 = vpop.permute.xlu0 %786  ;;  %v707_v14 = vsel %vm703_vm10, %v701_v0, %v705_v8  ;;  %v708_v15 = vsel %vm704_vm9, %v702_v63, %v706_v7 }
 0x24d   : > { %v793_v16 = vadd.f32 %v792_v10, %v783_v11  ;;  %v794_v17 = vadd.f32 %v792_v10, %v787_v12  ;;  %v709_v18 = vadd.f32 %v707_v14, %v502_v41  ;;  %v710_v20 = vadd.f32 %v708_v15, %v503_v53 }
 0x24f   : > { %vm795_vm11 = vcmp.gt.f32.partialorder %v793_v16, 0.0  ;;  %v797_v22 = vmul.f32 0.2, %v793_v16  ;;  %vm796_vm12 = vcmp.gt.f32.partialorder %v794_v17, 0.0  ;;  %v798_v23 = vmul.f32 0.2, %v794_v17 }
 0x250   : > { %622 = vmax.xlane.f32.xlu0 %v621_v19  ;;  %v711_v24 = vsel %vm528_vm6, %v709_v18, -inf  ;;  %v714_v27 = vsel %vm528_vm6, %v710_v20, -inf }
 0x251   : > { %712 = vmax.xlane.f32.xlu1 %v711_v24  ;;  %v799_v21 = vsel %vm795_vm11, %v793_v16, %v797_v22  ;;  %v800_v25 = vsel %vm796_vm12, %v794_v17, %v798_v23 }
 0x252   : > { %v801_v26 = vadd.f32 %v799_v21, %v502_v41  ;;  %v802_v28 = vadd.f32 %v800_v25, %v503_v53 }
 0x254   : > { %715 = vmax.xlane.f32.xlu0 %v714_v27  ;;  %v803_v29 = vsel %vm528_vm6, %v801_v26, -inf  ;;  %v806_v30 = vsel %vm528_vm6, %v802_v28, -inf }
 0x255   : > { %804 = vmax.xlane.f32.xlu1 %v803_v29 }
 0x258   : > { %807 = vmax.xlane.f32.xlu0 %v806_v30 }
 0x266   : > { %642 = vrot.lane.b32.xlu1 %v1308_v13, %s1210_s25 }
 0x2d4   : > { %v531_v31 = vpop.xlane.xlu1 %530 }
 0x2d5   : > { %v535_v32 = vsub.f32 %v526_v51, %v531_v31 }
 0x2d7   : > { %v537_v33 = vmul.f32 1.442695, %v535_v32 }
 0x2d8   : > { %v620_v34 = vpop.xlane.xlu1 %619 }
 0x2d9   : > { %1159 = vpow2.f32 %v537_v33  ;;  %v624_v35 = vsub.f32 %v1333_v52, %v620_v34  ;;  %v534_v36 = vpop.xlane.xlu0 %533 }
 0x2da   : > { %v536_v37 = vsub.f32 %v527_v2, %v534_v36 }
 0x2db   : > { %v626_v38 = vmul.f32 1.442695, %v624_v35 }
 0x2dc   : > { %v539_v39 = vmul.f32 1.442695, %v536_v37 }
 0x2dd   : > { %1161 = vpow2.f32 %v626_v38  ;;  %v623_v40 = vpop.xlane.xlu0 %622 }
 0x2de   : > { %1163 = vpow2.f32 %v539_v39  ;;  %v625_v41 = vsub.f32 %v617_v6, %v623_v40  ;;  %v713_v42 = vpop.xlane.xlu1 %712 }
 0x2df   : > { %v717_v43 = vsub.f32 %v709_v18, %v713_v42 }
 0x2e0   : > { %v628_v44 = vmul.f32 1.442695, %v625_v41 }
 0x2e1   : > { %v719_v45 = vmul.f32 1.442695, %v717_v43  ;;  %v716_v46 = vpop.xlane.xlu0 %715 }
 0x2e2   : > { %1165 = vpow2.f32 %v628_v44  ;;  %v718_v47 = vsub.f32 %v710_v20, %v716_v46  ;;  %v805_v48 = vpop.xlane.xlu1 %804 }
 0x2e3   : > { %v1160_v49 = vpop.eup %1159  ;;  %1167 = vpow2.f32 %v719_v45  ;;  %v809_v50 = vsub.f32 %v801_v26, %v805_v48 }
 0x2e4   : > { %v721_v51 = vmul.f32 1.442695, %v718_v47  ;;  %v541_v52 = vsel %vm528_vm6, %v1160_v49, 0.0 }
 0x2e5   : > { %v811_v53 = vmul.f32 1.442695, %v809_v50  ;;  %v808_v54 = vpop.xlane.xlu0 %807  ;;  %542 = vadd.xlane.f32.xlu1 %v541_v52 }
 0x2e6   : > { %1169 = vpow2.f32 %v721_v51  ;;  %v810_v55 = vsub.f32 %v802_v28, %v808_v54  ;;  %v643_v56 = vpop.permute.xlu1 %642 }
 0x2e7   : > { %v1162_v57 = vpop.eup %1161  ;;  %1171 = vpow2.f32 %v811_v53  ;;  %1111 = vmatpush3.bf16.msra.mxu0 %v643_v56 }
 0x2e8   : > { %v1164_v58 = vpop.eup %1163  ;;  %v813_v59 = vmul.f32 1.442695, %v810_v55  ;;  %v630_v60 = vsel %vm528_vm6, %v1162_v57, 0.0  ;;  %1122 = vmatprep.subr.bf16.mxu0 %v1203_v1 }
 0x2e9   : > { %631 = vadd.xlane.f32.xlu1 %v630_v60  ;;  %v544_v61 = vsel %vm528_vm6, %v1164_v58, 0.0 }
 0x2ea   : > { %1173 = vpow2.f32 %v813_v59  ;;  %545 = vadd.xlane.f32.xlu0 %v544_v61  ;;  %v1054_v61 = vld [vmem:[%s1399_s5] ss:$0 sm:$0xff] }
 0x2ec   : > { %v1166_v62 = vpop.eup %1165 }
 0x2ed   : > { %v1168_v63 = vpop.eup %1167  ;;  %v633_v0 = vsel %vm528_vm6, %v1166_v62, 0.0 }
 0x2ee   : > { %634 = vadd.xlane.f32.xlu0 %v633_v0  ;;  %v723_v2 = vsel %vm528_vm6, %v1168_v63, 0.0 }
 0x2ef   : > { %724 = vadd.xlane.f32.xlu1 %v723_v2 }
 0x2f0   : > { %v1170_v5 = vpop.eup %1169 }
 0x2f1   : > { %v1172_v6 = vpop.eup %1171  ;;  %v726_v7 = vsel %vm528_vm6, %v1170_v5, 0.0 }
 0x2f2   : > { %727 = vadd.xlane.f32.xlu0 %v726_v7  ;;  %v815_v8 = vsel %vm528_vm6, %v1172_v6, 0.0 }
 0x2f3   : > { %816 = vadd.xlane.f32.xlu1 %v815_v8 }
 0x2f4   : > { %v1174_v9 = vpop.eup %1173 }
 0x2f5   : > { %v818_v10 = vsel %vm528_vm6, %v1174_v9, 0.0 }
 0x2f6   : > { %819 = vadd.xlane.f32.xlu0 %v818_v10 }
 0x304   : > { %826 = vrot.lane.b32.xlu1 %v1308_v13, %s1211_s26 }
 0x30c   : > { %734 = vrot.lane.b32.xlu0 %v1308_v13, %s1212_s29 }
 0x372   : > { %v543_v11 = vpop.xlane.xlu1 %542 }
 0x373   : > { %1175 = vrcp.f32 %v543_v11 }
 0x376   : > { %v632_v12 = vpop.xlane.xlu1 %631 }
 0x377   : > { %v546_v14 = vpop.xlane.xlu0 %545 }
 0x378   : > { %1177 = vrcp.f32 %v546_v14 }
 0x379   : > { %1179 = vrcp.f32 %v632_v12 }
 0x37b   : > { %v635_v15 = vpop.xlane.xlu0 %634 }
 0x37c   : > { %1181 = vrcp.f32 %v635_v15  ;;  %v725_v16 = vpop.xlane.xlu1 %724 }
 0x37d   : > { %1183 = vrcp.f32 %v725_v16  ;;  %v1176_v18 = vpop.eup %1175 }
 0x37e   : > { %v549_v22 = vmul.f32 %v1176_v18, %v1160_v49 }
 0x37f   : > { %v728_v17 = vpop.xlane.xlu0 %727 }
 0x380   : > { %1185 = vrcp.f32 %v728_v17  ;;  %v817_v19 = vpop.xlane.xlu1 %816 }
 0x381   : > { %1187 = vrcp.f32 %v817_v19 }
 0x382   : > { %v1178_v20 = vpop.eup %1177 }
 0x383   : > { %v550_v23 = vmul.f32 %v1178_v20, %v1164_v58  ;;  %v820_v24 = vpop.xlane.xlu0 %819  ;;  %v1180_v13 = vpop.eup %1179 }
 0x384   : > { %1189 = vrcp.f32 %v820_v24  ;;  %v638_v26 = vmul.f32 %v1180_v13, %v1162_v57  ;;  %v827_v34 = vpop.permute.xlu1 %826 }
 0x385   : > { %v551_v21 = vpack.c.bf16 %v550_v23, %v549_v22 }
 0x386   : > { %v1182_v25 = vpop.eup %1181 }
 0x387   : > { %v639_v27 = vmul.f32 %v1182_v25, %v1166_v62  ;;  %1107 = vmatmul.mubr.msk.bf16.vlgmr.msra.gmra.mrb[4].mxu1 %vm528_vm6, %v551_v21  ;;  %v735_v28 = vpop.permute.xlu0 %734  ;;  %v1184_v29 = vpop.eup %1183 }
 0x388   : > { %1117 = vmatpush3.bf16.msra.mxu1 %v735_v28  ;;  %1118 = vmatprep.mubr.msk.bf16.mxu1 %vm1204_vm0, %v1203_v1  ;;  %v731_v32 = vmul.f32 %v1184_v29, %v1168_v63 }
 0x389   : > { %v640_v30 = vpack.c.bf16 %v639_v27, %v638_v26 }
 0x38a   : > { %v1186_v31 = vpop.eup %1185 }
 0x38b   : > { %v732_v33 = vmul.f32 %v1186_v31, %v1170_v5  ;;  %1113 = vmatmul.mubr.msk.bf16.vlgmr.msra.gmra.mrb[8].mxu0 %vm528_vm6, %v640_v30  ;;  %v1188_v35 = vpop.eup %1187  ;;  %v1055_v31 = vld [vmem:[%s1400_s6] ss:$0 sm:$0xff] }
 0x38c   : > { %1123 = vmatpush3.bf16.msra.mxu0 %v827_v34  ;;  %1124 = vmatprep.mubr.msk.bf16.mxu0 %vm1204_vm0, %v1203_v1  ;;  %v823_v38 = vmul.f32 %v1188_v35, %v1172_v6  ;;  %v1056_v34 = vld [vmem:[%s1401_s7] ss:$0 sm:$0xff] }
 0x38d   : > { %v733_v36 = vpack.c.bf16 %v732_v33, %v731_v32 }
 0x38e   : > { %v1190_v37 = vpop.eup %1189 }
 0x38f   : > { %v824_v39 = vmul.f32 %v1190_v37, %v1174_v9  ;;  %1119 = vmatmul.mubr.msk.bf16.vlgmr.msra.gmra.mrb[8].mxu1 %vm528_vm6, %v733_v36 }
 0x391   : > { %v825_v40 = vpack.c.bf16 %v824_v39, %v823_v38 }
 0x393   : > { %1125 = vmatmul.mubr.msk.bf16.vlgmr.msra.gmra.mrb[12].mxu0 %vm528_vm6, %v825_v40 }
 0x45a   : > { %v589_v41 = vpop.f32.mrb[4].mxu1 }
 0x45b   : > { %v1108_v42 = vpop.f32.mrb[5].mxu1 }
 0x45c   : > { %v592_v43 = vpop.f32.mrb[6].mxu1 }
 0x45d   : > { %v1109_v44 = vpop.f32.mrb[7].mxu1 }
 0x45e   : > { %v682_v45 = vpop.f32.mrb[8].mxu0 }
 0x45f   : > { %875 = vrot.lane.b32.xlu1 %v682_v45, %s1213_s30  ;;  %v1114_v46 = vpop.f32.mrb[9].mxu0 }
 0x460   : > { %v685_v47 = vpop.f32.mrb[10].mxu0 }
 0x461   : > { %877 = vrot.lane.b32.xlu0 %v685_v47, %s1213_s30  ;;  %v1115_v1 = vpop.f32.mrb[11].mxu0 }
 0x462   : > { %v774_v48 = vpop.f32.mrb[8].mxu1 }
 0x463   : > { %v1120_v49 = vpop.f32.mrb[9].mxu1  ;;  %883 = vrot.lane.b32.xlu1 %v774_v48, %s1214_s9 }
 0x464   : > { %v777_v50 = vpop.f32.mrb[10].mxu1 }
 0x465   : > { %v1121_v51 = vpop.f32.mrb[11].mxu1  ;;  %885 = vrot.lane.b32.xlu0 %v777_v50, %s1214_s9 }
 0x466   : > { %v866_v52 = vpop.f32.mrb[12].mxu0 }
 0x467   : > { %891 = vrot.lane.b32.xlu1 %v866_v52, %s1215_s10  ;;  %v1126_v53 = vpop.f32.mrb[13].mxu0 }
 0x468   : > { %v869_v54 = vpop.f32.mrb[14].mxu0 }
 0x469   : > { %893 = vrot.lane.b32.xlu0 %v869_v54, %s1215_s10  ;;  %v1127_v55 = vpop.f32.mrb[15].mxu0 }
 0x4d1   : > { %v876_v56 = vpop.permute.xlu1 %875 }
 0x4d2   : > { %v898_v60 = vsel %vm897_vm13, %v589_v41, %v876_v56 }
 0x4d3   : > { %v878_v57 = vpop.permute.xlu0 %877 }
 0x4d4   : > { %v899_v0 = vsel %vm897_vm13, %v592_v43, %v878_v57 }
 0x4d5   : > { %v884_v58 = vpop.permute.xlu1 %883 }
 0x4d6   : > { %v900_v62 = vsel %vm528_vm6, %v898_v60, %v884_v58 }
 0x4d7   : > { %v886_v59 = vpop.permute.xlu0 %885 }
 0x4d8   : > { %v901_v5 = vsel %vm528_vm6, %v899_v0, %v886_v59 }
 0x4d9   : > { %v892_v63 = vpop.permute.xlu1 %891 }
 0x4da   : > { %v903_v2 = vsel %vm902_vm14, %v900_v62, %v892_v63 }
 0x4db   : > { %v912_v6 = vadd.f32 %v1054_v61, %v903_v2  ;;  %v894_v7 = vpop.permute.xlu0 %893 }
 0x4dc   : > { %v904_v8 = vsel %vm902_vm14, %v901_v5, %v894_v7 }
 0x4dd   : > { %v914_v9 = vmax.f32 %v912_v6, 0.0  ;;  %v913_v10 = vadd.f32 %v1054_v61, %v904_v8 }
 0x4df   : > { %v915_v11 = vmax.f32 %v913_v10, 0.0  ;;  %v916_v12 = vadd.f32 %v914_v9, %v1291_v3 }
 0x4e1   : > { %v918_v14 = vsel %vm346_vm1, %v916_v12, 0.0  ;;  %v917_v15 = vadd.f32 %v915_v11, %v1293_v4 }
 0x4e2   : > { %919 = vadd.xlane.f32.xlu1 %v918_v14 }
 0x4e3   : > { %v921_v16 = vsel %vm346_vm1, %v917_v15, 0.0 }
 0x4e4   : > { %922 = vadd.xlane.f32.xlu0 %v921_v16 }
 0x56f   : > { %v920_v17 = vpop.xlane.xlu1 %919 }
 0x570   : > { %v925_v18 = vmul.f32 0.03125, %v920_v17 }
 0x571   : > { %v923_v19 = vpop.xlane.xlu0 %922 }
 0x572   : > { %v927_v20 = vsub.f32 %v916_v12, %v925_v18  ;;  %v926_v22 = vmul.f32 0.03125, %v923_v19 }
 0x574   : > { %v928_v23 = vsub.f32 %v917_v15, %v926_v22  ;;  %v929_v24 = vmul.f32 %v927_v20, %v927_v20 }
 0x576   : > { %v931_v13 = vsel %vm346_vm1, %v929_v24, 0.0  ;;  %v930_v21 = vmul.f32 %v928_v23, %v928_v23 }
 0x577   : > { %932 = vadd.xlane.f32.xlu0 %v931_v13 }
 0x578   : > { %v934_v3 = vsel %vm346_vm1, %v930_v21, 0.0 }
 0x579   : > { %935 = vadd.xlane.f32.xlu1 %v934_v3 }
 0x604   : > { %v933_v4 = vpop.xlane.xlu0 %932 }
 0x605   : > { %v937_v25 = vmul.f32 0.03125, %v933_v4 }
 0x606   : > { %v936_v26 = vpop.xlane.xlu1 %935 }
 0x607   : > { %v939_v27 = vadd.f32 1e-05, %v937_v25  ;;  %v938_v28 = vmul.f32 0.03125, %v936_v26 }
 0x609   : > { %1191 = vrsqrt.f32 %v939_v27  ;;  %v940_v29 = vadd.f32 1e-05, %v938_v28 }
 0x60b   : > { %1193 = vrsqrt.f32 %v940_v29 }
 0x613   : > { %v1192_v30 = vpop.eup %1191 }
 0x614   : > { %v943_v32 = vmul.f32 %v1192_v30, %v927_v20 }
 0x615   : > { %v1194_v33 = vpop.eup %1193 }
 0x616   : > { %v952_v35 = vmul.f32 %v1055_v31, %v943_v32  ;;  %v944_v36 = vmul.f32 %v1194_v33, %v928_v23 }
 0x618   : > { %v961_v37 = vadd.f32 %v1056_v34, %v952_v35  ;;  %v953_v38 = vmul.f32 %v1055_v31, %v944_v36 }
 0x61a   : > { %963 = vst.msk [vmem:[%s325_s20] sm:$0xff] %vm346_vm1, %v961_v37  ;;  %v962_v39 = vadd.f32 %v1056_v34, %v953_v38 }
 0x61c   : > { %964 = vst.msk [vmem:[%s325_s20 + $0x8] sm:$0xff] %vm346_vm1, %v962_v39 }
 0x61d PF: > { %s18_s27 = sadd.s32 1, %s1201_s27  }
 0x61e   : > { %p15_p4 = scmp.ge.s32.totalorder %s18_s27, 4  }
 0x620   :  { %17 = sbr.rel (!%p15_p4) target bundleno = 1 (0x1), region = 85 }

// kernel: model_forward.25
= control target key start
LH: loop header
LB: loop body
LE: loop exit
PB: predicated region body
PF: predicated region fallthrough
CT: control target
= control target key end

     0   :  { %v328_v0 = vmov 0.0   ;;  %vm329_vm0 = vmmov 0   ;;  %vm47_vm1 = vcmask 261120   ;;  %s398_s1 = inlined_call_operand.vmem [shape: bf16[32,32], index: 1, kind: input, shape index: {}]   ;;  %s399_s0 = inlined_call_operand.vmem [shape: f32[16,32], index: 0, kind: input, shape index: {}]   ;;  %s400_s2 = inlined_call_operand.vmem [shape: f32[1,32], index: 2, kind: input, shape index: {}]   ;;  %s401_s3 = inlined_call_operand.vmem [shape: bf16[32,128], index: 3, kind: input, shape index: {}]   ;;  %s402_s4 = inlined_call_operand.vmem [shape: f32[1,128], index: 4, kind: input, shape index: {}]   ;;  %s403_s5 = inlined_call_operand.vmem [shape: f32[16,128], index: 5, kind: output, shape index: {}]  }
   0x1   :  { %290 = vmatprep.subr.bf16.mxu0 %v328_v0  ;;  %v324_v1 = vld [vmem:[%s398_s1] sm:$0xff]   ;;  %294 = vmatprep.mubr.msk.bf16.mxu0 %vm329_vm0, %v328_v0  ;;  %v325_v2 = vld [vmem:[%s398_s1 + $0x8] sm:$0xff]  }
   0x2   :  { %298 = vmatprep.subr.bf16.mxu1 %v328_v0  ;;  %302 = vmatprep.mubr.msk.bf16.mxu1 %vm329_vm0, %v328_v0  ;;  %v21_v3 = vld [vmem:[%s399_s0] sm:$0xff]  ;;  %v22_v4 = vld [vmem:[%s399_s0 + $0x8] sm:$0xff] }
   0x3   :  { %291 = vmatpush3.bf16.msra.mxu0 %v324_v1  ;;  %299 = vmatpush3.bf16.msra.mxu1 %v324_v1  ;;  %v23_v5 = vpack.c.bf16 %v22_v4, %v21_v3  ;;  %v268_v6 = vld [vmem:[%s400_s2] ss:$0 sm:$0xff]  ;;  %v327_v30 = vld [vmem:[%s401_s3 + $0x8] sm:$0xff]  }
   0x4   :  { %292 = vmatprep.subr.bf16.mxu0 %v328_v0  ;;  %300 = vmatprep.subr.bf16.mxu1 %v328_v0  ;;  %v326_v29 = vld [vmem:[%s401_s3] sm:$0xff]  }
   0x5   :  { %v274_v42 = vld [vmem:[%s402_s4] ss:$0 sm:$0xff] }
   0x7   :  { %293 = vmatpush3.bf16.msra.mxu0 %v325_v2  ;;  %301 = vmatpush3.bf16.msra.mxu1 %v325_v2 }
   0x8   :  { %306 = vmatprep.subr.bf16.mxu0 %v328_v0  ;;  %314 = vmatprep.subr.bf16.mxu1 %v328_v0 }
   0xa   :  { %295 = vmatmul.mubr.msk.bf16.vlgmr.msra.gmra.mrb[0].mxu0 %vm47_vm1, %v23_v5 }
   0xb   :  { %307 = vmatpush3.bf16.msra.mxu0 %v324_v1  ;;  %310 = vmatprep.mubr.msk.bf16.mxu0 %vm329_vm0, %v328_v0 }
   0xc   :  { %308 = vmatprep.subr.bf16.mxu0 %v328_v0 }
   0xf   :  { %309 = vmatpush3.bf16.msra.mxu0 %v325_v2 }
  0xdd   :  { %v85_v7 = vpop.f32.mrb[0].mxu0 }
  0xde   :  { %v86_v8 = vadd.f32 %v268_v6, %v85_v7  ;;  %v296_v9 = vpop.f32.mrb[1].mxu0 }
  0xdf   :  { %v88_v10 = vpop.f32.mrb[2].mxu0 }
  0xe0   :  { %v92_v11 = vmax.f32 %v86_v8, 0.0  ;;  %v89_v12 = vadd.f32 %v268_v6, %v88_v10  ;;  %v297_v13 = vpop.f32.mrb[3].mxu0 }
  0xe2   :  { %v93_v14 = vmax.f32 %v89_v12, 0.0  ;;  %v94_v15 = vadd.f32 %v92_v11, %v21_v3 }
  0xe4   :  { %v95_v16 = vadd.f32 %v93_v14, %v22_v4 }
  0xe6   :  { %v96_v17 = vpack.c.bf16 %v95_v16, %v94_v15 }
  0xe8   :  { %303 = vmatmul.mubr.msk.bf16.vlgmr.msra.gmra.mrb[0].mxu1 %vm47_vm1, %v96_v17 }
  0xe9   :  { %318 = vmatprep.mubr.msk.bf16.mxu1 %vm329_vm0, %v328_v0  ;;  %315 = vmatpush3.bf16.msra.mxu1 %v326_v29 }
  0xea   :  { %316 = vmatprep.subr.bf16.mxu1 %v328_v0 }
  0xed   :  { %317 = vmatpush3.bf16.msra.mxu1 %v327_v30 }
 0x1bb   :  { %v134_v18 = vpop.f32.mrb[0].mxu1 }
 0x1bc   :  { %v135_v19 = vadd.f32 %v268_v6, %v134_v18  ;;  %v304_v20 = vpop.f32.mrb[1].mxu1 }
 0x1bd   :  { %v137_v21 = vpop.f32.mrb[2].mxu1 }
 0x1be   :  { %v141_v22 = vmax.f32 %v135_v19, 0.0  ;;  %v138_v23 = vadd.f32 %v268_v6, %v137_v21  ;;  %v305_v24 = vpop.f32.mrb[3].mxu1 }
 0x1c0   :  { %v142_v25 = vmax.f32 %v138_v23, 0.0  ;;  %v143_v26 = vadd.f32 %v141_v22, %v94_v15 }
 0x1c2   :  { %v144_v27 = vadd.f32 %v142_v25, %v95_v16 }
 0x1c4   :  { %v145_v28 = vpack.c.bf16 %v144_v27, %v143_v26 }
 0x1c6   :  { %311 = vmatmul.mubr.msk.bf16.vlgmr.msra.gmra.mrb[4].mxu0 %vm47_vm1, %v145_v28 }
 0x299   :  { %v183_v31 = vpop.f32.mrb[4].mxu0 }
 0x29a   :  { %v184_v32 = vadd.f32 %v268_v6, %v183_v31  ;;  %v312_v33 = vpop.f32.mrb[5].mxu0 }
 0x29b   :  { %v186_v34 = vpop.f32.mrb[6].mxu0 }
 0x29c   :  { %v190_v35 = vmax.f32 %v184_v32, 0.0  ;;  %v187_v36 = vadd.f32 %v268_v6, %v186_v34  ;;  %v313_v37 = vpop.f32.mrb[7].mxu0 }
 0x29e   :  { %v191_v38 = vmax.f32 %v187_v36, 0.0  ;;  %v192_v39 = vadd.f32 %v190_v35, %v143_v26 }
 0x2a0   :  { %v193_v40 = vadd.f32 %v191_v38, %v144_v27 }
 0x2a2   :  { %v194_v41 = vpack.c.bf16 %v193_v40, %v192_v39 }
 0x2a4   :  { %319 = vmatmul.mubr.msk.bf16.vlgmr.msra.gmra.mrb[4].mxu1 %vm47_vm1, %v194_v41 }
 0x377   :  { %v255_v43 = vpop.f32.mrb[4].mxu1 }
 0x378   :  { %v256_v44 = vadd.f32 %v274_v42, %v255_v43  ;;  %v320_v45 = vpop.f32.mrb[5].mxu1 }
 0x379   :  { %v258_v46 = vpop.f32.mrb[6].mxu1 }
 0x37a   :  { %262 = vst [vmem:[%s403_s5] sm:$0xff] %v256_v44  ;;  %v259_v47 = vadd.f32 %v274_v42, %v258_v46  ;;  %v321_v48 = vpop.f32.mrb[7].mxu1 }
 0x37c   :  { %263 = vst [vmem:[%s403_s5 + $0x8] sm:$0xff] %v259_v47 }

</bundles_post_ra>
